<compile_context>
chip_gen: v7x
topology: tpu7x:2x2x1
jax: 0.10.0
libtpu: 0.0.40
codegen_flags: <defaults>
</compile_context>

<pallas_src>
import functools
import math

import jax
import jax.numpy as jnp
from jax.experimental import pallas as pl
from jax.experimental.pallas import tpu as pltpu


# ----------------------------------------------------------------------------
# Helpers
# ----------------------------------------------------------------------------
def _layernorm(x, gamma, beta, eps=1e-5):
    mu = jnp.mean(x, axis=-1, keepdims=True)
    var = jnp.mean(jnp.square(x - mu), axis=-1, keepdims=True)
    return (x - mu) * jax.lax.rsqrt(var + eps) * gamma + beta


# ----------------------------------------------------------------------------
# Kernel 1: token embedding (img upscale + action upscale + pos-embeds + cat)
# ----------------------------------------------------------------------------
def _embed_kernel(x_ref, act_ref, w_img_ref, w_act_ref, pos_ref, tok_ref):
    n_patches = x_ref.shape[1]
    x_up = jnp.dot(x_ref[0].astype(jnp.bfloat16), w_img_ref[...],
                   preferred_element_type=jnp.float32)          # (n_patches, c)
    a_up = jnp.dot(act_ref[0].astype(jnp.bfloat16), w_act_ref[...],
                   preferred_element_type=jnp.float32)          # (n_act, c)
    pos = pos_ref[...].astype(jnp.float32)                      # (n_patches+1, c)
    # token 0 is the zero token + pos_embed[0]; then patches + pos; then actions.
    tok_ref[0, 0:1, :] = pos[0:1, :].astype(tok_ref.dtype)
    tok_ref[0, 1:1 + n_patches, :] = (x_up + pos[1:, :]).astype(tok_ref.dtype)
    tok_ref[0, 1 + n_patches:, :] = a_up.astype(tok_ref.dtype)


def embed_tokens(x, action_embeds, w_img, w_act, pos_embeds):
    bs, n_patches, img_dim = x.shape
    _, n_act, act_dim = action_embeds.shape
    model_dim = w_img.shape[1]
    n_tok = n_patches + 1 + n_act
    return pl.pallas_call(
        _embed_kernel,
        out_shape=jax.ShapeDtypeStruct((bs, n_tok, model_dim), jnp.float32),
        grid=(bs,),
        in_specs=[
            pl.BlockSpec((1, n_patches, img_dim), lambda b: (b, 0, 0)),
            pl.BlockSpec((1, n_act, act_dim), lambda b: (b, 0, 0)),
            pl.BlockSpec((img_dim, model_dim), lambda b: (0, 0)),
            pl.BlockSpec((act_dim, model_dim), lambda b: (0, 0)),
            pl.BlockSpec((n_patches + 1, model_dim), lambda b: (0, 0)),
        ],
        out_specs=pl.BlockSpec((1, n_tok, model_dim), lambda b: (b, 0, 0)),
        compiler_params=pltpu.CompilerParams(
            dimension_semantics=("parallel",)),
    )(x, action_embeds, w_img, w_act, pos_embeds)


# ----------------------------------------------------------------------------
# Kernel 2: one full ViT encoder layer (MHSA + FF), residual stream in VMEM
# ----------------------------------------------------------------------------
def _vit_layer_kernel(tok_ref, ln1_g_ref, ln1_b_ref, wqkv_ref,
                      ln2_g_ref, ln2_b_ref, w1_ref, b1_ref, w2_ref, b2_ref,
                      out_ref, probs_ref, attn_scratch, *, n_heads, scale):
    x = tok_ref[0]                                   # (n, c) f32 residual stream
    n, c = x.shape
    dh = c // n_heads

    # --- MultiheadSelfAttention: pre-LN fused into one packed QKV matmul ---
    xn = _layernorm(x, ln1_g_ref[...], ln1_b_ref[...]).astype(jnp.bfloat16)
    qkv = jnp.dot(xn, wqkv_ref[...],
                  preferred_element_type=jnp.float32)            # (n, 3c) f32

    for h in range(n_heads):                         # static unroll (few heads)
        q = qkv[:, h * dh:(h + 1) * dh].astype(jnp.bfloat16)
        k = qkv[:, c + h * dh:c + (h + 1) * dh].astype(jnp.bfloat16)
        v = qkv[:, 2 * c + h * dh:2 * c + (h + 1) * dh].astype(jnp.bfloat16)
        # scores: contract last dims directly (no explicit k.T transpose)
        s = jax.lax.dot_general(q, k, (((1,), (1,)), ((), ())),
                                preferred_element_type=jnp.float32) * scale
        s = s - jnp.max(s, axis=-1, keepdims=True)
        e = jnp.exp(s)
        p = e * pl.reciprocal(jnp.sum(e, axis=-1, keepdims=True), approx=True)
        probs_ref[0, h] = p.astype(probs_ref.dtype)
        o_h = jnp.dot(p.astype(jnp.bfloat16), v,
                      preferred_element_type=jnp.float32)        # (n, dh)
        attn_scratch[:, h * dh:(h + 1) * dh] = o_h   # merge heads lane-dense

    # Dropout2d(0.1) on attn_probs: inference-mode identity.
    x = attn_scratch[...] + x                        # attention residual (VMEM)

    # --- Feedforward: pre-LN + Linear + GELU + Linear + residual ---
    xn2 = _layernorm(x, ln2_g_ref[...], ln2_b_ref[...]).astype(jnp.bfloat16)
    h1 = jnp.dot(xn2, w1_ref[...],
                 preferred_element_type=jnp.float32) + b1_ref[...]
    h1 = jax.nn.gelu(h1, approximate=True).astype(jnp.bfloat16)  # tanh-GELU
    out = jnp.dot(h1, w2_ref[...], preferred_element_type=jnp.float32)
    out = out + b2_ref[...] + x
    out_ref[0] = out.astype(out_ref.dtype)


def _layer_cost(bs, n, c, ff, n_heads):
    dh = c // n_heads
    m = bs * n
    flops = (2 * m * c * 3 * c                            # packed QKV matmul
             + bs * n_heads * 2 * (2 * n * n * dh)        # scores + probs @ V
             + 2 * m * c * ff + 2 * m * ff * c)           # FF1 + FF2
    transcendentals = bs * n_heads * n * n + m * ff       # softmax exp + gelu
    bytes_accessed = (4 * m * c                           # tok in (f32)
                      + 2 * (c * 3 * c + c * ff + ff * c) # bf16 weights
                      + 4 * (4 * c + ff + c)              # ln params + biases
                      + 4 * m * c                         # tok out (f32)
                      + 4 * bs * n_heads * n * n)         # probs out (f32)
    return pl.CostEstimate(flops=flops, transcendentals=transcendentals,
                           bytes_accessed=bytes_accessed)


def vit_layer(tok, lp, *, n_heads):
    bs, n, c = tok.shape
    ff = lp["w1"].shape[1]
    dh = c // n_heads

    kernel = functools.partial(_vit_layer_kernel, n_heads=n_heads,
                               scale=1.0 / math.sqrt(dh))

    def rep(shape):   # weight/param block replicated across the batch grid
        return pl.BlockSpec(shape, lambda b: (0,) * len(shape))

    out, probs = pl.pallas_call(
        kernel,
        out_shape=(jax.ShapeDtypeStruct((bs, n, c), jnp.float32),
                   jax.ShapeDtypeStruct((bs, n_heads, n, n), jnp.float32)),
        grid=(bs,),
        in_specs=[
            pl.BlockSpec((1, n, c), lambda b: (b, 0, 0)),   # residual stream
            rep((1, c)), rep((1, c)),                       # LN1 gamma/beta
            rep((c, 3 * c)),                                # packed W_qkv (bf16)
            rep((1, c)), rep((1, c)),                       # LN2 gamma/beta
            rep((c, ff)), rep((1, ff)),                     # W1 (bf16), b1
            rep((ff, c)), rep((1, c)),                      # W2 (bf16), b2
        ],
        out_specs=(pl.BlockSpec((1, n, c), lambda b: (b, 0, 0)),
                   pl.BlockSpec((1, n_heads, n, n), lambda b: (b, 0, 0, 0))),
        scratch_shapes=[pltpu.VMEM((n, c), jnp.float32)],   # merged attn heads
        compiler_params=pltpu.CompilerParams(
            dimension_semantics=("parallel",)),             # batch across TCs
        cost_estimate=_layer_cost(bs, n, c, ff, n_heads),
    )(tok, lp["ln1_g"], lp["ln1_b"], lp["wqkv"],
      lp["ln2_g"], lp["ln2_b"], lp["w1"], lp["b1"], lp["w2"], lp["b2"])
    return out, probs


# ----------------------------------------------------------------------------
# Forward pass (Pallas path)
# ----------------------------------------------------------------------------
def vit_encoder_forward(x, action_embeds, kparams, *, n_heads):
    tok = embed_tokens(x, action_embeds, kparams["w_img"], kparams["w_act"],
                       kparams["pos"])
    layerwise_attn_probs = {}
    for i, lp in enumerate(kparams["layers"]):
        tok, probs = vit_layer(tok, lp, n_heads=n_heads)
        layerwise_attn_probs[f"layer{i}"] = probs
    return tok, layerwise_attn_probs


# ----------------------------------------------------------------------------
# Parameters (f32 "torch-like" params + one-time packed/bf16 kernel params)
# ----------------------------------------------------------------------------
def init_vit_params(key, n_layers, n_heads, n_patches, model_dim,
                    img_input_dim, action_input_dim):
    model_dim = (model_dim // n_heads) * n_heads
    ff_dim = model_dim * 2
    keys = iter(jax.random.split(key, 3 + 7 * n_layers))

    def dense(k, fan_in, fan_out):
        return (jax.random.normal(k, (fan_in, fan_out), jnp.float32)
                / math.sqrt(fan_in))

    params = {
        "w_img": dense(next(keys), img_input_dim, model_dim),
        "w_act": dense(next(keys), action_input_dim, model_dim),
        "pos_embeds": 0.02 * jax.random.normal(
            next(keys), (n_patches + 1, model_dim), jnp.float32),
        "layers": [],
    }
    for _ in range(n_layers):
        params["layers"].append({
            "attn": {
                "ln_g": jnp.ones((model_dim,), jnp.float32),
                "ln_b": jnp.zeros((model_dim,), jnp.float32),
                "wq": dense(next(keys), model_dim, model_dim),
                "wk": dense(next(keys), model_dim, model_dim),
                "wv": dense(next(keys), model_dim, model_dim),
            },
            "ff": {
                "ln_g": jnp.ones((model_dim,), jnp.float32),
                "ln_b": jnp.zeros((model_dim,), jnp.float32),
                "w1": dense(next(keys), model_dim, ff_dim),
                "b1": 0.01 * jax.random.normal(next(keys), (ff_dim,), jnp.float32),
                "w2": dense(next(keys), ff_dim, model_dim),
                "b2": 0.01 * jax.random.normal(next(keys), (model_dim,), jnp.float32),
            },
        })
    return params


def pack_kernel_params(params):
    """One-time packing/casting for the Pallas path (outside the forward trace)."""
    kp = {
        "w_img": params["w_img"].astype(jnp.bfloat16),
        "w_act": params["w_act"].astype(jnp.bfloat16),
        "pos": params["pos_embeds"].astype(jnp.float32),
        "layers": [],
    }
    for lp in params["layers"]:
        ap, fp = lp["attn"], lp["ff"]
        c = ap["wq"].shape[0]
        ff = fp["w1"].shape[1]
        kp["layers"].append({
            "ln1_g": ap["ln_g"].reshape(1, c).astype(jnp.float32),
            "ln1_b": ap["ln_b"].reshape(1, c).astype(jnp.float32),
            "wqkv": jnp.concatenate([ap["wq"], ap["wk"], ap["wv"]],
                                    axis=1).astype(jnp.bfloat16),   # (c, 3c)
            "ln2_g": fp["ln_g"].reshape(1, c).astype(jnp.float32),
            "ln2_b": fp["ln_b"].reshape(1, c).astype(jnp.float32),
            "w1": fp["w1"].astype(jnp.bfloat16),
            "b1": fp["b1"].reshape(1, ff).astype(jnp.float32),
            "w2": fp["w2"].astype(jnp.bfloat16),
            "b2": fp["b2"].reshape(1, c).astype(jnp.float32),
        })
    return kp


# ----------------------------------------------------------------------------
# Pure-JAX reference (f32) for correctness check only
# ----------------------------------------------------------------------------
def reference_forward(x, action_embeds, params, n_heads):
    def ln(t, g, b):
        mu = jnp.mean(t, -1, keepdims=True)
        var = jnp.mean((t - mu) ** 2, -1, keepdims=True)
        return (t - mu) / jnp.sqrt(var + 1e-5) * g + b

    model_dim = params["w_img"].shape[1]
    bs = x.shape[0]
    x_up = x @ params["w_img"]
    a_up = action_embeds @ params["w_act"]
    tok = (jnp.concatenate([jnp.zeros((bs, 1, model_dim), jnp.float32), x_up], 1)
           + params["pos_embeds"][None])
    tok = jnp.concatenate([tok, a_up], 1)

    attn = {}
    for i, lp in enumerate(params["layers"]):
        ap, fp = lp["attn"], lp["ff"]
        bsz, n, c = tok.shape
        hd = c // n_heads
        xn = ln(tok, ap["ln_g"], ap["ln_b"])
        q = (xn @ ap["wq"]).reshape(bsz, n, n_heads, hd).transpose(0, 2, 1, 3)
        k = (xn @ ap["wk"]).reshape(bsz, n, n_heads, hd).transpose(0, 2, 1, 3)
        v = (xn @ ap["wv"]).reshape(bsz, n, n_heads, hd).transpose(0, 2, 1, 3)
        s = jnp.einsum("bhid,bhjd->bhij", q, k) / math.sqrt(hd)
        p = jax.nn.softmax(s, -1)
        o = jnp.einsum("bhij,bhjd->bhid", p, v)
        tok = o.transpose(0, 2, 1, 3).reshape(bsz, n, c) + tok
        xn2 = ln(tok, fp["ln_g"], fp["ln_b"])
        h = jax.nn.gelu(xn2 @ fp["w1"] + fp["b1"], approximate=True)
        tok = h @ fp["w2"] + fp["b2"] + tok
        attn[f"layer{i}"] = p
    return tok, attn


if __name__ == "__main__":
    n_layers, n_heads, n_patches = 2, 4, 8
    model_dim, img_input_dim, action_input_dim = 128, 48, 16
    batch, n_action_tokens = 2, 2
    seq_len = n_patches + 1 + n_action_tokens

    key = jax.random.PRNGKey(0)
    kx, ka, kp = jax.random.split(key, 3)
    x = jax.random.normal(kx, (batch, n_patches, img_input_dim), jnp.float32)
    action_embeds = jax.random.normal(
        ka, (batch, n_action_tokens, action_input_dim), jnp.float32)
    params = init_vit_params(kp, n_layers, n_heads, n_patches, model_dim,
                             img_input_dim, action_input_dim)
    kparams = pack_kernel_params(params)   # pack QKV / cast weights once

    fwd = jax.jit(vit_encoder_forward, static_argnames=("n_heads",))
    out, attn = fwd(x, action_embeds, kparams, n_heads=n_heads)
    out = jax.block_until_ready(out)
    attn = jax.block_until_ready(attn)

    # Shape checks (match PyTorch semantics).
    assert out.shape == (batch, seq_len, model_dim), out.shape
    for i in range(n_layers):
        assert attn[f"layer{i}"].shape == (batch, n_heads, seq_len, seq_len)

    # Correctness vs. f32 reference (bf16 MXU operands => relaxed tolerance).
    out_ref, attn_ref = reference_forward(x, action_embeds, params, n_heads)
    assert jnp.allclose(out, out_ref, rtol=5e-2, atol=5e-2)
    for i in range(n_layers):
        assert jnp.allclose(attn[f"layer{i}"], attn_ref[f"layer{i}"],
                            rtol=5e-2, atol=2e-2)

    print("KERNEL_OK")
</pallas_src>

<mosaic_0001>
module attributes {stable_mosaic.version = 11 : i64} {
  func.func @_vit_layer_kernel(%arg0: i32, %arg1: memref<1x11x128xf32, #tpu.memory_space<vmem>>, %arg2: memref<1x128xf32, #tpu.memory_space<vmem>>, %arg3: memref<1x128xf32, #tpu.memory_space<vmem>>, %arg4: memref<128x384xbf16, #tpu.memory_space<vmem>>, %arg5: memref<1x128xf32, #tpu.memory_space<vmem>>, %arg6: memref<1x128xf32, #tpu.memory_space<vmem>>, %arg7: memref<128x256xbf16, #tpu.memory_space<vmem>>, %arg8: memref<1x256xf32, #tpu.memory_space<vmem>>, %arg9: memref<256x128xbf16, #tpu.memory_space<vmem>>, %arg10: memref<1x128xf32, #tpu.memory_space<vmem>>, %arg11: memref<1x11x128xf32, #tpu.memory_space<vmem>>, %arg12: memref<1x4x11x11xf32, #tpu.memory_space<vmem>>, %arg13: memref<11x128xf32, #tpu.memory_space<vmem>>) attributes {dimension_semantics = [#tpu.dimension_semantics<parallel>], iteration_bounds = array<i64: 2>, scalar_prefetch = 0 : i64, scratch_operands = 1 : i64, tpu.core_type = #tpu.core_type<tc>, window_params = [{transform_indices = @transform_0, window_bounds = array<i64: 1, 11, 128>}, {pipeline_mode = #tpu.pipeline_mode<synchronous>, transform_indices = @transform_1, window_bounds = array<i64: 1, 128>}, {pipeline_mode = #tpu.pipeline_mode<synchronous>, transform_indices = @transform_2, window_bounds = array<i64: 1, 128>}, {pipeline_mode = #tpu.pipeline_mode<synchronous>, transform_indices = @transform_3, window_bounds = array<i64: 128, 384>}, {pipeline_mode = #tpu.pipeline_mode<synchronous>, transform_indices = @transform_4, window_bounds = array<i64: 1, 128>}, {pipeline_mode = #tpu.pipeline_mode<synchronous>, transform_indices = @transform_5, window_bounds = array<i64: 1, 128>}, {pipeline_mode = #tpu.pipeline_mode<synchronous>, transform_indices = @transform_6, window_bounds = array<i64: 128, 256>}, {pipeline_mode = #tpu.pipeline_mode<synchronous>, transform_indices = @transform_7, window_bounds = array<i64: 1, 256>}, {pipeline_mode = #tpu.pipeline_mode<synchronous>, transform_indices = @transform_8, window_bounds = array<i64: 256, 128>}, {pipeline_mode = #tpu.pipeline_mode<synchronous>, transform_indices = @transform_9, window_bounds = array<i64: 1, 128>}, {transform_indices = @transform_10, window_bounds = array<i64: 1, 11, 128>}, {transform_indices = @transform_11, window_bounds = array<i64: 1, 4, 11, 11>}]} {
    %c0 = arith.constant 0 : index
    %c0_0 = arith.constant 0 : index
    %c0_1 = arith.constant 0 : index
    %0 = vector.load %arg1[%c0, %c0_0, %c0_1] : memref<1x11x128xf32, #tpu.memory_space<vmem>>, vector<1x11x128xf32>
    %1 = vector.shape_cast %0 : vector<1x11x128xf32> to vector<11x128xf32>
    %c0_2 = arith.constant 0 : index
    %c0_3 = arith.constant 0 : index
    %2 = vector.load %arg2[%c0_2, %c0_3] : memref<1x128xf32, #tpu.memory_space<vmem>>, vector<1x128xf32>
    %c0_4 = arith.constant 0 : index
    %c0_5 = arith.constant 0 : index
    %3 = vector.load %arg3[%c0_4, %c0_5] : memref<1x128xf32, #tpu.memory_space<vmem>>, vector<1x128xf32>
    %cst = arith.constant dense<0.000000e+00> : vector<11xf32>
    %4 = vector.multi_reduction <add>, %1, %cst [1] : vector<11x128xf32> to vector<11xf32>
    %5 = vector.shape_cast %4 : vector<11xf32> to vector<11x1xf32>
    %cst_6 = arith.constant 1.280000e+02 : f32
    %6 = vector.broadcast %cst_6 : f32 to vector<11x1xf32>
    %7 = arith.divf %5, %6 : vector<11x1xf32>
    %8 = vector.broadcast %7 : vector<11x1xf32> to vector<11x128xf32>
    %9 = arith.subf %1, %8 : vector<11x128xf32>
    %10 = arith.mulf %9, %9 : vector<11x128xf32>
    %cst_7 = arith.constant dense<0.000000e+00> : vector<11xf32>
    %11 = vector.multi_reduction <add>, %10, %cst_7 [1] : vector<11x128xf32> to vector<11xf32>
    %12 = vector.shape_cast %11 : vector<11xf32> to vector<11x1xf32>
    %cst_8 = arith.constant 1.280000e+02 : f32
    %13 = vector.broadcast %cst_8 : f32 to vector<11x1xf32>
    %14 = arith.divf %12, %13 : vector<11x1xf32>
    %15 = vector.broadcast %7 : vector<11x1xf32> to vector<11x128xf32>
    %16 = arith.subf %1, %15 : vector<11x128xf32>
    %cst_9 = arith.constant 9.99999974E-6 : f32
    %17 = vector.broadcast %cst_9 : f32 to vector<11x1xf32>
    %18 = arith.addf %14, %17 : vector<11x1xf32>
    %19 = math.rsqrt %18 : vector<11x1xf32>
    %20 = vector.broadcast %19 : vector<11x1xf32> to vector<11x128xf32>
    %21 = arith.mulf %16, %20 : vector<11x128xf32>
    %22 = vector.broadcast %2 : vector<1x128xf32> to vector<11x128xf32>
    %23 = arith.mulf %21, %22 : vector<11x128xf32>
    %24 = vector.broadcast %3 : vector<1x128xf32> to vector<11x128xf32>
    %25 = arith.addf %23, %24 : vector<11x128xf32>
    %26 = arith.truncf %25 : vector<11x128xf32> to vector<11x128xbf16>
    %c0_10 = arith.constant 0 : index
    %c0_11 = arith.constant 0 : index
    %27 = vector.load %arg4[%c0_10, %c0_11] : memref<128x384xbf16, #tpu.memory_space<vmem>>, vector<128x384xbf16>
    %cst_12 = arith.constant dense<0.000000e+00> : vector<11x384xf32>
    %28 = tpu.matmul %26, %27, %cst_12 {dimension_numbers = #tpu.dot_dimension_numbers<[1], [0], [0], [1], [0, 0, 1, 1], [], []>} : vector<11x128xbf16>, vector<128x384xbf16>, vector<11x384xf32> -> vector<11x384xf32>
    %29 = vector.extract_strided_slice %28 {offsets = [0, 0], sizes = [11, 32], strides = [1, 1]} : vector<11x384xf32> to vector<11x32xf32>
    %30 = arith.truncf %29 : vector<11x32xf32> to vector<11x32xbf16>
    %31 = vector.extract_strided_slice %28 {offsets = [0, 128], sizes = [11, 32], strides = [1, 1]} : vector<11x384xf32> to vector<11x32xf32>
    %32 = arith.truncf %31 : vector<11x32xf32> to vector<11x32xbf16>
    %33 = vector.extract_strided_slice %28 {offsets = [0, 256], sizes = [11, 32], strides = [1, 1]} : vector<11x384xf32> to vector<11x32xf32>
    %34 = arith.truncf %33 : vector<11x32xf32> to vector<11x32xbf16>
    %cst_13 = arith.constant dense<0.000000e+00> : vector<11x11xf32>
    %35 = tpu.matmul %30, %32, %cst_13 {dimension_numbers = #tpu.dot_dimension_numbers<[1], [1], [0], [0], [0, 0, 1, 0], [], []>} : vector<11x32xbf16>, vector<11x32xbf16>, vector<11x11xf32> -> vector<11x11xf32>
    %cst_14 = arith.constant 0.176776692 : f32
    %36 = vector.broadcast %cst_14 : f32 to vector<11x11xf32>
    %37 = arith.mulf %35, %36 : vector<11x11xf32>
    %cst_15 = arith.constant dense<0xFF800000> : vector<11xf32>
    %38 = vector.multi_reduction <maximumf>, %37, %cst_15 [1] : vector<11x11xf32> to vector<11xf32>
    %39 = vector.shape_cast %38 : vector<11xf32> to vector<11x1xf32>
    %40 = vector.broadcast %39 : vector<11x1xf32> to vector<11x11xf32>
    %41 = arith.subf %37, %40 : vector<11x11xf32>
    %42 = math.exp %41 : vector<11x11xf32>
    %cst_16 = arith.constant dense<0.000000e+00> : vector<11xf32>
    %43 = vector.multi_reduction <add>, %42, %cst_16 [1] : vector<11x11xf32> to vector<11xf32>
    %44 = vector.shape_cast %43 : vector<11xf32> to vector<11x1xf32>
    %45 = tpu.reciprocal %44 {approx = true} : vector<11x1xf32> -> vector<11x1xf32>
    %46 = vector.broadcast %45 : vector<11x1xf32> to vector<11x11xf32>
    %47 = arith.mulf %42, %46 : vector<11x11xf32>
    %c0_17 = arith.constant 0 : index
    %c0_18 = arith.constant 0 : index
    %c0_19 = arith.constant 0 : index
    %c0_20 = arith.constant 0 : index
    %48 = vector.load %arg12[%c0_17, %c0_18, %c0_19, %c0_20] : memref<1x4x11x11xf32, #tpu.memory_space<vmem>>, vector<1x1x11x11xf32>
    %49 = vector.shape_cast %48 : vector<1x1x11x11xf32> to vector<11x11xf32>
    %50 = vector.shape_cast %47 : vector<11x11xf32> to vector<1x1x11x11xf32>
    tpu.vector_store %arg12[%c0_17, %c0_18, %c0_19, %c0_20], %50 {strides = array<i32>} : memref<1x4x11x11xf32, #tpu.memory_space<vmem>>, vector<1x1x11x11xf32>,
    %51 = arith.truncf %47 : vector<11x11xf32> to vector<11x11xbf16>
    %cst_21 = arith.constant dense<0.000000e+00> : vector<11x32xf32>
    %52 = tpu.matmul %51, %34, %cst_21 {dimension_numbers = #tpu.dot_dimension_numbers<[1], [0], [0], [1], [0, 0, 1, 1], [], []>} : vector<11x11xbf16>, vector<11x32xbf16>, vector<11x32xf32> -> vector<11x32xf32>
    %c0_22 = arith.constant 0 : index
    %c0_23 = arith.constant 0 : index
    %53 = vector.load %arg13[%c0_22, %c0_23] : memref<11x128xf32, #tpu.memory_space<vmem>>, vector<11x32xf32>
    tpu.vector_store %arg13[%c0_22, %c0_23], %52 {strides = array<i32>} : memref<11x128xf32, #tpu.memory_space<vmem>>, vector<11x32xf32>,
    %54 = vector.extract_strided_slice %28 {offsets = [0, 32], sizes = [11, 32], strides = [1, 1]} : vector<11x384xf32> to vector<11x32xf32>
    %55 = arith.truncf %54 : vector<11x32xf32> to vector<11x32xbf16>
    %56 = vector.extract_strided_slice %28 {offsets = [0, 160], sizes = [11, 32], strides = [1, 1]} : vector<11x384xf32> to vector<11x32xf32>
    %57 = arith.truncf %56 : vector<11x32xf32> to vector<11x32xbf16>
    %58 = vector.extract_strided_slice %28 {offsets = [0, 288], sizes = [11, 32], strides = [1, 1]} : vector<11x384xf32> to vector<11x32xf32>
    %59 = arith.truncf %58 : vector<11x32xf32> to vector<11x32xbf16>
    %cst_24 = arith.constant dense<0.000000e+00> : vector<11x11xf32>
    %60 = tpu.matmul %55, %57, %cst_24 {dimension_numbers = #tpu.dot_dimension_numbers<[1], [1], [0], [0], [0, 0, 1, 0], [], []>} : vector<11x32xbf16>, vector<11x32xbf16>, vector<11x11xf32> -> vector<11x11xf32>
    %cst_25 = arith.constant 0.176776692 : f32
    %61 = vector.broadcast %cst_25 : f32 to vector<11x11xf32>
    %62 = arith.mulf %60, %61 : vector<11x11xf32>
    %cst_26 = arith.constant dense<0xFF800000> : vector<11xf32>
    %63 = vector.multi_reduction <maximumf>, %62, %cst_26 [1] : vector<11x11xf32> to vector<11xf32>
    %64 = vector.shape_cast %63 : vector<11xf32> to vector<11x1xf32>
    %65 = vector.broadcast %64 : vector<11x1xf32> to vector<11x11xf32>
    %66 = arith.subf %62, %65 : vector<11x11xf32>
    %67 = math.exp %66 : vector<11x11xf32>
    %cst_27 = arith.constant dense<0.000000e+00> : vector<11xf32>
    %68 = vector.multi_reduction <add>, %67, %cst_27 [1] : vector<11x11xf32> to vector<11xf32>
    %69 = vector.shape_cast %68 : vector<11xf32> to vector<11x1xf32>
    %70 = tpu.reciprocal %69 {approx = true} : vector<11x1xf32> -> vector<11x1xf32>
    %71 = vector.broadcast %70 : vector<11x1xf32> to vector<11x11xf32>
    %72 = arith.mulf %67, %71 : vector<11x11xf32>
    %c0_28 = arith.constant 0 : index
    %c1 = arith.constant 1 : index
    %c0_29 = arith.constant 0 : index
    %c0_30 = arith.constant 0 : index
    %73 = vector.load %arg12[%c0_28, %c1, %c0_29, %c0_30] : memref<1x4x11x11xf32, #tpu.memory_space<vmem>>, vector<1x1x11x11xf32>
    %74 = vector.shape_cast %73 : vector<1x1x11x11xf32> to vector<11x11xf32>
    %75 = vector.shape_cast %72 : vector<11x11xf32> to vector<1x1x11x11xf32>
    tpu.vector_store %arg12[%c0_28, %c1, %c0_29, %c0_30], %75 {strides = array<i32>} : memref<1x4x11x11xf32, #tpu.memory_space<vmem>>, vector<1x1x11x11xf32>,
    %76 = arith.truncf %72 : vector<11x11xf32> to vector<11x11xbf16>
    %cst_31 = arith.constant dense<0.000000e+00> : vector<11x32xf32>
    %77 = tpu.matmul %76, %59, %cst_31 {dimension_numbers = #tpu.dot_dimension_numbers<[1], [0], [0], [1], [0, 0, 1, 1], [], []>} : vector<11x11xbf16>, vector<11x32xbf16>, vector<11x32xf32> -> vector<11x32xf32>
    %c0_32 = arith.constant 0 : index
    %c32 = arith.constant 32 : index
    %78 = vector.load %arg13[%c0_32, %c32] : memref<11x128xf32, #tpu.memory_space<vmem>>, vector<11x32xf32>
    tpu.vector_store %arg13[%c0_32, %c32], %77 {strides = array<i32>} : memref<11x128xf32, #tpu.memory_space<vmem>>, vector<11x32xf32>,
    %79 = vector.extract_strided_slice %28 {offsets = [0, 64], sizes = [11, 32], strides = [1, 1]} : vector<11x384xf32> to vector<11x32xf32>
    %80 = arith.truncf %79 : vector<11x32xf32> to vector<11x32xbf16>
    %81 = vector.extract_strided_slice %28 {offsets = [0, 192], sizes = [11, 32], strides = [1, 1]} : vector<11x384xf32> to vector<11x32xf32>
    %82 = arith.truncf %81 : vector<11x32xf32> to vector<11x32xbf16>
    %83 = vector.extract_strided_slice %28 {offsets = [0, 320], sizes = [11, 32], strides = [1, 1]} : vector<11x384xf32> to vector<11x32xf32>
    %84 = arith.truncf %83 : vector<11x32xf32> to vector<11x32xbf16>
    %cst_33 = arith.constant dense<0.000000e+00> : vector<11x11xf32>
    %85 = tpu.matmul %80, %82, %cst_33 {dimension_numbers = #tpu.dot_dimension_numbers<[1], [1], [0], [0], [0, 0, 1, 0], [], []>} : vector<11x32xbf16>, vector<11x32xbf16>, vector<11x11xf32> -> vector<11x11xf32>
    %cst_34 = arith.constant 0.176776692 : f32
    %86 = vector.broadcast %cst_34 : f32 to vector<11x11xf32>
    %87 = arith.mulf %85, %86 : vector<11x11xf32>
    %cst_35 = arith.constant dense<0xFF800000> : vector<11xf32>
    %88 = vector.multi_reduction <maximumf>, %87, %cst_35 [1] : vector<11x11xf32> to vector<11xf32>
    %89 = vector.shape_cast %88 : vector<11xf32> to vector<11x1xf32>
    %90 = vector.broadcast %89 : vector<11x1xf32> to vector<11x11xf32>
    %91 = arith.subf %87, %90 : vector<11x11xf32>
    %92 = math.exp %91 : vector<11x11xf32>
    %cst_36 = arith.constant dense<0.000000e+00> : vector<11xf32>
    %93 = vector.multi_reduction <add>, %92, %cst_36 [1] : vector<11x11xf32> to vector<11xf32>
    %94 = vector.shape_cast %93 : vector<11xf32> to vector<11x1xf32>
    %95 = tpu.reciprocal %94 {approx = true} : vector<11x1xf32> -> vector<11x1xf32>
    %96 = vector.broadcast %95 : vector<11x1xf32> to vector<11x11xf32>
    %97 = arith.mulf %92, %96 : vector<11x11xf32>
    %c0_37 = arith.constant 0 : index
    %c2 = arith.constant 2 : index
    %c0_38 = arith.constant 0 : index
    %c0_39 = arith.constant 0 : index
    %98 = vector.load %arg12[%c0_37, %c2, %c0_38, %c0_39] : memref<1x4x11x11xf32, #tpu.memory_space<vmem>>, vector<1x1x11x11xf32>
    %99 = vector.shape_cast %98 : vector<1x1x11x11xf32> to vector<11x11xf32>
    %100 = vector.shape_cast %97 : vector<11x11xf32> to vector<1x1x11x11xf32>
    tpu.vector_store %arg12[%c0_37, %c2, %c0_38, %c0_39], %100 {strides = array<i32>} : memref<1x4x11x11xf32, #tpu.memory_space<vmem>>, vector<1x1x11x11xf32>,
    %101 = arith.truncf %97 : vector<11x11xf32> to vector<11x11xbf16>
    %cst_40 = arith.constant dense<0.000000e+00> : vector<11x32xf32>
    %102 = tpu.matmul %101, %84, %cst_40 {dimension_numbers = #tpu.dot_dimension_numbers<[1], [0], [0], [1], [0, 0, 1, 1], [], []>} : vector<11x11xbf16>, vector<11x32xbf16>, vector<11x32xf32> -> vector<11x32xf32>
    %c0_41 = arith.constant 0 : index
    %c64 = arith.constant 64 : index
    %103 = vector.load %arg13[%c0_41, %c64] : memref<11x128xf32, #tpu.memory_space<vmem>>, vector<11x32xf32>
    tpu.vector_store %arg13[%c0_41, %c64], %102 {strides = array<i32>} : memref<11x128xf32, #tpu.memory_space<vmem>>, vector<11x32xf32>,
    %104 = vector.extract_strided_slice %28 {offsets = [0, 96], sizes = [11, 32], strides = [1, 1]} : vector<11x384xf32> to vector<11x32xf32>
    %105 = arith.truncf %104 : vector<11x32xf32> to vector<11x32xbf16>
    %106 = vector.extract_strided_slice %28 {offsets = [0, 224], sizes = [11, 32], strides = [1, 1]} : vector<11x384xf32> to vector<11x32xf32>
    %107 = arith.truncf %106 : vector<11x32xf32> to vector<11x32xbf16>
    %108 = vector.extract_strided_slice %28 {offsets = [0, 352], sizes = [11, 32], strides = [1, 1]} : vector<11x384xf32> to vector<11x32xf32>
    %109 = arith.truncf %108 : vector<11x32xf32> to vector<11x32xbf16>
    %cst_42 = arith.constant dense<0.000000e+00> : vector<11x11xf32>
    %110 = tpu.matmul %105, %107, %cst_42 {dimension_numbers = #tpu.dot_dimension_numbers<[1], [1], [0], [0], [0, 0, 1, 0], [], []>} : vector<11x32xbf16>, vector<11x32xbf16>, vector<11x11xf32> -> vector<11x11xf32>
    %cst_43 = arith.constant 0.176776692 : f32
    %111 = vector.broadcast %cst_43 : f32 to vector<11x11xf32>
    %112 = arith.mulf %110, %111 : vector<11x11xf32>
    %cst_44 = arith.constant dense<0xFF800000> : vector<11xf32>
    %113 = vector.multi_reduction <maximumf>, %112, %cst_44 [1] : vector<11x11xf32> to vector<11xf32>
    %114 = vector.shape_cast %113 : vector<11xf32> to vector<11x1xf32>
    %115 = vector.broadcast %114 : vector<11x1xf32> to vector<11x11xf32>
    %116 = arith.subf %112, %115 : vector<11x11xf32>
    %117 = math.exp %116 : vector<11x11xf32>
    %cst_45 = arith.constant dense<0.000000e+00> : vector<11xf32>
    %118 = vector.multi_reduction <add>, %117, %cst_45 [1] : vector<11x11xf32> to vector<11xf32>
    %119 = vector.shape_cast %118 : vector<11xf32> to vector<11x1xf32>
    %120 = tpu.reciprocal %119 {approx = true} : vector<11x1xf32> -> vector<11x1xf32>
    %121 = vector.broadcast %120 : vector<11x1xf32> to vector<11x11xf32>
    %122 = arith.mulf %117, %121 : vector<11x11xf32>
    %c0_46 = arith.constant 0 : index
    %c3 = arith.constant 3 : index
    %c0_47 = arith.constant 0 : index
    %c0_48 = arith.constant 0 : index
    %123 = vector.load %arg12[%c0_46, %c3, %c0_47, %c0_48] : memref<1x4x11x11xf32, #tpu.memory_space<vmem>>, vector<1x1x11x11xf32>
    %124 = vector.shape_cast %123 : vector<1x1x11x11xf32> to vector<11x11xf32>
    %125 = vector.shape_cast %122 : vector<11x11xf32> to vector<1x1x11x11xf32>
    tpu.vector_store %arg12[%c0_46, %c3, %c0_47, %c0_48], %125 {strides = array<i32>} : memref<1x4x11x11xf32, #tpu.memory_space<vmem>>, vector<1x1x11x11xf32>,
    %126 = arith.truncf %122 : vector<11x11xf32> to vector<11x11xbf16>
    %cst_49 = arith.constant dense<0.000000e+00> : vector<11x32xf32>
    %127 = tpu.matmul %126, %109, %cst_49 {dimension_numbers = #tpu.dot_dimension_numbers<[1], [0], [0], [1], [0, 0, 1, 1], [], []>} : vector<11x11xbf16>, vector<11x32xbf16>, vector<11x32xf32> -> vector<11x32xf32>
    %c0_50 = arith.constant 0 : index
    %c96 = arith.constant 96 : index
    %128 = vector.load %arg13[%c0_50, %c96] : memref<11x128xf32, #tpu.memory_space<vmem>>, vector<11x32xf32>
    tpu.vector_store %arg13[%c0_50, %c96], %127 {strides = array<i32>} : memref<11x128xf32, #tpu.memory_space<vmem>>, vector<11x32xf32>,
    %c0_51 = arith.constant 0 : index
    %c0_52 = arith.constant 0 : index
    %129 = vector.load %arg13[%c0_51, %c0_52] : memref<11x128xf32, #tpu.memory_space<vmem>>, vector<11x128xf32>
    %130 = arith.addf %129, %1 : vector<11x128xf32>
    %c0_53 = arith.constant 0 : index
    %c0_54 = arith.constant 0 : index
    %131 = vector.load %arg5[%c0_53, %c0_54] : memref<1x128xf32, #tpu.memory_space<vmem>>, vector<1x128xf32>
    %c0_55 = arith.constant 0 : index
    %c0_56 = arith.constant 0 : index
    %132 = vector.load %arg6[%c0_55, %c0_56] : memref<1x128xf32, #tpu.memory_space<vmem>>, vector<1x128xf32>
    %cst_57 = arith.constant dense<0.000000e+00> : vector<11xf32>
    %133 = vector.multi_reduction <add>, %130, %cst_57 [1] : vector<11x128xf32> to vector<11xf32>
    %134 = vector.shape_cast %133 : vector<11xf32> to vector<11x1xf32>
    %cst_58 = arith.constant 1.280000e+02 : f32
    %135 = vector.broadcast %cst_58 : f32 to vector<11x1xf32>
    %136 = arith.divf %134, %135 : vector<11x1xf32>
    %137 = vector.broadcast %136 : vector<11x1xf32> to vector<11x128xf32>
    %138 = arith.subf %130, %137 : vector<11x128xf32>
    %139 = arith.mulf %138, %138 : vector<11x128xf32>
    %cst_59 = arith.constant dense<0.000000e+00> : vector<11xf32>
    %140 = vector.multi_reduction <add>, %139, %cst_59 [1] : vector<11x128xf32> to vector<11xf32>
    %141 = vector.shape_cast %140 : vector<11xf32> to vector<11x1xf32>
    %cst_60 = arith.constant 1.280000e+02 : f32
    %142 = vector.broadcast %cst_60 : f32 to vector<11x1xf32>
    %143 = arith.divf %141, %142 : vector<11x1xf32>
    %144 = vector.broadcast %136 : vector<11x1xf32> to vector<11x128xf32>
    %145 = arith.subf %130, %144 : vector<11x128xf32>
    %cst_61 = arith.constant 9.99999974E-6 : f32
    %146 = vector.broadcast %cst_61 : f32 to vector<11x1xf32>
    %147 = arith.addf %143, %146 : vector<11x1xf32>
    %148 = math.rsqrt %147 : vector<11x1xf32>
    %149 = vector.broadcast %148 : vector<11x1xf32> to vector<11x128xf32>
    %150 = arith.mulf %145, %149 : vector<11x128xf32>
    %151 = vector.broadcast %131 : vector<1x128xf32> to vector<11x128xf32>
    %152 = arith.mulf %150, %151 : vector<11x128xf32>
    %153 = vector.broadcast %132 : vector<1x128xf32> to vector<11x128xf32>
    %154 = arith.addf %152, %153 : vector<11x128xf32>
    %155 = arith.truncf %154 : vector<11x128xf32> to vector<11x128xbf16>
    %c0_62 = arith.constant 0 : index
    %c0_63 = arith.constant 0 : index
    %156 = vector.load %arg7[%c0_62, %c0_63] : memref<128x256xbf16, #tpu.memory_space<vmem>>, vector<128x256xbf16>
    %cst_64 = arith.constant dense<0.000000e+00> : vector<11x256xf32>
    %157 = tpu.matmul %155, %156, %cst_64 {dimension_numbers = #tpu.dot_dimension_numbers<[1], [0], [0], [1], [0, 0, 1, 1], [], []>} : vector<11x128xbf16>, vector<128x256xbf16>, vector<11x256xf32> -> vector<11x256xf32>
    %c0_65 = arith.constant 0 : index
    %c0_66 = arith.constant 0 : index
    %158 = vector.load %arg8[%c0_65, %c0_66] : memref<1x256xf32, #tpu.memory_space<vmem>>, vector<1x256xf32>
    %159 = vector.broadcast %158 : vector<1x256xf32> to vector<11x256xf32>
    %160 = arith.addf %157, %159 : vector<11x256xf32>
    %161 = arith.mulf %160, %160 : vector<11x256xf32>
    %162 = arith.mulf %160, %161 : vector<11x256xf32>
    %cst_67 = arith.constant 4.471500e-02 : f32
    %163 = vector.broadcast %cst_67 : f32 to vector<11x256xf32>
    %164 = arith.mulf %163, %162 : vector<11x256xf32>
    %165 = arith.addf %160, %164 : vector<11x256xf32>
    %cst_68 = arith.constant 0.797884583 : f32
    %166 = vector.broadcast %cst_68 : f32 to vector<11x256xf32>
    %167 = arith.mulf %166, %165 : vector<11x256xf32>
    %168 = math.tanh %167 : vector<11x256xf32>
    %cst_69 = arith.constant 1.000000e+00 : f32
    %169 = vector.broadcast %cst_69 : f32 to vector<11x256xf32>
    %170 = arith.addf %169, %168 : vector<11x256xf32>
    %cst_70 = arith.constant 5.000000e-01 : f32
    %171 = vector.broadcast %cst_70 : f32 to vector<11x256xf32>
    %172 = arith.mulf %171, %170 : vector<11x256xf32>
    %173 = arith.mulf %160, %172 : vector<11x256xf32>
    %174 = arith.truncf %173 : vector<11x256xf32> to vector<11x256xbf16>
    %c0_71 = arith.constant 0 : index
    %c0_72 = arith.constant 0 : index
    %175 = vector.load %arg9[%c0_71, %c0_72] : memref<256x128xbf16, #tpu.memory_space<vmem>>, vector<256x128xbf16>
    %cst_73 = arith.constant dense<0.000000e+00> : vector<11x128xf32>
    %176 = tpu.matmul %174, %175, %cst_73 {dimension_numbers = #tpu.dot_dimension_numbers<[1], [0], [0], [1], [0, 0, 1, 1], [], []>} : vector<11x256xbf16>, vector<256x128xbf16>, vector<11x128xf32> -> vector<11x128xf32>
    %c0_74 = arith.constant 0 : index
    %c0_75 = arith.constant 0 : index
    %177 = vector.load %arg10[%c0_74, %c0_75] : memref<1x128xf32, #tpu.memory_space<vmem>>, vector<1x128xf32>
    %178 = vector.broadcast %177 : vector<1x128xf32> to vector<11x128xf32>
    %179 = arith.addf %176, %178 : vector<11x128xf32>
    %180 = arith.addf %179, %130 : vector<11x128xf32>
    %c0_76 = arith.constant 0 : index
    %c0_77 = arith.constant 0 : index
    %c0_78 = arith.constant 0 : index
    %181 = vector.load %arg11[%c0_76, %c0_77, %c0_78] : memref<1x11x128xf32, #tpu.memory_space<vmem>>, vector<1x11x128xf32>
    %182 = vector.shape_cast %181 : vector<1x11x128xf32> to vector<11x128xf32>
    %183 = vector.shape_cast %180 : vector<11x128xf32> to vector<1x11x128xf32>
    tpu.vector_store %arg11[%c0_76, %c0_77, %c0_78], %183 {strides = array<i32>} : memref<1x11x128xf32, #tpu.memory_space<vmem>>, vector<1x11x128xf32>,
    return
  }
  func.func @transform_0(%arg0: i32) -> (i32, i32, i32) {
    %c0_i32 = arith.constant 0 : i32
    %c0_i32_0 = arith.constant 0 : i32
    %c0_i32_1 = arith.constant 0 : i32
    return %arg0, %c0_i32, %c0_i32_0 : i32, i32, i32
  }
  func.func @transform_1(%arg0: i32) -> (i32, i32) {
    %c0_i32 = arith.constant 0 : i32
    %c0_i32_0 = arith.constant 0 : i32
    %c0_i32_1 = arith.constant 0 : i32
    return %c0_i32, %c0_i32_0 : i32, i32
  }
  func.func @transform_2(%arg0: i32) -> (i32, i32) {
    %c0_i32 = arith.constant 0 : i32
    %c0_i32_0 = arith.constant 0 : i32
    %c0_i32_1 = arith.constant 0 : i32
    return %c0_i32, %c0_i32_0 : i32, i32
  }
  func.func @transform_3(%arg0: i32) -> (i32, i32) {
    %c0_i32 = arith.constant 0 : i32
    %c0_i32_0 = arith.constant 0 : i32
    %c0_i32_1 = arith.constant 0 : i32
    return %c0_i32, %c0_i32_0 : i32, i32
  }
  func.func @transform_4(%arg0: i32) -> (i32, i32) {
    %c0_i32 = arith.constant 0 : i32
    %c0_i32_0 = arith.constant 0 : i32
    %c0_i32_1 = arith.constant 0 : i32
    return %c0_i32, %c0_i32_0 : i32, i32
  }
  func.func @transform_5(%arg0: i32) -> (i32, i32) {
    %c0_i32 = arith.constant 0 : i32
    %c0_i32_0 = arith.constant 0 : i32
    %c0_i32_1 = arith.constant 0 : i32
    return %c0_i32, %c0_i32_0 : i32, i32
  }
  func.func @transform_6(%arg0: i32) -> (i32, i32) {
    %c0_i32 = arith.constant 0 : i32
    %c0_i32_0 = arith.constant 0 : i32
    %c0_i32_1 = arith.constant 0 : i32
    return %c0_i32, %c0_i32_0 : i32, i32
  }
  func.func @transform_7(%arg0: i32) -> (i32, i32) {
    %c0_i32 = arith.constant 0 : i32
    %c0_i32_0 = arith.constant 0 : i32
    %c0_i32_1 = arith.constant 0 : i32
    return %c0_i32, %c0_i32_0 : i32, i32
  }
  func.func @transform_8(%arg0: i32) -> (i32, i32) {
    %c0_i32 = arith.constant 0 : i32
    %c0_i32_0 = arith.constant 0 : i32
    %c0_i32_1 = arith.constant 0 : i32
    return %c0_i32, %c0_i32_0 : i32, i32
  }
  func.func @transform_9(%arg0: i32) -> (i32, i32) {
    %c0_i32 = arith.constant 0 : i32
    %c0_i32_0 = arith.constant 0 : i32
    %c0_i32_1 = arith.constant 0 : i32
    return %c0_i32, %c0_i32_0 : i32, i32
  }
  func.func @transform_10(%arg0: i32) -> (i32, i32, i32) {
    %c0_i32 = arith.constant 0 : i32
    %c0_i32_0 = arith.constant 0 : i32
    %c0_i32_1 = arith.constant 0 : i32
    return %arg0, %c0_i32, %c0_i32_0 : i32, i32, i32
  }
  func.func @transform_11(%arg0: i32) -> (i32, i32, i32, i32) {
    %c0_i32 = arith.constant 0 : i32
    %c0_i32_0 = arith.constant 0 : i32
    %c0_i32_1 = arith.constant 0 : i32
    %c0_i32_2 = arith.constant 0 : i32
    return %arg0, %c0_i32, %c0_i32_0, %c0_i32_1 : i32, i32, i32, i32
  }
}

module attributes {stable_mosaic.version = 11 : i64} {
  func.func @_embed_kernel(%arg0: i32, %arg1: memref<1x8x48xf32, #tpu.memory_space<vmem>>, %arg2: memref<1x2x16xf32, #tpu.memory_space<vmem>>, %arg3: memref<48x128xbf16, #tpu.memory_space<vmem>>, %arg4: memref<16x128xbf16, #tpu.memory_space<vmem>>, %arg5: memref<9x128xf32, #tpu.memory_space<vmem>>, %arg6: memref<1x11x128xf32, #tpu.memory_space<vmem>>) attributes {dimension_semantics = [#tpu.dimension_semantics<parallel>], iteration_bounds = array<i64: 2>, scalar_prefetch = 0 : i64, scratch_operands = 0 : i64, tpu.core_type = #tpu.core_type<tc>, window_params = [{transform_indices = @transform_0, window_bounds = array<i64: 1, 8, 48>}, {transform_indices = @transform_1, window_bounds = array<i64: 1, 2, 16>}, {pipeline_mode = #tpu.pipeline_mode<synchronous>, transform_indices = @transform_2, window_bounds = array<i64: 48, 128>}, {pipeline_mode = #tpu.pipeline_mode<synchronous>, transform_indices = @transform_3, window_bounds = array<i64: 16, 128>}, {pipeline_mode = #tpu.pipeline_mode<synchronous>, transform_indices = @transform_4, window_bounds = array<i64: 9, 128>}, {transform_indices = @transform_5, window_bounds = array<i64: 1, 11, 128>}]} {
    %c0 = arith.constant 0 : index
    %c0_0 = arith.constant 0 : index
    %c0_1 = arith.constant 0 : index
    %0 = vector.load %arg1[%c0, %c0_0, %c0_1] : memref<1x8x48xf32, #tpu.memory_space<vmem>>, vector<1x8x48xf32>
    %1 = vector.shape_cast %0 : vector<1x8x48xf32> to vector<8x48xf32>
    %2 = arith.truncf %1 : vector<8x48xf32> to vector<8x48xbf16>
    %c0_2 = arith.constant 0 : index
    %c0_3 = arith.constant 0 : index
    %3 = vector.load %arg3[%c0_2, %c0_3] : memref<48x128xbf16, #tpu.memory_space<vmem>>, vector<48x128xbf16>
    %cst = arith.constant dense<0.000000e+00> : vector<8x128xf32>
    %4 = tpu.matmul %2, %3, %cst {dimension_numbers = #tpu.dot_dimension_numbers<[1], [0], [0], [1], [0, 0, 1, 1], [], []>} : vector<8x48xbf16>, vector<48x128xbf16>, vector<8x128xf32> -> vector<8x128xf32>
    %c0_4 = arith.constant 0 : index
    %c0_5 = arith.constant 0 : index
    %c0_6 = arith.constant 0 : index
    %5 = vector.load %arg2[%c0_4, %c0_5, %c0_6] : memref<1x2x16xf32, #tpu.memory_space<vmem>>, vector<1x2x16xf32>
    %6 = vector.shape_cast %5 : vector<1x2x16xf32> to vector<2x16xf32>
    %7 = arith.truncf %6 : vector<2x16xf32> to vector<2x16xbf16>
    %c0_7 = arith.constant 0 : index
    %c0_8 = arith.constant 0 : index
    %8 = vector.load %arg4[%c0_7, %c0_8] : memref<16x128xbf16, #tpu.memory_space<vmem>>, vector<16x128xbf16>
    %cst_9 = arith.constant dense<0.000000e+00> : vector<2x128xf32>
    %9 = tpu.matmul %7, %8, %cst_9 {dimension_numbers = #tpu.dot_dimension_numbers<[1], [0], [0], [1], [0, 0, 1, 1], [], []>} : vector<2x16xbf16>, vector<16x128xbf16>, vector<2x128xf32> -> vector<2x128xf32>
    %c0_10 = arith.constant 0 : index
    %c0_11 = arith.constant 0 : index
    %10 = vector.load %arg5[%c0_10, %c0_11] : memref<9x128xf32, #tpu.memory_space<vmem>>, vector<9x128xf32>
    %11 = vector.extract_strided_slice %10 {offsets = [0, 0], sizes = [1, 128], strides = [1, 1]} : vector<9x128xf32> to vector<1x128xf32>
    %c0_12 = arith.constant 0 : index
    %c0_13 = arith.constant 0 : index
    %c0_14 = arith.constant 0 : index
    %12 = vector.load %arg6[%c0_12, %c0_13, %c0_14] : memref<1x11x128xf32, #tpu.memory_space<vmem>>, vector<1x1x128xf32>
    %13 = vector.shape_cast %12 : vector<1x1x128xf32> to vector<1x128xf32>
    %14 = vector.shape_cast %11 : vector<1x128xf32> to vector<1x1x128xf32>
    tpu.vector_store %arg6[%c0_12, %c0_13, %c0_14], %14 {strides = array<i32>} : memref<1x11x128xf32, #tpu.memory_space<vmem>>, vector<1x1x128xf32>,
    %15 = vector.extract_strided_slice %10 {offsets = [1, 0], sizes = [8, 128], strides = [1, 1]} : vector<9x128xf32> to vector<8x128xf32>
    %16 = arith.addf %4, %15 : vector<8x128xf32>
    %c0_15 = arith.constant 0 : index
    %c1 = arith.constant 1 : index
    %c0_16 = arith.constant 0 : index
    %17 = vector.load %arg6[%c0_15, %c1, %c0_16] : memref<1x11x128xf32, #tpu.memory_space<vmem>>, vector<1x8x128xf32>
    %18 = vector.shape_cast %17 : vector<1x8x128xf32> to vector<8x128xf32>
    %19 = vector.shape_cast %16 : vector<8x128xf32> to vector<1x8x128xf32>
    tpu.vector_store %arg6[%c0_15, %c1, %c0_16], %19 {strides = array<i32>} : memref<1x11x128xf32, #tpu.memory_space<vmem>>, vector<1x8x128xf32>,
    %c0_17 = arith.constant 0 : index
    %c9 = arith.constant 9 : index
    %c0_18 = arith.constant 0 : index
    %20 = vector.load %arg6[%c0_17, %c9, %c0_18] : memref<1x11x128xf32, #tpu.memory_space<vmem>>, vector<1x2x128xf32>
    %21 = vector.shape_cast %20 : vector<1x2x128xf32> to vector<2x128xf32>
    %22 = vector.shape_cast %9 : vector<2x128xf32> to vector<1x2x128xf32>
    tpu.vector_store %arg6[%c0_17, %c9, %c0_18], %22 {strides = array<i32>} : memref<1x11x128xf32, #tpu.memory_space<vmem>>, vector<1x2x128xf32>,
    return
  }
  func.func @transform_0(%arg0: i32) -> (i32, i32, i32) {
    %c0_i32 = arith.constant 0 : i32
    %c0_i32_0 = arith.constant 0 : i32
    %c0_i32_1 = arith.constant 0 : i32
    return %arg0, %c0_i32, %c0_i32_0 : i32, i32, i32
  }
  func.func @transform_1(%arg0: i32) -> (i32, i32, i32) {
    %c0_i32 = arith.constant 0 : i32
    %c0_i32_0 = arith.constant 0 : i32
    %c0_i32_1 = arith.constant 0 : i32
    return %arg0, %c0_i32, %c0_i32_0 : i32, i32, i32
  }
  func.func @transform_2(%arg0: i32) -> (i32, i32) {
    %c0_i32 = arith.constant 0 : i32
    %c0_i32_0 = arith.constant 0 : i32
    %c0_i32_1 = arith.constant 0 : i32
    return %c0_i32, %c0_i32_0 : i32, i32
  }
  func.func @transform_3(%arg0: i32) -> (i32, i32) {
    %c0_i32 = arith.constant 0 : i32
    %c0_i32_0 = arith.constant 0 : i32
    %c0_i32_1 = arith.constant 0 : i32
    return %c0_i32, %c0_i32_0 : i32, i32
  }
  func.func @transform_4(%arg0: i32) -> (i32, i32) {
    %c0_i32 = arith.constant 0 : i32
    %c0_i32_0 = arith.constant 0 : i32
    %c0_i32_1 = arith.constant 0 : i32
    return %c0_i32, %c0_i32_0 : i32, i32
  }
  func.func @transform_5(%arg0: i32) -> (i32, i32, i32) {
    %c0_i32 = arith.constant 0 : i32
    %c0_i32_0 = arith.constant 0 : i32
    %c0_i32_1 = arith.constant 0 : i32
    return %arg0, %c0_i32, %c0_i32_0 : i32, i32, i32
  }
}

module attributes {stable_mosaic.version = 11 : i64} {
  func.func @_vit_layer_kernel(%arg0: i32, %arg1: memref<1x11x128xf32, #tpu.memory_space<vmem>>, %arg2: memref<1x128xf32, #tpu.memory_space<vmem>>, %arg3: memref<1x128xf32, #tpu.memory_space<vmem>>, %arg4: memref<128x384xbf16, #tpu.memory_space<vmem>>, %arg5: memref<1x128xf32, #tpu.memory_space<vmem>>, %arg6: memref<1x128xf32, #tpu.memory_space<vmem>>, %arg7: memref<128x256xbf16, #tpu.memory_space<vmem>>, %arg8: memref<1x256xf32, #tpu.memory_space<vmem>>, %arg9: memref<256x128xbf16, #tpu.memory_space<vmem>>, %arg10: memref<1x128xf32, #tpu.memory_space<vmem>>, %arg11: memref<1x11x128xf32, #tpu.memory_space<vmem>>, %arg12: memref<1x4x11x11xf32, #tpu.memory_space<vmem>>, %arg13: memref<11x128xf32, #tpu.memory_space<vmem>>) attributes {dimension_semantics = [#tpu.dimension_semantics<parallel>], iteration_bounds = array<i64: 2>, scalar_prefetch = 0 : i64, scratch_operands = 1 : i64, tpu.core_type = #tpu.core_type<tc>, window_params = [{transform_indices = @transform_0, window_bounds = array<i64: 1, 11, 128>}, {pipeline_mode = #tpu.pipeline_mode<synchronous>, transform_indices = @transform_1, window_bounds = array<i64: 1, 128>}, {pipeline_mode = #tpu.pipeline_mode<synchronous>, transform_indices = @transform_2, window_bounds = array<i64: 1, 128>}, {pipeline_mode = #tpu.pipeline_mode<synchronous>, transform_indices = @transform_3, window_bounds = array<i64: 128, 384>}, {pipeline_mode = #tpu.pipeline_mode<synchronous>, transform_indices = @transform_4, window_bounds = array<i64: 1, 128>}, {pipeline_mode = #tpu.pipeline_mode<synchronous>, transform_indices = @transform_5, window_bounds = array<i64: 1, 128>}, {pipeline_mode = #tpu.pipeline_mode<synchronous>, transform_indices = @transform_6, window_bounds = array<i64: 128, 256>}, {pipeline_mode = #tpu.pipeline_mode<synchronous>, transform_indices = @transform_7, window_bounds = array<i64: 1, 256>}, {pipeline_mode = #tpu.pipeline_mode<synchronous>, transform_indices = @transform_8, window_bounds = array<i64: 256, 128>}, {pipeline_mode = #tpu.pipeline_mode<synchronous>, transform_indices = @transform_9, window_bounds = array<i64: 1, 128>}, {transform_indices = @transform_10, window_bounds = array<i64: 1, 11, 128>}, {transform_indices = @transform_11, window_bounds = array<i64: 1, 4, 11, 11>}]} {
    %c0 = arith.constant 0 : index
    %c0_0 = arith.constant 0 : index
    %c0_1 = arith.constant 0 : index
    %0 = vector.load %arg1[%c0, %c0_0, %c0_1] : memref<1x11x128xf32, #tpu.memory_space<vmem>>, vector<1x11x128xf32>
    %1 = vector.shape_cast %0 : vector<1x11x128xf32> to vector<11x128xf32>
    %c0_2 = arith.constant 0 : index
    %c0_3 = arith.constant 0 : index
    %2 = vector.load %arg2[%c0_2, %c0_3] : memref<1x128xf32, #tpu.memory_space<vmem>>, vector<1x128xf32>
    %c0_4 = arith.constant 0 : index
    %c0_5 = arith.constant 0 : index
    %3 = vector.load %arg3[%c0_4, %c0_5] : memref<1x128xf32, #tpu.memory_space<vmem>>, vector<1x128xf32>
    %cst = arith.constant dense<0.000000e+00> : vector<11xf32>
    %4 = vector.multi_reduction <add>, %1, %cst [1] : vector<11x128xf32> to vector<11xf32>
    %5 = vector.shape_cast %4 : vector<11xf32> to vector<11x1xf32>
    %cst_6 = arith.constant 1.280000e+02 : f32
    %6 = vector.broadcast %cst_6 : f32 to vector<11x1xf32>
    %7 = arith.divf %5, %6 : vector<11x1xf32>
    %8 = vector.broadcast %7 : vector<11x1xf32> to vector<11x128xf32>
    %9 = arith.subf %1, %8 : vector<11x128xf32>
    %10 = arith.mulf %9, %9 : vector<11x128xf32>
    %cst_7 = arith.constant dense<0.000000e+00> : vector<11xf32>
    %11 = vector.multi_reduction <add>, %10, %cst_7 [1] : vector<11x128xf32> to vector<11xf32>
    %12 = vector.shape_cast %11 : vector<11xf32> to vector<11x1xf32>
    %cst_8 = arith.constant 1.280000e+02 : f32
    %13 = vector.broadcast %cst_8 : f32 to vector<11x1xf32>
    %14 = arith.divf %12, %13 : vector<11x1xf32>
    %15 = vector.broadcast %7 : vector<11x1xf32> to vector<11x128xf32>
    %16 = arith.subf %1, %15 : vector<11x128xf32>
    %cst_9 = arith.constant 9.99999974E-6 : f32
    %17 = vector.broadcast %cst_9 : f32 to vector<11x1xf32>
    %18 = arith.addf %14, %17 : vector<11x1xf32>
    %19 = math.rsqrt %18 : vector<11x1xf32>
    %20 = vector.broadcast %19 : vector<11x1xf32> to vector<11x128xf32>
    %21 = arith.mulf %16, %20 : vector<11x128xf32>
    %22 = vector.broadcast %2 : vector<1x128xf32> to vector<11x128xf32>
    %23 = arith.mulf %21, %22 : vector<11x128xf32>
    %24 = vector.broadcast %3 : vector<1x128xf32> to vector<11x128xf32>
    %25 = arith.addf %23, %24 : vector<11x128xf32>
    %26 = arith.truncf %25 : vector<11x128xf32> to vector<11x128xbf16>
    %c0_10 = arith.constant 0 : index
    %c0_11 = arith.constant 0 : index
    %27 = vector.load %arg4[%c0_10, %c0_11] : memref<128x384xbf16, #tpu.memory_space<vmem>>, vector<128x384xbf16>
    %cst_12 = arith.constant dense<0.000000e+00> : vector<11x384xf32>
    %28 = tpu.matmul %26, %27, %cst_12 {dimension_numbers = #tpu.dot_dimension_numbers<[1], [0], [0], [1], [0, 0, 1, 1], [], []>} : vector<11x128xbf16>, vector<128x384xbf16>, vector<11x384xf32> -> vector<11x384xf32>
    %29 = vector.extract_strided_slice %28 {offsets = [0, 0], sizes = [11, 32], strides = [1, 1]} : vector<11x384xf32> to vector<11x32xf32>
    %30 = arith.truncf %29 : vector<11x32xf32> to vector<11x32xbf16>
    %31 = vector.extract_strided_slice %28 {offsets = [0, 128], sizes = [11, 32], strides = [1, 1]} : vector<11x384xf32> to vector<11x32xf32>
    %32 = arith.truncf %31 : vector<11x32xf32> to vector<11x32xbf16>
    %33 = vector.extract_strided_slice %28 {offsets = [0, 256], sizes = [11, 32], strides = [1, 1]} : vector<11x384xf32> to vector<11x32xf32>
    %34 = arith.truncf %33 : vector<11x32xf32> to vector<11x32xbf16>
    %cst_13 = arith.constant dense<0.000000e+00> : vector<11x11xf32>
    %35 = tpu.matmul %30, %32, %cst_13 {dimension_numbers = #tpu.dot_dimension_numbers<[1], [1], [0], [0], [0, 0, 1, 0], [], []>} : vector<11x32xbf16>, vector<11x32xbf16>, vector<11x11xf32> -> vector<11x11xf32>
    %cst_14 = arith.constant 0.176776692 : f32
    %36 = vector.broadcast %cst_14 : f32 to vector<11x11xf32>
    %37 = arith.mulf %35, %36 : vector<11x11xf32>
    %cst_15 = arith.constant dense<0xFF800000> : vector<11xf32>
    %38 = vector.multi_reduction <maximumf>, %37, %cst_15 [1] : vector<11x11xf32> to vector<11xf32>
    %39 = vector.shape_cast %38 : vector<11xf32> to vector<11x1xf32>
    %40 = vector.broadcast %39 : vector<11x1xf32> to vector<11x11xf32>
    %41 = arith.subf %37, %40 : vector<11x11xf32>
    %42 = math.exp %41 : vector<11x11xf32>
    %cst_16 = arith.constant dense<0.000000e+00> : vector<11xf32>
    %43 = vector.multi_reduction <add>, %42, %cst_16 [1] : vector<11x11xf32> to vector<11xf32>
    %44 = vector.shape_cast %43 : vector<11xf32> to vector<11x1xf32>
    %45 = tpu.reciprocal %44 {approx = true} : vector<11x1xf32> -> vector<11x1xf32>
    %46 = vector.broadcast %45 : vector<11x1xf32> to vector<11x11xf32>
    %47 = arith.mulf %42, %46 : vector<11x11xf32>
    %c0_17 = arith.constant 0 : index
    %c0_18 = arith.constant 0 : index
    %c0_19 = arith.constant 0 : index
    %c0_20 = arith.constant 0 : index
    %48 = vector.load %arg12[%c0_17, %c0_18, %c0_19, %c0_20] : memref<1x4x11x11xf32, #tpu.memory_space<vmem>>, vector<1x1x11x11xf32>
    %49 = vector.shape_cast %48 : vector<1x1x11x11xf32> to vector<11x11xf32>
    %50 = vector.shape_cast %47 : vector<11x11xf32> to vector<1x1x11x11xf32>
    tpu.vector_store %arg12[%c0_17, %c0_18, %c0_19, %c0_20], %50 {strides = array<i32>} : memref<1x4x11x11xf32, #tpu.memory_space<vmem>>, vector<1x1x11x11xf32>,
    %51 = arith.truncf %47 : vector<11x11xf32> to vector<11x11xbf16>
    %cst_21 = arith.constant dense<0.000000e+00> : vector<11x32xf32>
    %52 = tpu.matmul %51, %34, %cst_21 {dimension_numbers = #tpu.dot_dimension_numbers<[1], [0], [0], [1], [0, 0, 1, 1], [], []>} : vector<11x11xbf16>, vector<11x32xbf16>, vector<11x32xf32> -> vector<11x32xf32>
    %c0_22 = arith.constant 0 : index
    %c0_23 = arith.constant 0 : index
    %53 = vector.load %arg13[%c0_22, %c0_23] : memref<11x128xf32, #tpu.memory_space<vmem>>, vector<11x32xf32>
    tpu.vector_store %arg13[%c0_22, %c0_23], %52 {strides = array<i32>} : memref<11x128xf32, #tpu.memory_space<vmem>>, vector<11x32xf32>,
    %54 = vector.extract_strided_slice %28 {offsets = [0, 32], sizes = [11, 32], strides = [1, 1]} : vector<11x384xf32> to vector<11x32xf32>
    %55 = arith.truncf %54 : vector<11x32xf32> to vector<11x32xbf16>
    %56 = vector.extract_strided_slice %28 {offsets = [0, 160], sizes = [11, 32], strides = [1, 1]} : vector<11x384xf32> to vector<11x32xf32>
    %57 = arith.truncf %56 : vector<11x32xf32> to vector<11x32xbf16>
    %58 = vector.extract_strided_slice %28 {offsets = [0, 288], sizes = [11, 32], strides = [1, 1]} : vector<11x384xf32> to vector<11x32xf32>
    %59 = arith.truncf %58 : vector<11x32xf32> to vector<11x32xbf16>
    %cst_24 = arith.constant dense<0.000000e+00> : vector<11x11xf32>
    %60 = tpu.matmul %55, %57, %cst_24 {dimension_numbers = #tpu.dot_dimension_numbers<[1], [1], [0], [0], [0, 0, 1, 0], [], []>} : vector<11x32xbf16>, vector<11x32xbf16>, vector<11x11xf32> -> vector<11x11xf32>
    %cst_25 = arith.constant 0.176776692 : f32
    %61 = vector.broadcast %cst_25 : f32 to vector<11x11xf32>
    %62 = arith.mulf %60, %61 : vector<11x11xf32>
    %cst_26 = arith.constant dense<0xFF800000> : vector<11xf32>
    %63 = vector.multi_reduction <maximumf>, %62, %cst_26 [1] : vector<11x11xf32> to vector<11xf32>
    %64 = vector.shape_cast %63 : vector<11xf32> to vector<11x1xf32>
    %65 = vector.broadcast %64 : vector<11x1xf32> to vector<11x11xf32>
    %66 = arith.subf %62, %65 : vector<11x11xf32>
    %67 = math.exp %66 : vector<11x11xf32>
    %cst_27 = arith.constant dense<0.000000e+00> : vector<11xf32>
    %68 = vector.multi_reduction <add>, %67, %cst_27 [1] : vector<11x11xf32> to vector<11xf32>
    %69 = vector.shape_cast %68 : vector<11xf32> to vector<11x1xf32>
    %70 = tpu.reciprocal %69 {approx = true} : vector<11x1xf32> -> vector<11x1xf32>
    %71 = vector.broadcast %70 : vector<11x1xf32> to vector<11x11xf32>
    %72 = arith.mulf %67, %71 : vector<11x11xf32>
    %c0_28 = arith.constant 0 : index
    %c1 = arith.constant 1 : index
    %c0_29 = arith.constant 0 : index
    %c0_30 = arith.constant 0 : index
    %73 = vector.load %arg12[%c0_28, %c1, %c0_29, %c0_30] : memref<1x4x11x11xf32, #tpu.memory_space<vmem>>, vector<1x1x11x11xf32>
    %74 = vector.shape_cast %73 : vector<1x1x11x11xf32> to vector<11x11xf32>
    %75 = vector.shape_cast %72 : vector<11x11xf32> to vector<1x1x11x11xf32>
    tpu.vector_store %arg12[%c0_28, %c1, %c0_29, %c0_30], %75 {strides = array<i32>} : memref<1x4x11x11xf32, #tpu.memory_space<vmem>>, vector<1x1x11x11xf32>,
    %76 = arith.truncf %72 : vector<11x11xf32> to vector<11x11xbf16>
    %cst_31 = arith.constant dense<0.000000e+00> : vector<11x32xf32>
    %77 = tpu.matmul %76, %59, %cst_31 {dimension_numbers = #tpu.dot_dimension_numbers<[1], [0], [0], [1], [0, 0, 1, 1], [], []>} : vector<11x11xbf16>, vector<11x32xbf16>, vector<11x32xf32> -> vector<11x32xf32>
    %c0_32 = arith.constant 0 : index
    %c32 = arith.constant 32 : index
    %78 = vector.load %arg13[%c0_32, %c32] : memref<11x128xf32, #tpu.memory_space<vmem>>, vector<11x32xf32>
    tpu.vector_store %arg13[%c0_32, %c32], %77 {strides = array<i32>} : memref<11x128xf32, #tpu.memory_space<vmem>>, vector<11x32xf32>,
    %79 = vector.extract_strided_slice %28 {offsets = [0, 64], sizes = [11, 32], strides = [1, 1]} : vector<11x384xf32> to vector<11x32xf32>
    %80 = arith.truncf %79 : vector<11x32xf32> to vector<11x32xbf16>
    %81 = vector.extract_strided_slice %28 {offsets = [0, 192], sizes = [11, 32], strides = [1, 1]} : vector<11x384xf32> to vector<11x32xf32>
    %82 = arith.truncf %81 : vector<11x32xf32> to vector<11x32xbf16>
    %83 = vector.extract_strided_slice %28 {offsets = [0, 320], sizes = [11, 32], strides = [1, 1]} : vector<11x384xf32> to vector<11x32xf32>
    %84 = arith.truncf %83 : vector<11x32xf32> to vector<11x32xbf16>
    %cst_33 = arith.constant dense<0.000000e+00> : vector<11x11xf32>
    %85 = tpu.matmul %80, %82, %cst_33 {dimension_numbers = #tpu.dot_dimension_numbers<[1], [1], [0], [0], [0, 0, 1, 0], [], []>} : vector<11x32xbf16>, vector<11x32xbf16>, vector<11x11xf32> -> vector<11x11xf32>
    %cst_34 = arith.constant 0.176776692 : f32
    %86 = vector.broadcast %cst_34 : f32 to vector<11x11xf32>
    %87 = arith.mulf %85, %86 : vector<11x11xf32>
    %cst_35 = arith.constant dense<0xFF800000> : vector<11xf32>
    %88 = vector.multi_reduction <maximumf>, %87, %cst_35 [1] : vector<11x11xf32> to vector<11xf32>
    %89 = vector.shape_cast %88 : vector<11xf32> to vector<11x1xf32>
    %90 = vector.broadcast %89 : vector<11x1xf32> to vector<11x11xf32>
    %91 = arith.subf %87, %90 : vector<11x11xf32>
    %92 = math.exp %91 : vector<11x11xf32>
    %cst_36 = arith.constant dense<0.000000e+00> : vector<11xf32>
    %93 = vector.multi_reduction <add>, %92, %cst_36 [1] : vector<11x11xf32> to vector<11xf32>
    %94 = vector.shape_cast %93 : vector<11xf32> to vector<11x1xf32>
    %95 = tpu.reciprocal %94 {approx = true} : vector<11x1xf32> -> vector<11x1xf32>
    %96 = vector.broadcast %95 : vector<11x1xf32> to vector<11x11xf32>
    %97 = arith.mulf %92, %96 : vector<11x11xf32>
    %c0_37 = arith.constant 0 : index
    %c2 = arith.constant 2 : index
    %c0_38 = arith.constant 0 : index
    %c0_39 = arith.constant 0 : index
    %98 = vector.load %arg12[%c0_37, %c2, %c0_38, %c0_39] : memref<1x4x11x11xf32, #tpu.memory_space<vmem>>, vector<1x1x11x11xf32>
    %99 = vector.shape_cast %98 : vector<1x1x11x11xf32> to vector<11x11xf32>
    %100 = vector.shape_cast %97 : vector<11x11xf32> to vector<1x1x11x11xf32>
    tpu.vector_store %arg12[%c0_37, %c2, %c0_38, %c0_39], %100 {strides = array<i32>} : memref<1x4x11x11xf32, #tpu.memory_space<vmem>>, vector<1x1x11x11xf32>,
    %101 = arith.truncf %97 : vector<11x11xf32> to vector<11x11xbf16>
    %cst_40 = arith.constant dense<0.000000e+00> : vector<11x32xf32>
    %102 = tpu.matmul %101, %84, %cst_40 {dimension_numbers = #tpu.dot_dimension_numbers<[1], [0], [0], [1], [0, 0, 1, 1], [], []>} : vector<11x11xbf16>, vector<11x32xbf16>, vector<11x32xf32> -> vector<11x32xf32>
    %c0_41 = arith.constant 0 : index
    %c64 = arith.constant 64 : index
    %103 = vector.load %arg13[%c0_41, %c64] : memref<11x128xf32, #tpu.memory_space<vmem>>, vector<11x32xf32>
    tpu.vector_store %arg13[%c0_41, %c64], %102 {strides = array<i32>} : memref<11x128xf32, #tpu.memory_space<vmem>>, vector<11x32xf32>,
    %104 = vector.extract_strided_slice %28 {offsets = [0, 96], sizes = [11, 32], strides = [1, 1]} : vector<11x384xf32> to vector<11x32xf32>
    %105 = arith.truncf %104 : vector<11x32xf32> to vector<11x32xbf16>
    %106 = vector.extract_strided_slice %28 {offsets = [0, 224], sizes = [11, 32], strides = [1, 1]} : vector<11x384xf32> to vector<11x32xf32>
    %107 = arith.truncf %106 : vector<11x32xf32> to vector<11x32xbf16>
    %108 = vector.extract_strided_slice %28 {offsets = [0, 352], sizes = [11, 32], strides = [1, 1]} : vector<11x384xf32> to vector<11x32xf32>
    %109 = arith.truncf %108 : vector<11x32xf32> to vector<11x32xbf16>
    %cst_42 = arith.constant dense<0.000000e+00> : vector<11x11xf32>
    %110 = tpu.matmul %105, %107, %cst_42 {dimension_numbers = #tpu.dot_dimension_numbers<[1], [1], [0], [0], [0, 0, 1, 0], [], []>} : vector<11x32xbf16>, vector<11x32xbf16>, vector<11x11xf32> -> vector<11x11xf32>
    %cst_43 = arith.constant 0.176776692 : f32
    %111 = vector.broadcast %cst_43 : f32 to vector<11x11xf32>
    %112 = arith.mulf %110, %111 : vector<11x11xf32>
    %cst_44 = arith.constant dense<0xFF800000> : vector<11xf32>
    %113 = vector.multi_reduction <maximumf>, %112, %cst_44 [1] : vector<11x11xf32> to vector<11xf32>
    %114 = vector.shape_cast %113 : vector<11xf32> to vector<11x1xf32>
    %115 = vector.broadcast %114 : vector<11x1xf32> to vector<11x11xf32>
    %116 = arith.subf %112, %115 : vector<11x11xf32>
    %117 = math.exp %116 : vector<11x11xf32>
    %cst_45 = arith.constant dense<0.000000e+00> : vector<11xf32>
    %118 = vector.multi_reduction <add>, %117, %cst_45 [1] : vector<11x11xf32> to vector<11xf32>
    %119 = vector.shape_cast %118 : vector<11xf32> to vector<11x1xf32>
    %120 = tpu.reciprocal %119 {approx = true} : vector<11x1xf32> -> vector<11x1xf32>
    %121 = vector.broadcast %120 : vector<11x1xf32> to vector<11x11xf32>
    %122 = arith.mulf %117, %121 : vector<11x11xf32>
    %c0_46 = arith.constant 0 : index
    %c3 = arith.constant 3 : index
    %c0_47 = arith.constant 0 : index
    %c0_48 = arith.constant 0 : index
    %123 = vector.load %arg12[%c0_46, %c3, %c0_47, %c0_48] : memref<1x4x11x11xf32, #tpu.memory_space<vmem>>, vector<1x1x11x11xf32>
    %124 = vector.shape_cast %123 : vector<1x1x11x11xf32> to vector<11x11xf32>
    %125 = vector.shape_cast %122 : vector<11x11xf32> to vector<1x1x11x11xf32>
    tpu.vector_store %arg12[%c0_46, %c3, %c0_47, %c0_48], %125 {strides = array<i32>} : memref<1x4x11x11xf32, #tpu.memory_space<vmem>>, vector<1x1x11x11xf32>,
    %126 = arith.truncf %122 : vector<11x11xf32> to vector<11x11xbf16>
    %cst_49 = arith.constant dense<0.000000e+00> : vector<11x32xf32>
    %127 = tpu.matmul %126, %109, %cst_49 {dimension_numbers = #tpu.dot_dimension_numbers<[1], [0], [0], [1], [0, 0, 1, 1], [], []>} : vector<11x11xbf16>, vector<11x32xbf16>, vector<11x32xf32> -> vector<11x32xf32>
    %c0_50 = arith.constant 0 : index
    %c96 = arith.constant 96 : index
    %128 = vector.load %arg13[%c0_50, %c96] : memref<11x128xf32, #tpu.memory_space<vmem>>, vector<11x32xf32>
    tpu.vector_store %arg13[%c0_50, %c96], %127 {strides = array<i32>} : memref<11x128xf32, #tpu.memory_space<vmem>>, vector<11x32xf32>,
    %c0_51 = arith.constant 0 : index
    %c0_52 = arith.constant 0 : index
    %129 = vector.load %arg13[%c0_51, %c0_52] : memref<11x128xf32, #tpu.memory_space<vmem>>, vector<11x128xf32>
    %130 = arith.addf %129, %1 : vector<11x128xf32>
    %c0_53 = arith.constant 0 : index
    %c0_54 = arith.constant 0 : index
    %131 = vector.load %arg5[%c0_53, %c0_54] : memref<1x128xf32, #tpu.memory_space<vmem>>, vector<1x128xf32>
    %c0_55 = arith.constant 0 : index
    %c0_56 = arith.constant 0 : index
    %132 = vector.load %arg6[%c0_55, %c0_56] : memref<1x128xf32, #tpu.memory_space<vmem>>, vector<1x128xf32>
    %cst_57 = arith.constant dense<0.000000e+00> : vector<11xf32>
    %133 = vector.multi_reduction <add>, %130, %cst_57 [1] : vector<11x128xf32> to vector<11xf32>
    %134 = vector.shape_cast %133 : vector<11xf32> to vector<11x1xf32>
    %cst_58 = arith.constant 1.280000e+02 : f32
    %135 = vector.broadcast %cst_58 : f32 to vector<11x1xf32>
    %136 = arith.divf %134, %135 : vector<11x1xf32>
    %137 = vector.broadcast %136 : vector<11x1xf32> to vector<11x128xf32>
    %138 = arith.subf %130, %137 : vector<11x128xf32>
    %139 = arith.mulf %138, %138 : vector<11x128xf32>
    %cst_59 = arith.constant dense<0.000000e+00> : vector<11xf32>
    %140 = vector.multi_reduction <add>, %139, %cst_59 [1] : vector<11x128xf32> to vector<11xf32>
    %141 = vector.shape_cast %140 : vector<11xf32> to vector<11x1xf32>
    %cst_60 = arith.constant 1.280000e+02 : f32
    %142 = vector.broadcast %cst_60 : f32 to vector<11x1xf32>
    %143 = arith.divf %141, %142 : vector<11x1xf32>
    %144 = vector.broadcast %136 : vector<11x1xf32> to vector<11x128xf32>
    %145 = arith.subf %130, %144 : vector<11x128xf32>
    %cst_61 = arith.constant 9.99999974E-6 : f32
    %146 = vector.broadcast %cst_61 : f32 to vector<11x1xf32>
    %147 = arith.addf %143, %146 : vector<11x1xf32>
    %148 = math.rsqrt %147 : vector<11x1xf32>
    %149 = vector.broadcast %148 : vector<11x1xf32> to vector<11x128xf32>
    %150 = arith.mulf %145, %149 : vector<11x128xf32>
    %151 = vector.broadcast %131 : vector<1x128xf32> to vector<11x128xf32>
    %152 = arith.mulf %150, %151 : vector<11x128xf32>
    %153 = vector.broadcast %132 : vector<1x128xf32> to vector<11x128xf32>
    %154 = arith.addf %152, %153 : vector<11x128xf32>
    %155 = arith.truncf %154 : vector<11x128xf32> to vector<11x128xbf16>
    %c0_62 = arith.constant 0 : index
    %c0_63 = arith.constant 0 : index
    %156 = vector.load %arg7[%c0_62, %c0_63] : memref<128x256xbf16, #tpu.memory_space<vmem>>, vector<128x256xbf16>
    %cst_64 = arith.constant dense<0.000000e+00> : vector<11x256xf32>
    %157 = tpu.matmul %155, %156, %cst_64 {dimension_numbers = #tpu.dot_dimension_numbers<[1], [0], [0], [1], [0, 0, 1, 1], [], []>} : vector<11x128xbf16>, vector<128x256xbf16>, vector<11x256xf32> -> vector<11x256xf32>
    %c0_65 = arith.constant 0 : index
    %c0_66 = arith.constant 0 : index
    %158 = vector.load %arg8[%c0_65, %c0_66] : memref<1x256xf32, #tpu.memory_space<vmem>>, vector<1x256xf32>
    %159 = vector.broadcast %158 : vector<1x256xf32> to vector<11x256xf32>
    %160 = arith.addf %157, %159 : vector<11x256xf32>
    %161 = arith.mulf %160, %160 : vector<11x256xf32>
    %162 = arith.mulf %160, %161 : vector<11x256xf32>
    %cst_67 = arith.constant 4.471500e-02 : f32
    %163 = vector.broadcast %cst_67 : f32 to vector<11x256xf32>
    %164 = arith.mulf %163, %162 : vector<11x256xf32>
    %165 = arith.addf %160, %164 : vector<11x256xf32>
    %cst_68 = arith.constant 0.797884583 : f32
    %166 = vector.broadcast %cst_68 : f32 to vector<11x256xf32>
    %167 = arith.mulf %166, %165 : vector<11x256xf32>
    %168 = math.tanh %167 : vector<11x256xf32>
    %cst_69 = arith.constant 1.000000e+00 : f32
    %169 = vector.broadcast %cst_69 : f32 to vector<11x256xf32>
    %170 = arith.addf %169, %168 : vector<11x256xf32>
    %cst_70 = arith.constant 5.000000e-01 : f32
    %171 = vector.broadcast %cst_70 : f32 to vector<11x256xf32>
    %172 = arith.mulf %171, %170 : vector<11x256xf32>
    %173 = arith.mulf %160, %172 : vector<11x256xf32>
    %174 = arith.truncf %173 : vector<11x256xf32> to vector<11x256xbf16>
    %c0_71 = arith.constant 0 : index
    %c0_72 = arith.constant 0 : index
    %175 = vector.load %arg9[%c0_71, %c0_72] : memref<256x128xbf16, #tpu.memory_space<vmem>>, vector<256x128xbf16>
    %cst_73 = arith.constant dense<0.000000e+00> : vector<11x128xf32>
    %176 = tpu.matmul %174, %175, %cst_73 {dimension_numbers = #tpu.dot_dimension_numbers<[1], [0], [0], [1], [0, 0, 1, 1], [], []>} : vector<11x256xbf16>, vector<256x128xbf16>, vector<11x128xf32> -> vector<11x128xf32>
    %c0_74 = arith.constant 0 : index
    %c0_75 = arith.constant 0 : index
    %177 = vector.load %arg10[%c0_74, %c0_75] : memref<1x128xf32, #tpu.memory_space<vmem>>, vector<1x128xf32>
    %178 = vector.broadcast %177 : vector<1x128xf32> to vector<11x128xf32>
    %179 = arith.addf %176, %178 : vector<11x128xf32>
    %180 = arith.addf %179, %130 : vector<11x128xf32>
    %c0_76 = arith.constant 0 : index
    %c0_77 = arith.constant 0 : index
    %c0_78 = arith.constant 0 : index
    %181 = vector.load %arg11[%c0_76, %c0_77, %c0_78] : memref<1x11x128xf32, #tpu.memory_space<vmem>>, vector<1x11x128xf32>
    %182 = vector.shape_cast %181 : vector<1x11x128xf32> to vector<11x128xf32>
    %183 = vector.shape_cast %180 : vector<11x128xf32> to vector<1x11x128xf32>
    tpu.vector_store %arg11[%c0_76, %c0_77, %c0_78], %183 {strides = array<i32>} : memref<1x11x128xf32, #tpu.memory_space<vmem>>, vector<1x11x128xf32>,
    return
  }
  func.func @transform_0(%arg0: i32) -> (i32, i32, i32) {
    %c0_i32 = arith.constant 0 : i32
    %c0_i32_0 = arith.constant 0 : i32
    %c0_i32_1 = arith.constant 0 : i32
    return %arg0, %c0_i32, %c0_i32_0 : i32, i32, i32
  }
  func.func @transform_1(%arg0: i32) -> (i32, i32) {
    %c0_i32 = arith.constant 0 : i32
    %c0_i32_0 = arith.constant 0 : i32
    %c0_i32_1 = arith.constant 0 : i32
    return %c0_i32, %c0_i32_0 : i32, i32
  }
  func.func @transform_2(%arg0: i32) -> (i32, i32) {
    %c0_i32 = arith.constant 0 : i32
    %c0_i32_0 = arith.constant 0 : i32
    %c0_i32_1 = arith.constant 0 : i32
    return %c0_i32, %c0_i32_0 : i32, i32
  }
  func.func @transform_3(%arg0: i32) -> (i32, i32) {
    %c0_i32 = arith.constant 0 : i32
    %c0_i32_0 = arith.constant 0 : i32
    %c0_i32_1 = arith.constant 0 : i32
    return %c0_i32, %c0_i32_0 : i32, i32
  }
  func.func @transform_4(%arg0: i32) -> (i32, i32) {
    %c0_i32 = arith.constant 0 : i32
    %c0_i32_0 = arith.constant 0 : i32
    %c0_i32_1 = arith.constant 0 : i32
    return %c0_i32, %c0_i32_0 : i32, i32
  }
  func.func @transform_5(%arg0: i32) -> (i32, i32) {
    %c0_i32 = arith.constant 0 : i32
    %c0_i32_0 = arith.constant 0 : i32
    %c0_i32_1 = arith.constant 0 : i32
    return %c0_i32, %c0_i32_0 : i32, i32
  }
  func.func @transform_6(%arg0: i32) -> (i32, i32) {
    %c0_i32 = arith.constant 0 : i32
    %c0_i32_0 = arith.constant 0 : i32
    %c0_i32_1 = arith.constant 0 : i32
    return %c0_i32, %c0_i32_0 : i32, i32
  }
  func.func @transform_7(%arg0: i32) -> (i32, i32) {
    %c0_i32 = arith.constant 0 : i32
    %c0_i32_0 = arith.constant 0 : i32
    %c0_i32_1 = arith.constant 0 : i32
    return %c0_i32, %c0_i32_0 : i32, i32
  }
  func.func @transform_8(%arg0: i32) -> (i32, i32) {
    %c0_i32 = arith.constant 0 : i32
    %c0_i32_0 = arith.constant 0 : i32
    %c0_i32_1 = arith.constant 0 : i32
    return %c0_i32, %c0_i32_0 : i32, i32
  }
  func.func @transform_9(%arg0: i32) -> (i32, i32) {
    %c0_i32 = arith.constant 0 : i32
    %c0_i32_0 = arith.constant 0 : i32
    %c0_i32_1 = arith.constant 0 : i32
    return %c0_i32, %c0_i32_0 : i32, i32
  }
  func.func @transform_10(%arg0: i32) -> (i32, i32, i32) {
    %c0_i32 = arith.constant 0 : i32
    %c0_i32_0 = arith.constant 0 : i32
    %c0_i32_1 = arith.constant 0 : i32
    return %arg0, %c0_i32, %c0_i32_0 : i32, i32, i32
  }
  func.func @transform_11(%arg0: i32) -> (i32, i32, i32, i32) {
    %c0_i32 = arith.constant 0 : i32
    %c0_i32_0 = arith.constant 0 : i32
    %c0_i32_1 = arith.constant 0 : i32
    %c0_i32_2 = arith.constant 0 : i32
    return %arg0, %c0_i32, %c0_i32_0, %c0_i32_1 : i32, i32, i32, i32
  }
}

</mosaic_0001>

<bundles_post_ra>
// kernel: vit_encoder_forward.3
= control target key start
LH: loop header
LB: loop body
LE: loop exit
PB: predicated region body
PF: predicated region fallthrough
CT: control target
= control target key end

     0   :  { %10 = vsyncpa [#allocation3], 0  ;;  %s899_s0 = inlined_call_operand.hbm [shape: f32[2,8,48], index: 0, kind: input, shape index: {}]   ;;  %s900_s1 = inlined_call_operand.hbm [shape: f32[2,2,16], index: 1, kind: input, shape index: {}]   ;;  %s901_s2 = inlined_call_operand.vmem [shape: bf16[48,128], index: 2, kind: input, shape index: {}]   ;;  %s902_s3 = inlined_call_operand.vmem [shape: bf16[16,128], index: 3, kind: input, shape index: {}]   ;;  %s903_s4 = inlined_call_operand.vmem [shape: f32[9,128], index: 4, kind: input, shape index: {}]   ;;  %s904_s5 = inlined_call_operand.vmem [shape: f32[2,11,128], index: 5, kind: output, shape index: {}]  }
   0x1   :  { %12 = vsyncpa [#allocation3 + $0x1], 0 }
   0x2   :  { %13 = vsyncpa [#allocation5], 0 }
   0x3   :  { %15 = vsyncpa [#allocation5 + $0x1], 0  ;;  %s733_s18 = smov 0   ;;  %s735_s19 = smov 0  }
   0x4   :  { %s737_s20 = smov 0   ;;  %s739_s21 = smov 0  }
   0x5 LB: > { %s752_s22 = sadd.s32 4294967295, %s697_s21   ;;  %s755_s23 = sadd.s32 1, %s697_s21   ;;  %s697_s21 = sphi %s739_s21, %s916_s21   ;;  %s693_s20 = sphi %s737_s20, %s915_s20   ;;  %s689_s19 = sphi %s735_s19, %s914_s19   ;;  %s685_s18 = sphi %s733_s18, %s913_s18  }
   0x6   : > { %s25_s24 = ssub.s32 %s697_s21, %s755_s23  ;;  %s28_s25 = sadd.s32 1, %s693_s20 }
   0x7   : > { %p26_p0 = scmp.eq.s32.totalorder %s25_s24, 0  ;;  %p35_p1 = scmp.ne.s32.totalorder %s693_s20, %s689_s19 }
   0x8   : > { %p36_p2 = scmp.eq.s32.totalorder %s697_s21, 0  ;;  %p41_p3 = scmp.ne.s32.totalorder %s689_s19, %s685_s18 }
   0x9   : > { %s765_s26 = scalar_select %p26_p0, %s693_s20, %s28_s25  }
   0xa   : > { %p37_p4 = por %p36_p2, %p35_p1  ;;  %p42_p5 = scmp.eq.s32.totalorder %s752_s22, 0 }
   0xb   : > { %p560_p6 = scmp.lt.s32.totalorder %s697_s21, 2  ;;  %s774_s28 = sand.u32 1, %s693_s20  }
   0xc   : > { %p769_p7 = por %p42_p5, %p41_p3  ;;  %s509_s29 = sshll.u32 %s774_s28, 3 }
   0xd   : > { %s510_s30 = sshll.u32 %s697_s21, 7  ;;  %s193_s9 = scalar_lea.vmem [#allocation2], %s509_s29 }
   0xe   : > { %s906_s27 = scalar_select %p769_p7, 1, 0 }
   0xf   : > { %s781_s8 = scalar_lea.hbm %s899_s0, %s510_s30  ;;  %s200_s10 = sshll.u32 %s193_s9, 4  ;;  %s783_s10 = int_to_ptr.vmem [resolvable:$true] %s200_s10 }
  0x10   : > { %p785_p8 = pnand %p560_p6, %p37_p4  ;;  %s190_s12 = scalar_lea.sflag [#allocation3], %s774_s28 }
  0x11   : > { %s599_s13 = scalar_lea.hbm %s781_s8, 128  ;;  %s604_s16 = scalar_lea.hbm %s899_s0, 256 }
  0x12   : > { %p600_p11 = scmp.ne.s32.totalorder %s781_s8, %s599_s13  ;;  %p601_p12 = pneg %p785_p8 }
  0x13   : > { %p605_p1 = scmp.lt.u32.totalorder %s781_s8, %s899_s0  ;;  %p606_p2 = scmp.lt.u32.totalorder %s604_s16, %s599_s13 }
  0x14   : > { %p602_p13 = pnand %p601_p12, %p600_p11  ;;  %p608_p4 = scmp.lt.u32.totalorder %s599_s13, %s781_s8 }
  0x15   : > { %p607_p3 = por %p606_p2, %p605_p1 }
  0x16   : > { %p603_p0 = pneg %p602_p13 }
  0x17   : > { %p609_p5 = por %p608_p4, %p607_p3 }
  0x19   : > { %p610_p6 = pnand %p609_p5, %p603_p0 }
  0x1b   : > { %613 = shalt.err (!%p610_p6)
}
  0x1c   : > { %s614_s24 = scalar_lea.vmem %s783_s10, 128  ;;  %s699_s25 = smov [#allocation2]  }
  0x1d   : > { %p615_p11 = scmp.ne.s32.totalorder %s783_s10, %s614_s24  ;;  %s619_s29 = sshll.u32 %s699_s25, 4  ;;  %s620_s29 = int_to_ptr.vmem [resolvable:$false] %s619_s29 }
  0x1e   : > { %s621_s30 = scalar_lea.vmem %s620_s29, 256  ;;  %p622_p10 = scmp.lt.s32.totalorder %s783_s10, %s620_s29 }
  0x1f   : > { %p617_p13 = pnand %p615_p11, %p601_p12  ;;  %p623_p1 = scmp.lt.s32.totalorder %s621_s30, %s614_s24 }
  0x21   : > { %p618_p9 = pneg %p617_p13  ;;  %p624_p2 = por %p623_p1, %p622_p10 }
  0x23   : > { %p625_p3 = pnand %p624_p2, %p618_p9 }
  0x25   : > { %628 = shalt.err (!%p625_p3)
}
  0x26   : > { %556 = dma.hbm_to_vmem [thread:$0]  (!%p785_p8), %s781_s8, 128, %s783_s10, %s190_s12  }
  0x27   : > { %p908_p0 = scmp.lt.s32.totalorder %s697_s21, 3  ;;  %p909_p4 = scmp.ge.s32.totalorder %s697_s21, 1 }
  0x28   : > { %s511_s7 = sshll.u32 %s774_s28, 1  ;;  %s512_s9 = sshll.u32 %s697_s21, 5 }
  0x29   : > { %p821_p5 = pnand %p909_p4, %p908_p0  ;;  %s830_s15 = scalar_lea.hbm %s900_s1, %s512_s9 }
  0x2a   : > { %s211_s16 = scalar_lea.vmem [#allocation4], %s511_s7  ;;  %s208_s8 = scalar_lea.sflag [#allocation5], %s774_s28 }
  0x2b   : > { %s910_s6 = scalar_select %p821_p5, 1, 0 }
  0x2c   : > { %s218_s17 = sshll.u32 %s211_s16, 4  ;;  %s629_s10 = scalar_lea.hbm %s830_s15, 32  ;;  %s219_s17 = int_to_ptr.vmem [resolvable:$true] %s218_s17 }
  0x2d   : > { %p630_p9 = scmp.ne.s32.totalorder %s830_s15, %s629_s10  ;;  %s634_s18 = scalar_lea.hbm %s900_s1, 64 }
  0x2e   : > { %p635_p11 = scmp.lt.u32.totalorder %s830_s15, %s900_s1  ;;  %p636_p13 = scmp.lt.u32.totalorder %s634_s18, %s629_s10 }
  0x2f   : > { %p632_p10 = pnand %p630_p9, %p601_p12  ;;  %p638_p2 = scmp.lt.u32.totalorder %s629_s10, %s830_s15 }
  0x30   : > { %p637_p1 = por %p636_p13, %p635_p11 }
  0x31   : > { %p633_p6 = pneg %p632_p10 }
  0x32   : > { %p639_p3 = por %p638_p2, %p637_p1 }
  0x34   : > { %p640_p0 = pnand %p639_p3, %p633_p6 }
  0x36   : > { %643 = shalt.err (!%p640_p0)
}
  0x37   : > { %s644_s28 = scalar_lea.vmem %s219_s17, 32  ;;  %s700_s29 = smov [#allocation4]  }
  0x38   : > { %p645_p4 = scmp.ne.s32.totalorder %s219_s17, %s644_s28  ;;  %s649_s30 = sshll.u32 %s700_s29, 4  ;;  %s650_s30 = int_to_ptr.vmem [resolvable:$false] %s649_s30 }
  0x39   : > { %s651_s7 = scalar_lea.vmem %s650_s30, 64  ;;  %p652_p7 = scmp.lt.s32.totalorder %s219_s17, %s650_s30 }
  0x3a   : > { %p647_p9 = pnand %p645_p4, %p601_p12  ;;  %p653_p5 = scmp.lt.s32.totalorder %s651_s7, %s644_s28 }
  0x3c   : > { %p648_p10 = pneg %p647_p9  ;;  %p654_p11 = por %p653_p5, %p652_p7 }
  0x3e   : > { %p655_p13 = pnand %p654_p11, %p648_p10 }
  0x40   : > { %658 = shalt.err (!%p655_p13)
}
  0x41   : > { %559 = dma.hbm_to_vmem [thread:$0]  (!%p785_p8), %s830_s15, 32, %s219_s17, %s208_s8  }
  0x42   : > { %p911_p6 = scmp.ne.s32.totalorder %s910_s6, 0 }
  0x43   : > { %s229_s9 = sand.u32 (!%p911_p6), 1, %s689_s19   ;;  %p912_p12 = scmp.ne.s32.totalorder (!%p911_p6), %s906_s27, 0 }
  0x44   : > { %227 = sbr.rel (%p911_p6) target bundleno = 308 (0x134), region = 40  ;;  %s514_s13 = sshll.u32 (!%p911_p6), %s229_s9, 3 }
  0x45   : > { %s230_s14 = scalar_lea.sflag (!%p911_p6), [#allocation3], %s229_s9  ;;  %s233_s16 = scalar_lea.vmem (!%p911_p6), [#allocation2], %s514_s13 }
  0x4b   : > { %676 = dma.done.wait (%p912_p12), %s230_s14, 128  }
  0x4c   : > { %678 = vsyncadd (%p912_p12), %s230_s14, 4294967168  ;;  %s515_s10 = sshll.u32 %s229_s9, 1  ;;  %s239_s21 = scalar_lea.sflag [#allocation5], %s229_s9 }
  0x4d   : > { %s242_s11 = scalar_lea.vmem [#allocation4], %s515_s10 }
  0x4e   : > { %680 = dma.done.wait (%p912_p12), %s239_s21, 32  }
  0x4f   : > { %682 = vsyncadd (%p912_p12), %s239_s21, 4294967264  ;;  %v701_v0 = vmov 0.0   ;;  %vm702_vm0 = vmmov 0   ;;  %v595_v1 = vld [vmem:[%s901_s2] sm:$0xff]   ;;  %v596_v2 = vld [vmem:[%s901_s2 + $0x8] sm:$0xff]   ;;  %vm298_vm1 = vcmask 130048  }
  0x50   : > { %539 = vmatprep.subr.bf16.mxu1 %v701_v0  ;;  %533 = vmatprep.subr.bf16.mxu0 %v701_v0  ;;  %v597_v3 = vld [vmem:[%s902_s3] sm:$0xff]   ;;  %v288_v4 = vld [vmem:[%s242_s11] sm:$0x3]  ;;  %v598_v6 = vld [vmem:[%s901_s2 + $0x10] sm:$0xff]   ;;  %vm370_vm2 = vcmask 392192   ;;  %p274_p7 = scmp.lt.s32.totalorder %s752_s22, 1 }
  0x51   : > { %535 = vmatprep.mubr.msk.bf16.mxu0 %vm702_vm0, %v701_v0  ;;  %545 = vmatprep.mubr.msk.bf16.mxu1 %vm702_vm0, %v701_v0  ;;  %v289_v5 = vpack.c.bf16 %v288_v4, %v288_v4  ;;  %v280_v7 = vld [vmem:[%s233_s16] sm:$0xff]  ;;  %v343_v10 = vld [vmem:[%s903_s4 + $0x8] sm:$0x1]  ;;  %vm365_vm3 = vcmask 1046528  }
  0x52   : > { %540 = vmatpush3.bf16.msra.mxu1 %v595_v1  ;;  %534 = vmatpush3.bf16.msra.mxu0 %v597_v3  ;;  %v281_v8 = vpack.c.bf16 %v280_v7, %v280_v7  ;;  %s918_s22 = smov (!%p274_p7, %s752_s22), 1  ;;  %v342_v9 = vld [vmem:[%s903_s4] sm:$0xff]  ;;  %v367_v13 = vrot.slane %v343_v10, 1 }
  0x53   : > { %541 = vmatprep.subr.bf16.mxu1 %v701_v0  ;;  %s526_s25 = sshll.u32 %s918_s22, 4  ;;  %v366_v12 = vrot.slane %v342_v9, 1 }
  0x54   : > { %s278_s30 = scalar_lea.vmem %s904_s5, %s526_s25 }
  0x55   : > { %536 = vmatmul.mubr.msk.bf16.vlgmr.msra.gmra.mrb[0].mxu0 %vm298_vm1, %v289_v5  ;;  %344 = vst [vmem:[%s278_s30] sm:$0x1] %v342_v9  ;;  %v368_v17 = vsel %vm365_vm3, %v366_v12, %v367_v13 }
  0x56   : > { %542 = vmatpush3.bf16.msra.mxu1 %v596_v2 }
  0x57   : > { %543 = vmatprep.subr.bf16.mxu1 %v701_v0 }
  0x5a   : > { %544 = vmatpush3.bf16.msra.mxu1 %v598_v6 }
  0x5d   : > { %546 = vmatmul.mubr.msk.bf16.vlgmr.msra.gmra.mrb[0].mxu1 %vm370_vm2, %v281_v8 }
 0x128   : > { %v336_v11 = vpop.f32.mrb[0].mxu0 }
 0x129   : > { %415 = vst [vmem:[%s278_s30 + $0x9] sm:$0x3] %v336_v11  ;;  %v537_v14 = vpop.f32.mrb[1].mxu0 }
 0x12a   : > { %v339_v15 = vpop.f32.mrb[2].mxu0 }
 0x12b   : > { %v538_v16 = vpop.f32.mrb[3].mxu0 }
 0x130   : > { %v408_v18 = vpop.f32.mrb[0].mxu1 }
 0x131   : > { %v409_v19 = vadd.f32 %v408_v18, %v368_v17  ;;  %v547_v20 = vpop.f32.mrb[1].mxu1 }
 0x132   : > { %v411_v21 = vpop.f32.mrb[2].mxu1 }
 0x133   : > { %414 = vst [vmem:[%s278_s30 + $0x1] sm:$0xff] %v409_v19  ;;  %v548_v22 = vpop.f32.mrb[3].mxu1 }
 0x134 PF: > { %p18_p8 = scmp.ge.s32.totalorder %s755_s23, 4   ;;  %s913_s18 = smov %s689_s19 }
 0x135   : > { %s914_s19 = smov %s693_s20  ;;  %s915_s20 = smov %s765_s26 }
 0x136   : > { %s916_s21 = smov %s755_s23  ;;  %20 = sbr.rel (!%p18_p8) target bundleno = 5 (0x5), region = 93 }
 0x13d   :  { %437 = vsyncpa [#allocation3], 1 }
 0x13e   :  { %439 = vsyncpa [#allocation3 + $0x1], 1 }
 0x13f   :  { %440 = vsyncpa [#allocation5], 1 }
 0x140   :  { %442 = vsyncpa [#allocation5 + $0x1], 1 }

// kernel: vit_encoder_forward.5
= control target key start
LH: loop header
LB: loop body
LE: loop exit
PB: predicated region body
PF: predicated region fallthrough
CT: control target
= control target key end

     0   :  { %s2169_s17 = smov 0   ;;  %s2531_s0 = inlined_call_operand.vmem [shape: f32[2,11,128], index: 0, kind: input, shape index: {}]   ;;  %s2532_s1 = inlined_call_operand.vmem [shape: f32[1,128], index: 1, kind: input, shape index: {}]   ;;  %s2533_s2 = inlined_call_operand.vmem [shape: f32[1,128], index: 2, kind: input, shape index: {}]   ;;  %s2534_s3 = inlined_call_operand.vmem [shape: bf16[128,384], index: 3, kind: input, shape index: {}]   ;;  %s2535_s4 = inlined_call_operand.vmem [shape: f32[1,128], index: 4, kind: input, shape index: {}]   ;;  %s2536_s5 = inlined_call_operand.vmem [shape: f32[1,128], index: 5, kind: input, shape index: {}]   ;;  %s2537_s6 = inlined_call_operand.vmem [shape: bf16[128,256], index: 6, kind: input, shape index: {}]   ;;  %s2538_s7 = inlined_call_operand.vmem [shape: f32[1,256], index: 7, kind: input, shape index: {}]   ;;  %s2539_s8 = inlined_call_operand.vmem [shape: bf16[256,128], index: 8, kind: input, shape index: {}]   ;;  %s2540_s9 = inlined_call_operand.vmem [shape: f32[1,128], index: 9, kind: input, shape index: {}]   ;;  %s2541_s10 = inlined_call_operand.vmem [shape: f32[2,11,128], index: 10, kind: output, shape index: {0}]   ;;  %s2542_s11 = inlined_call_operand.vmem [shape: f32[2,4,11,11], index: 11, kind: output, shape index: {1}]  }
   0x1 LB: > { %s1753_s18 = sadd.s32 4294967295, %s2100_s17   ;;  %p1757_p0 = scmp.ge.s32.totalorder %s2100_s17, 1  ;;  %s2100_s17 = sphi %s2169_s17, %s22_s17  }
   0x2   : > { %p340_p1 = scmp.lt.s32.totalorder %s2100_s17, 3 }
   0x4   : > { %p341_p2 = pnand %p1757_p0, %p340_p1 }
   0x5   : > { %p385_p3 = scmp.lt.s32.totalorder (!%p341_p2), %s1753_s18, 1  ;;  %vm407_vm0 = vcmask (!%p341_p2), 1042432   ;;  %v1974_v3 = vld [vmem:[%s2534_s3 + $0x4] ss:$12 sps:$4 sm:$0xff] (!%p341_p2)   ;;  %v1976_v4 = vld [vmem:[%s2534_s3] ss:$12 sps:$4 sm:$0xff] (!%p341_p2)  }
   0x6   : > { %344 = sbr.rel (%p341_p2) target bundleno = 2401 (0x961), region = 60  ;;  %v2102_v5 = vmov (!%p341_p2), 0.0   ;;  %v1977_v6 = vld [vmem:[%s2534_s3 + $0x8] ss:$12 sps:$4 sm:$0xff] (!%p341_p2)   ;;  %608 = vmatprep.subr.bf16.mxu0 (!%p341_p2), %v1974_v3  ;;  %v1980_v17 = vld [vmem:[%s2534_s3 + $0x18] ss:$12 sps:$4 sm:$0xff] (!%p341_p2)  }
   0x7   : > { %1891 = vmatprep.subr.bf16.mxu1 (!%p341_p2), %v2102_v5  ;;  %v1978_v7 = vld [vmem:[%s2534_s3 + $0x1c] ss:$12 sps:$4 sm:$0xff] (!%p341_p2)   ;;  %609 = vmatpush1.bf16.msra.mxu0 (!%p341_p2), %v1976_v4  ;;  %v1981_v18 = vld [vmem:[%s2534_s3 + $0x20] ss:$12 sps:$4 sm:$0xff] (!%p341_p2)   ;;  %v1985_v21 = vld [vmem:[%s2534_s3 + $0x38] ss:$12 sps:$4 sm:$0xff] (!%p341_p2)  }
   0x8   : > { %1892 = vmatpush3.bf16.msra.mxu1 (!%p341_p2), %v1977_v6  ;;  %610 = vmatprep.subr.bf16.mxu0 (!%p341_p2), %v1978_v7  ;;  %v1982_v19 = vld [vmem:[%s2534_s3 + $0x34] ss:$12 sps:$4 sm:$0xff] (!%p341_p2)   ;;  %v1984_v20 = vld [vmem:[%s2534_s3 + $0x30] ss:$12 sps:$4 sm:$0xff] (!%p341_p2)   ;;  %v1986_v22 = vld [vmem:[%s2534_s3 + $0x4c] ss:$12 sps:$4 sm:$0xff] (!%p341_p2)  }
   0x9   : > { %1893 = vmatprep.subr.bf16.mxu1 (!%p341_p2), %v2102_v5  ;;  %v1988_v23 = vld [vmem:[%s2534_s3 + $0x48] ss:$12 sps:$4 sm:$0xff] (!%p341_p2)   ;;  %v1989_v24 = vld [vmem:[%s2534_s3 + $0x50] ss:$12 sps:$4 sm:$0xff] (!%p341_p2)   ;;  %v1992_v26 = vld [vmem:[%s2534_s3 + $0x60] ss:$12 sps:$4 sm:$0xff] (!%p341_p2)  }
   0xa   : > { %v1990_v25 = vld [vmem:[%s2534_s3 + $0x64] ss:$12 sps:$4 sm:$0xff] (!%p341_p2)   ;;  %v1993_v27 = vld [vmem:[%s2534_s3 + $0x68] ss:$12 sps:$4 sm:$0xff] (!%p341_p2)   ;;  %v1997_v30 = vld [vmem:[%s2534_s3 + $0x80] ss:$12 sps:$4 sm:$0xff] (!%p341_p2)  }
   0xb   : > { %611 = vmatpush1.bf16.msra.mxu0 (!%p341_p2), %v1980_v17  ;;  %v1994_v28 = vld [vmem:[%s2534_s3 + $0x7c] ss:$12 sps:$4 sm:$0xff] (!%p341_p2)   ;;  %v1996_v29 = vld [vmem:[%s2534_s3 + $0x78] ss:$12 sps:$4 sm:$0xff] (!%p341_p2)   ;;  %v1998_v31 = vld [vmem:[%s2534_s3 + $0x94] ss:$12 sps:$4 sm:$0xff] (!%p341_p2)  }
   0xc   : > { %1894 = vmatpush3.bf16.msra.mxu1 (!%p341_p2), %v1981_v18  ;;  %612 = vmatprep.subr.bf16.mxu0 (!%p341_p2), %v1982_v19  ;;  %v2103_v32 = vmov (!%p341_p2), 0   ;;  %vm2104_vm1 = vmmov (!%p341_p2), 0   ;;  %v2000_v33 = vld [vmem:[%s2534_s3 + $0x90] ss:$12 sps:$4 sm:$0xff] (!%p341_p2)   ;;  %v2001_v34 = vld [vmem:[%s2534_s3 + $0x98] ss:$12 sps:$4 sm:$0xff] (!%p341_p2)  }
   0xd   : > { %s2544_s18 = smov (!%p385_p3, %s1753_s18), 1  ;;  %1895 = vmatprep.subr.bf16.mxu1 %v2102_v5  ;;  %640 = vmatprep.mubr.bf16.mxu0 %v2103_v32  ;;  %v2002_v35 = vld [vmem:[%s2534_s3 + $0xac] ss:$12 sps:$4 sm:$0xff]   ;;  %v2004_v36 = vld [vmem:[%s2534_s3 + $0xa8] ss:$12 sps:$4 sm:$0xff]   ;;  %vm775_vm2 = vcmask 1044480  }
   0xe   : > { %s1841_s19 = sshll.u32 %s2544_s18, 4  ;;  %1907 = vmatprep.mubr.msk.bf16.mxu1 %vm2104_vm1, %v2102_v5  ;;  %v2005_v37 = vld [vmem:[%s2534_s3 + $0xb0] ss:$12 sps:$4 sm:$0xff]   ;;  %v1764_v46 = vld [vmem:[%s2532_s1] ss:$0 sm:$0xff]  ;;  %vm776_vm3 = vcmask 1045504  }
   0xf   : > { %s389_s22 = scalar_lea.vmem %s2531_s0, %s1841_s19  ;;  %613 = vmatpush1.bf16.msra.mxu0 %v1984_v20  ;;  %v1765_v50 = vld [vmem:[%s2533_s2] ss:$0 sm:$0xff]  ;;  %v2105_v55 = vmov 65535   ;;  %vm695_vm4 = vcmask 261120   ;;  %s2106_s27 = smov 96   ;;  %vm745_vm5 = vcmask 89088  }
  0x10   : > { %v2185_v0 = vld [vmem:[%s389_s22 + $0x8] sm:$0x7]  ;;  %v2189_v2 = vld [vmem:[%s389_s22] sm:$0xff]  ;;  %1896 = vmatpush3.bf16.msra.mxu1 %v1985_v21  ;;  %614 = vmatprep.subr.bf16.mxu0 %v1986_v22  ;;  %v777_v56 = vsel %vm775_vm2, 4294967295, %v2105_v55  ;;  %s2107_s28 = smov 64   ;;  %s2108_s29 = smov 32  }
  0x11   : > { %v408_v1 = vsel %vm407_vm0, %v2185_v0, 0.0  ;;  %1897 = vmatprep.subr.bf16.mxu1 %v2102_v5  ;;  %v2300_v63 = vsel %vm776_vm3, %v777_v56, 0  ;;  %vm749_vm6 = vcmask 83968   ;;  %s1843_s30 = sshll.u32 %s2544_s18, 6  ;;  %vm824_vm7 = vcmask 256000  }
  0x12   : > { %409 = vadd.xlane.f32.xlu0 %v408_v1  ;;  %s2355_s14 = scalar_lea.vmem %s2542_s11, %s1843_s30  ;;  %vm965_vm8 = vcmask 523520   ;;  %vm967_vm9 = vcmask 518400   ;;  %vm1105_vm10 = vcmask 785920   ;;  %vm1107_vm11 = vcmask 780800  }
  0x13   : > { %615 = vmatpush1.bf16.msra.mxu0 %v1988_v23  ;;  %vm1247_vm12 = vcmask 1043200   ;;  %vm1245_vm13 = vcmask 1048320  }
  0x14   : > { %1898 = vmatpush3.bf16.msra.mxu1 %v1989_v24  ;;  %616 = vmatprep.subr.bf16.mxu0 %v1990_v25 }
  0x15   : > { %1899 = vmatprep.subr.bf16.mxu1 %v2102_v5 }
  0x16   : > { %405 = vadd.xlane.f32.xlu0 %v2189_v2 }
  0x17   : > { %617 = vmatpush1.bf16.msra.mxu0 %v1992_v26 }
  0x18   : > { %1900 = vmatpush3.bf16.msra.mxu1 %v1993_v27  ;;  %618 = vmatprep.subr.bf16.mxu0 %v1994_v28 }
  0x19   : > { %1901 = vmatprep.subr.bf16.mxu1 %v2102_v5 }
  0x1b   : > { %619 = vmatpush1.bf16.msra.mxu0 %v1996_v29 }
  0x1c   : > { %1902 = vmatpush3.bf16.msra.mxu1 %v1997_v30  ;;  %620 = vmatprep.subr.bf16.mxu0 %v1998_v31 }
  0x1d   : > { %1903 = vmatprep.subr.bf16.mxu1 %v2102_v5 }
  0x1f   : > { %621 = vmatpush1.bf16.msra.mxu0 %v2000_v33 }
  0x20   : > { %1904 = vmatpush3.bf16.msra.mxu1 %v2001_v34  ;;  %622 = vmatprep.subr.bf16.mxu0 %v2002_v35 }
  0x21   : > { %1905 = vmatprep.subr.bf16.mxu1 %v2102_v5 }
  0x23   : > { %623 = vmatpush1.bf16.msra.mxu0 %v2004_v36 }
  0x24   : > { %1906 = vmatpush3.bf16.msra.mxu1 %v2005_v37  ;;  %1911 = vmatprep.subr.bf16.mxu0 %v2102_v5 }
  0x25   : > { %1917 = vmatprep.subr.bf16.mxu1 %v2102_v5 }
  0x9f   : > { %v410_v8 = vpop.xlane.xlu0 %409 }
  0xa0   : > { %v413_v9 = vmul.f32 0.0078125, %v410_v8 }
  0xa2   : > { %v2207_v12 = vsub.f32 %v2185_v0, %v413_v9 }
  0xa3   : > { %v406_v10 = vpop.xlane.xlu0 %405 }
  0xa4   : > { %v412_v11 = vmul.f32 0.0078125, %v406_v10  ;;  %v417_v15 = vmul.f32 %v2207_v12, %v2207_v12 }
  0xa6   : > { %v2210_v13 = vsub.f32 %v2189_v2, %v412_v11  ;;  %v420_v16 = vsel %vm407_vm0, %v417_v15, 0.0 }
  0xa8   : > { %v416_v14 = vmul.f32 %v2210_v13, %v2210_v13 }
  0xaa   : > { %418 = vadd.xlane.f32.xlu1 %v416_v14 }
  0xae   : > { %421 = vadd.xlane.f32.xlu1 %v420_v16 }
 0x137   : > { %v419_v38 = vpop.xlane.xlu1 %418 }
 0x138   : > { %v423_v39 = vmul.f32 0.0078125, %v419_v38 }
 0x13a   : > { %v425_v40 = vadd.f32 1e-05, %v423_v39 }
 0x13b   : > { %v422_v41 = vpop.xlane.xlu1 %421 }
 0x13c   : > { %2046 = vrsqrt.f32 %v425_v40  ;;  %v424_v42 = vmul.f32 0.0078125, %v422_v41 }
 0x13e   : > { %v426_v43 = vadd.f32 1e-05, %v424_v42 }
 0x140   : > { %2048 = vrsqrt.f32 %v426_v43 }
 0x146   : > { %v2047_v44 = vpop.eup %2046 }
 0x147   : > { %v429_v45 = vmul.f32 %v2047_v44, %v2210_v13 }
 0x149   : > { %v437_v49 = vmul.f32 %v1764_v46, %v429_v45 }
 0x14a   : > { %v2049_v47 = vpop.eup %2048 }
 0x14b   : > { %v430_v48 = vmul.f32 %v2049_v47, %v2207_v12  ;;  %v445_v52 = vadd.f32 %v1765_v50, %v437_v49 }
 0x14d   : > { %v438_v51 = vmul.f32 %v1764_v46, %v430_v48 }
 0x14f   : > { %v446_v53 = vadd.f32 %v1765_v50, %v438_v51 }
 0x151   : > { %v447_v54 = vpack.c.bf16 %v446_v53, %v445_v52 }
 0x153   : > { %641 = vmatmul.mubr.bf16.vlgmr.msra.gmra.mrb[0].mxu0 %v447_v54  ;;  %1908 = vmatmul.mubr.bf16.vlgmr.msra.gmra.mrb[0].mxu1 %v447_v54 }
 0x154   : > { %1913 = vmatprep.mubr.msk.bf16.mxu0 %vm2104_vm1, %v2102_v5  ;;  %1919 = vmatprep.mubr.msk.bf16.mxu1 %vm2104_vm1, %v2102_v5 }
 0x226   : > { %v642_v57 = vpop.f32.mrb[0].mxu0  ;;  %v685_v58 = vpop.f32.mrb[0].mxu1 }
 0x227   : > { %v644_v59 = vpop.f32.mrb[1].mxu0  ;;  %v1909_v60 = vpop.f32.mrb[1].mxu1 }
 0x228   : > { %v646_v61 = vpop.f32.mrb[2].mxu0  ;;  %v688_v62 = vpop.f32.mrb[2].mxu1 }
 0x229   : > { %v692_v1 = vpack.c.bf16 %v646_v61, %v642_v57  ;;  %v2302_v3 = vpack.c.bf16 %v688_v62, %v685_v58  ;;  %v648_v4 = vpop.f32.mrb[3].mxu0  ;;  %v1910_v6 = vpop.f32.mrb[3].mxu1 }
 0x22a   : > { %v693_v7 = vpack.c.bf16 %v648_v4, %v644_v59 }
 0x22b   : > { %827 = vrot.lane.b32.xlu1 %v692_v1, %s2106_s27  ;;  %v780_v8 = vand.u32 %v2300_v63, %v2302_v3 }
 0x22c   : > { %830 = vrot.lane.b32.xlu0 %v693_v7, %s2106_s27  ;;  %v700_v9 = vsel %vm695_vm4, %v693_v7, 0 }
 0x22d   : > { %1912 = vmatpush3.bf16.xpose.msra.mxu0 %v700_v9  ;;  %1918 = vmatpush3.bf16.msra.mxu1 %v780_v8 }
 0x22e   : > { %1923 = vmatprep.subr.bf16.mxu0 %v2102_v5  ;;  %1929 = vmatprep.subr.bf16.mxu1 %v2102_v5 }
 0x22f   : > { %971 = vrot.lane.b32.xlu1 %v693_v7, %s2107_s28 }
 0x230   : > { %1111 = vrot.lane.b32.xlu0 %v693_v7, %s2108_s29 }
 0x233   : > { %969 = vrot.lane.b32.xlu1 %v692_v1, %s2107_s28 }
 0x234   : > { %1914 = vmatmul.mubr.msk.bf16.vlgmr.msra.gmra.mrb[4].mxu0 %vm695_vm4, %v692_v1 }
 0x235   : > { %1925 = vmatprep.mubr.msk.bf16.mxu0 %vm2104_vm1, %v2102_v5 }
 0x237   : > { %1109 = vrot.lane.b32.xlu1 %v692_v1, %s2108_s29 }
 0x29d   : > { %v828_v10 = vpop.permute.xlu1 %827 }
 0x29e   : > { %v831_v11 = vpop.permute.xlu0 %830 }
 0x29f   : > { %v836_v12 = vsel %vm695_vm4, %v831_v11, 0 }
 0x2a0   : > { %1924 = vmatpush3.bf16.xpose.msra.mxu0 %v836_v12 }
 0x2a1   : > { %1935 = vmatprep.subr.bf16.mxu0 %v2102_v5  ;;  %v972_v13 = vpop.permute.xlu1 %971 }
 0x2a2   : > { %v977_v14 = vsel %vm695_vm4, %v972_v13, 0  ;;  %v1112_v15 = vpop.permute.xlu0 %1111 }
 0x2a3   : > { %v1117_v17 = vsel %vm695_vm4, %v1112_v15, 0 }
 0x2a5   : > { %v970_v16 = vpop.permute.xlu1 %969 }
 0x2a7   : > { %1926 = vmatmul.mubr.msk.bf16.vlgmr.msra.gmra.mrb[8].mxu0 %vm695_vm4, %v828_v10 }
 0x2a8   : > { %1936 = vmatpush3.bf16.xpose.msra.mxu0 %v977_v14  ;;  %1937 = vmatprep.mubr.msk.bf16.mxu0 %vm2104_vm1, %v2102_v5 }
 0x2a9   : > { %1947 = vmatprep.subr.bf16.mxu0 %v2102_v5  ;;  %v1110_v18 = vpop.permute.xlu1 %1109 }
 0x2af   : > { %1938 = vmatmul.mubr.msk.bf16.vlgmr.msra.gmra.mrb[12].mxu0 %vm695_vm4, %v970_v16 }
 0x2b0   : > { %1948 = vmatpush3.bf16.xpose.msra.mxu0 %v1117_v17  ;;  %1949 = vmatprep.mubr.msk.bf16.mxu0 %vm2104_vm1, %v2102_v5 }
 0x2b7   : > { %1950 = vmatmul.mubr.msk.bf16.vlgmr.msra.gmra.mrb[16].mxu0 %vm695_vm4, %v1110_v18 }
 0x2b8   : > { %1436 = vmatprep.mubr.bf16.mxu0 %v2103_v32 }
 0x307   : > { %v736_v19 = vpop.f32.mrb[4].mxu0 }
 0x308   : > { %v743_v20 = vmul.f32 0.17677669, %v736_v19  ;;  %v1915_v21 = vpop.f32.mrb[5].mxu0 }
 0x309   : > { %v739_v22 = vpop.f32.mrb[6].mxu0 }
 0x30a   : > { %v744_v23 = vmul.f32 0.17677669, %v739_v22  ;;  %v1916_v24 = vpop.f32.mrb[7].mxu0  ;;  %v746_v25 = vsel %vm745_vm5, %v743_v20, -inf }
 0x30b   : > { %747 = vmax.xlane.f32.xlu0 %v746_v25 }
 0x30c   : > { %v750_v26 = vsel %vm749_vm6, %v744_v23, -inf }
 0x30d   : > { %751 = vmax.xlane.f32.xlu1 %v750_v26 }
 0x37a   : > { %v872_v27 = vpop.f32.mrb[8].mxu0 }
 0x37b   : > { %v879_v28 = vmul.f32 0.17677669, %v872_v27  ;;  %v1927_v29 = vpop.f32.mrb[9].mxu0 }
 0x37c   : > { %v875_v30 = vpop.f32.mrb[10].mxu0 }
 0x37d   : > { %v880_v31 = vmul.f32 0.17677669, %v875_v30  ;;  %v1928_v32 = vpop.f32.mrb[11].mxu0  ;;  %v881_v33 = vsel %vm745_vm5, %v879_v28, -inf }
 0x37e   : > { %882 = vmax.xlane.f32.xlu0 %v881_v33 }
 0x37f   : > { %v884_v34 = vsel %vm749_vm6, %v880_v31, -inf }
 0x382   : > { %885 = vmax.xlane.f32.xlu0 %v884_v34  ;;  %v1013_v35 = vpop.f32.mrb[12].mxu0 }
 0x383   : > { %v1020_v36 = vmul.f32 0.17677669, %v1013_v35  ;;  %v1939_v37 = vpop.f32.mrb[13].mxu0 }
 0x384   : > { %v1016_v38 = vpop.f32.mrb[14].mxu0 }
 0x385   : > { %v1021_v39 = vmul.f32 0.17677669, %v1016_v38  ;;  %v1940_v40 = vpop.f32.mrb[15].mxu0  ;;  %v1022_v41 = vsel %vm745_vm5, %v1020_v36, -inf }
 0x386   : > { %1023 = vmax.xlane.f32.xlu0 %v1022_v41 }
 0x387   : > { %v1025_v42 = vsel %vm749_vm6, %v1021_v39, -inf }
 0x388   : > { %1026 = vmax.xlane.f32.xlu1 %v1025_v42 }
 0x38a   : > { %v1153_v43 = vpop.f32.mrb[16].mxu0 }
 0x38b   : > { %v1160_v44 = vmul.f32 0.17677669, %v1153_v43  ;;  %v1951_v45 = vpop.f32.mrb[17].mxu0 }
 0x38c   : > { %v1156_v46 = vpop.f32.mrb[18].mxu0 }
 0x38d   : > { %v2337_v47 = vmul.f32 0.17677669, %v1156_v46  ;;  %v1952_v48 = vpop.f32.mrb[19].mxu0  ;;  %v1162_v49 = vsel %vm745_vm5, %v1160_v44, -inf }
 0x38e   : > { %1163 = vmax.xlane.f32.xlu0 %v1162_v49 }
 0x38f   : > { %v1165_v50 = vsel %vm749_vm6, %v2337_v47, -inf }
 0x390   : > { %1166 = vmax.xlane.f32.xlu1 %v1165_v50 }
 0x398   : > { %v748_v51 = vpop.xlane.xlu0 %747 }
 0x399   : > { %v753_v52 = vsub.f32 %v743_v20, %v748_v51 }
 0x39a   : > { %v752_v53 = vpop.xlane.xlu1 %751 }
 0x39b   : > { %v755_v54 = vmul.f32 1.442695, %v753_v52  ;;  %v754_v55 = vsub.f32 %v744_v23, %v752_v53 }
 0x39d   : > { %2050 = vpow2.f32 %v755_v54  ;;  %v757_v56 = vmul.f32 1.442695, %v754_v55 }
 0x39f   : > { %2052 = vpow2.f32 %v757_v56 }
 0x3a7   : > { %v2051_v57 = vpop.eup %2050 }
 0x3a8   : > { %v759_v58 = vsel %vm745_vm5, %v2051_v57, 0.0 }
 0x3a9   : > { %v2053_v59 = vpop.eup %2052  ;;  %760 = vadd.xlane.f32.xlu0 %v759_v58 }
 0x3aa   : > { %v762_v60 = vsel %vm749_vm6, %v2053_v59, 0.0 }
 0x3ab   : > { %763 = vadd.xlane.f32.xlu1 %v762_v60 }
 0x40b   : > { %v883_v61 = vpop.xlane.xlu0 %882 }
 0x40c   : > { %v887_v62 = vsub.f32 %v879_v28, %v883_v61 }
 0x40e   : > { %v889_v1 = vmul.f32 1.442695, %v887_v62 }
 0x40f   : > { %v886_v4 = vpop.xlane.xlu0 %885 }
 0x410   : > { %2054 = vpow2.f32 %v889_v1  ;;  %v888_v6 = vsub.f32 %v880_v31, %v886_v4 }
 0x412   : > { %v891_v7 = vmul.f32 1.442695, %v888_v6 }
 0x413   : > { %v1024_v8 = vpop.xlane.xlu0 %1023 }
 0x414   : > { %2056 = vpow2.f32 %v891_v7  ;;  %v1028_v9 = vsub.f32 %v1020_v36, %v1024_v8 }
 0x415   : > { %v1027_v10 = vpop.xlane.xlu1 %1026 }
 0x416   : > { %v1030_v11 = vmul.f32 1.442695, %v1028_v9  ;;  %v1029_v12 = vsub.f32 %v1021_v39, %v1027_v10 }
 0x418   : > { %2058 = vpow2.f32 %v1030_v11  ;;  %v1032_v13 = vmul.f32 1.442695, %v1029_v12 }
 0x41a   : > { %v2055_v14 = vpop.eup %2054  ;;  %2060 = vpow2.f32 %v1032_v13 }
 0x41b   : > { %v1164_v15 = vpop.xlane.xlu0 %1163  ;;  %v893_v16 = vsel %vm745_vm5, %v2055_v14, 0.0 }
 0x41c   : > { %v1168_v17 = vsub.f32 %v1160_v44, %v1164_v15  ;;  %894 = vadd.xlane.f32.xlu0 %v893_v16 }
 0x41d   : > { %v1167_v27 = vpop.xlane.xlu1 %1166 }
 0x41e   : > { %v2057_v18 = vpop.eup %2056  ;;  %v1170_v19 = vmul.f32 1.442695, %v1168_v17  ;;  %v1169_v34 = vsub.f32 %v2337_v47, %v1167_v27 }
 0x41f   : > { %v896_v20 = vsel %vm749_vm6, %v2057_v18, 0.0 }
 0x420   : > { %2062 = vpow2.f32 %v1170_v19  ;;  %897 = vadd.xlane.f32.xlu1 %v896_v20  ;;  %v1172_v36 = vmul.f32 1.442695, %v1169_v34 }
 0x422   : > { %v2059_v21 = vpop.eup %2058 }
 0x423   : > { %v1034_v22 = vsel %vm745_vm5, %v2059_v21, 0.0 }
 0x424   : > { %v2061_v23 = vpop.eup %2060  ;;  %1035 = vadd.xlane.f32.xlu0 %v1034_v22 }
 0x425   : > { %v1037_v24 = vsel %vm749_vm6, %v2061_v23, 0.0 }
 0x426   : > { %1038 = vadd.xlane.f32.xlu1 %v1037_v24 }
 0x42a   : > { %v2063_v25 = vpop.eup %2062 }
 0x42b   : > { %v1174_v26 = vsel %vm745_vm5, %v2063_v25, 0.0 }
 0x42c   : > { %1175 = vadd.xlane.f32.xlu0 %v1174_v26 }
 0x436   : > { %v761_v28 = vpop.xlane.xlu0 %760 }
 0x437   : > { %2064 = vrcp.f32 %v761_v28  ;;  %1048 = vrot.lane.b32.xlu1 %v2302_v3, %s2107_s28 }
 0x438   : > { %v764_v29 = vpop.xlane.xlu1 %763 }
 0x439   : > { %2066 = vrcp.f32 %v764_v29 }
 0x43a   : > { %2068 = vpow2.f32 %v1172_v36 }
 0x441   : > { %v2065_v30 = vpop.eup %2064 }
 0x442   : > { %v767_v31 = vmul.f32 %v2065_v30, %v2051_v57  ;;  %908 = vrot.lane.b32.xlu0 %v2302_v3, %s2106_s27 }
 0x443   : > { %v2067_v32 = vpop.eup %2066 }
 0x444   : > { %769 = vst.msk [vmem:[%s2355_s14] sm:$0xff] %vm745_vm5, %v767_v31  ;;  %v768_v33 = vmul.f32 %v2067_v32, %v2053_v59  ;;  %v2069_v37 = vpop.eup %2068  ;;  %v2008_v32 = vld [vmem:[%s2537_s6 + $0x4] ss:$8 sps:$4 sm:$0xff]  }
 0x445   : > { %v1177_v38 = vsel %vm749_vm6, %v2069_v37, 0.0  ;;  %1404 = vmatprep.subr.bf16.mxu0 %v2008_v32 }
 0x446   : > { %770 = vst.msk [vmem:[%s2355_s14 + $0x8] sm:$0x7] %vm749_vm6, %v768_v33  ;;  %v771_v35 = vpack.c.bf16 %v768_v33, %v767_v31  ;;  %v2006_v31 = vld [vmem:[%s2537_s6] ss:$8 sps:$4 sm:$0xff]  }
 0x447   : > { %1405 = vmatpush1.bf16.msra.mxu0 %v2006_v31 }
 0x448   : > { %1920 = vmatmul.mubr.msk.bf16.vlgmr.msra.gmra.mrb[4].mxu1 %vm745_vm5, %v771_v35 }
 0x449   : > { %1931 = vmatprep.mubr.msk.bf16.mxu1 %vm2104_vm1, %v2102_v5 }
 0x45b   : > { %1178 = vadd.xlane.f32.xlu1 %v1177_v38 }
 0x46c   : > { %1188 = vrot.lane.b32.xlu1 %v2302_v3, %s2108_s29 }
 0x4a9   : > { %v895_v39 = vpop.xlane.xlu0 %894 }
 0x4aa   : > { %2070 = vrcp.f32 %v895_v39 }
 0x4ad   : > { %v898_v40 = vpop.xlane.xlu1 %897 }
 0x4ae   : > { %2072 = vrcp.f32 %v898_v40 }
 0x4b1   : > { %v1036_v41 = vpop.xlane.xlu0 %1035 }
 0x4b2   : > { %2074 = vrcp.f32 %v1036_v41 }
 0x4b3   : > { %v1039_v42 = vpop.xlane.xlu1 %1038 }
 0x4b4   : > { %v2071_v43 = vpop.eup %2070  ;;  %2076 = vrcp.f32 %v1039_v42  ;;  %v2014_v42 = vld [vmem:[%s2537_s6 + $0x24] ss:$8 sps:$4 sm:$0xff]  }
 0x4b5   : > { %v901_v44 = vmul.f32 %v2071_v43, %v2055_v14  ;;  %v2012_v43 = vld [vmem:[%s2537_s6 + $0x20] ss:$8 sps:$4 sm:$0xff]  }
 0x4b7   : > { %1793 = vst.msk [vmem:[%s2355_s14 + $0x10] sm:$0xff] %vm745_vm5, %v901_v44  ;;  %v1049_v53 = vpop.permute.xlu1 %1048 }
 0x4b8   : > { %v2073_v45 = vpop.eup %2072  ;;  %v1054_v55 = vand.u32 %v1049_v53, %v2300_v63 }
 0x4b9   : > { %v902_v46 = vmul.f32 %v2073_v45, %v2057_v18  ;;  %v1176_v47 = vpop.xlane.xlu0 %1175  ;;  %v2015_v45 = vld [vmem:[%s2537_s6 + $0x30] ss:$8 sps:$4 sm:$0xff]  }
 0x4ba   : > { %2078 = vrcp.f32 %v1176_v47  ;;  %v2018_v47 = vld [vmem:[%s2537_s6 + $0x40] ss:$8 sps:$4 sm:$0xff]  }
 0x4bb   : > { %1794 = vst.msk [vmem:[%s2355_s14 + $0x18] sm:$0x7] %vm749_vm6, %v902_v46  ;;  %v906_v54 = vpack.c.bf16 %v902_v46, %v901_v44  ;;  %v2017_v44 = vld [vmem:[%s2537_s6 + $0x34] ss:$8 sps:$4 sm:$0xff]   ;;  %v2020_v46 = vld [vmem:[%s2537_s6 + $0x44] ss:$8 sps:$4 sm:$0xff]  }
 0x4bc   : > { %v2075_v3 = vpop.eup %2074 }
 0x4bd   : > { %v1042_v48 = vmul.f32 %v2075_v3, %v2059_v21  ;;  %v909_v49 = vpop.permute.xlu0 %908  ;;  %v2023_v3 = vld [vmem:[%s2537_s6 + $0x54] ss:$8 sps:$4 sm:$0xff]  }
 0x4be   : > { %v2077_v50 = vpop.eup %2076  ;;  %v914_v51 = vand.u32 %v909_v49, %v2300_v63  ;;  %v2026_v49 = vld [vmem:[%s2537_s6 + $0x64] ss:$8 sps:$4 sm:$0xff]  }
 0x4bf   : > { %1797 = vst.msk [vmem:[%s2355_s14 + $0x20] sm:$0xff] %vm745_vm5, %v1042_v48  ;;  %v1043_v52 = vmul.f32 %v2077_v50, %v2061_v23  ;;  %v2024_v50 = vld [vmem:[%s2537_s6 + $0x60] ss:$8 sps:$4 sm:$0xff]  }
 0x4c0   : > { %1930 = vmatpush3.bf16.msra.mxu1 %v914_v51  ;;  %v2029_v51 = vld [vmem:[%s2537_s6 + $0x74] ss:$8 sps:$4 sm:$0xff]  }
 0x4c1   : > { %1798 = vst.msk [vmem:[%s2355_s14 + $0x28] sm:$0x7] %vm749_vm6, %v1043_v52  ;;  %1941 = vmatprep.subr.bf16.mxu1 %v2102_v5  ;;  %v1047_v58 = vpack.c.bf16 %v1043_v52, %v1042_v48  ;;  %v2021_v48 = vld [vmem:[%s2537_s6 + $0x50] ss:$8 sps:$4 sm:$0xff]  }
 0x4c2   : > { %v2027_v52 = vld [vmem:[%s2537_s6 + $0x70] ss:$8 sps:$4 sm:$0xff]  }
 0x4c3   : > { %1932 = vmatmul.mubr.msk.bf16.vlgmr.msra.gmra.mrb[8].mxu1 %vm745_vm5, %v906_v54 }
 0x4c4   : > { %v2079_v56 = vpop.eup %2078  ;;  %1942 = vmatpush3.bf16.msra.mxu1 %v1054_v55  ;;  %1943 = vmatprep.mubr.msk.bf16.mxu1 %vm2104_vm1, %v2102_v5 }
 0x4c5   : > { %v1182_v57 = vmul.f32 %v2079_v56, %v2063_v25  ;;  %1953 = vmatprep.subr.bf16.mxu1 %v2102_v5 }
 0x4c7   : > { %1801 = vst.msk [vmem:[%s2355_s14 + $0x30] sm:$0xff] %vm745_vm5, %v1182_v57 }
 0x4cb   : > { %1944 = vmatmul.mubr.msk.bf16.vlgmr.msra.gmra.mrb[12].mxu1 %vm745_vm5, %v1047_v58 }
 0x4cc   : > { %1955 = vmatprep.mubr.msk.bf16.mxu1 %vm2104_vm1, %v2102_v5 }
 0x4e8   : > { %v1179_v59 = vpop.xlane.xlu1 %1178 }
 0x4e9   : > { %2080 = vrcp.f32 %v1179_v59 }
 0x4ec   : > { %v1189_v60 = vpop.permute.xlu1 %1188 }
 0x4ed   : > { %v1194_v61 = vand.u32 %v1189_v60, %v2300_v63 }
 0x4ef   : > { %1954 = vmatpush3.bf16.msra.mxu1 %v1194_v61  ;;  %v1804_v61 = vld [vmem:[%s2535_s4] ss:$0 sm:$0xff] }
 0x4f3   : > { %v2081_v62 = vpop.eup %2080 }
 0x4f4   : > { %v1183_v1 = vmul.f32 %v2081_v62, %v2069_v37 }
 0x4f6   : > { %1802 = vst.msk [vmem:[%s2355_s14 + $0x38] sm:$0x7] %vm749_vm6, %v1183_v1  ;;  %v1187_v4 = vpack.c.bf16 %v1183_v1, %v1182_v57 }
 0x4f8   : > { %1956 = vmatmul.mubr.msk.bf16.vlgmr.msra.gmra.mrb[16].mxu1 %vm745_vm5, %v1187_v4 }
 0x51b   : > { %v816_v6 = vpop.f32.mrb[4].mxu1 }
 0x51c   : > { %823 = vst.msk [vmem:[#allocation2] sm:$0xff] %vm695_vm4, %v816_v6  ;;  %v1921_v7 = vpop.f32.mrb[5].mxu1  ;;  %v1805_v6 = vld [vmem:[%s2536_s5] ss:$0 sm:$0xff] }
 0x51d   : > { %v819_v8 = vpop.f32.mrb[6].mxu1 }
 0x51e   : > { %825 = vst.msk [vmem:[#allocation2 + $0x8] sm:$0x7] %vm824_vm7, %v819_v8  ;;  %v1922_v5 = vpop.f32.mrb[7].mxu1 }
 0x596   : > { %v950_v9 = vpop.f32.mrb[8].mxu1 }
 0x597   : > { %959 = vrot.lane.b32.xlu1 %v950_v9, %s2108_s29  ;;  %v1933_v63 = vpop.f32.mrb[9].mxu1 }
 0x598   : > { %v953_v10 = vpop.f32.mrb[10].mxu1  ;;  %v2030_v63 = vld [vmem:[%s2539_s8 + $0x40] sm:$0xff]  }
 0x599   : > { %v1934_v11 = vpop.f32.mrb[11].mxu1  ;;  %1869 = vmatprep.subr.bf16.mxu1 %v2030_v63 }
 0x59a   : > { %v2032_v11 = vld [vmem:[%s2539_s8 + $0x48] sm:$0xff]  }
 0x59b   : > { %961 = vrot.lane.b32.xlu1 %v953_v10, %s2108_s29  ;;  %v2031_v10 = vld [vmem:[%s2539_s8] sm:$0xff]  }
 0x59c   : > { %1870 = vmatpush3.bf16.msra.mxu1 %v2031_v10 }
 0x59d   : > { %1871 = vmatprep.subr.bf16.mxu1 %v2032_v11 }
 0x59e   : > { %v1090_v12 = vpop.f32.mrb[12].mxu1 }
 0x59f   : > { %1099 = vrot.lane.b32.xlu1 %v1090_v12, %s2107_s28  ;;  %v1945_v13 = vpop.f32.mrb[13].mxu1  ;;  %v2033_v12 = vld [vmem:[%s2539_s8 + $0x8] sm:$0xff]  }
 0x5a0   : > { %v1093_v14 = vpop.f32.mrb[14].mxu1  ;;  %1872 = vmatpush3.bf16.msra.mxu1 %v2033_v12  ;;  %v2034_v13 = vld [vmem:[%s2539_s8 + $0x50] sm:$0xff]  }
 0x5a1   : > { %1101 = vrot.lane.b32.xlu0 %v1093_v14, %s2107_s28  ;;  %v1946_v15 = vpop.f32.mrb[15].mxu1  ;;  %v2035_v14 = vld [vmem:[%s2539_s8 + $0x10] sm:$0xff]   ;;  %1873 = vmatprep.subr.bf16.mxu1 %v2034_v13  ;;  %s394_s28 = scalar_lea.vmem %s2541_s10, %s1841_s19 }
 0x5a2   : > { %v2036_v15 = vld [vmem:[%s2539_s8 + $0x58] sm:$0xff]  }
 0x5a4   : > { %1874 = vmatpush3.bf16.msra.mxu1 %v2035_v14 }
 0x5a5   : > { %1875 = vmatprep.subr.bf16.mxu1 %v2036_v15 }
 0x5cb   : > { %v1230_v16 = vpop.f32.mrb[16].mxu1 }
 0x5cc   : > { %v1957_v17 = vpop.f32.mrb[17].mxu1 }
 0x5cd   : > { %v1233_v18 = vpop.f32.mrb[18].mxu1  ;;  %v2038_v17 = vld [vmem:[%s2539_s8 + $0x60] sm:$0xff]  }
 0x5ce   : > { %1241 = vrot.lane.b32.xlu0 %v1233_v18, %s2106_s27  ;;  %v1958_v19 = vpop.f32.mrb[19].mxu1  ;;  %v2039_v18 = vld [vmem:[%s2539_s8 + $0x20] sm:$0xff]  }
 0x5cf   : > { %v2040_v19 = vld [vmem:[%s2539_s8 + $0x68] sm:$0xff]  }
 0x5d2   : > { %1239 = vrot.lane.b32.xlu0 %v1230_v16, %s2106_s27  ;;  %v2037_v16 = vld [vmem:[%s2539_s8 + $0x18] sm:$0xff]  }
 0x5d3   : > { %1876 = vmatpush3.bf16.msra.mxu1 %v2037_v16 }
 0x5d4   : > { %1877 = vmatprep.subr.bf16.mxu1 %v2038_v17  ;;  %v1822_v17 = vld [vmem:[%s2540_s9] ss:$0 sm:$0xff] }
 0x5d7   : > { %1878 = vmatpush3.bf16.msra.mxu1 %v2039_v18 }
 0x5d8   : > { %1879 = vmatprep.subr.bf16.mxu1 %v2040_v19 }
 0x609   : > { %v960_v20 = vpop.permute.xlu1 %959 }
 0x60a   : > { %966 = vst.msk [vmem:[#allocation2] sm:$0xff] %vm965_vm8, %v960_v20  ;;  %v2041_v20 = vld [vmem:[%s2539_s8 + $0x28] sm:$0xff]  }
 0x60b   : > { %1880 = vmatpush3.bf16.msra.mxu1 %v2041_v20 }
 0x60d   : > { %v962_v21 = vpop.permute.xlu1 %961 }
 0x60e   : > { %968 = vst.msk [vmem:[#allocation2 + $0x8] sm:$0x7] %vm967_vm9, %v962_v21  ;;  %v2042_v21 = vld [vmem:[%s2539_s8 + $0x70] sm:$0xff]  }
 0x60f   : > { %1881 = vmatprep.subr.bf16.mxu1 %v2042_v21 }
 0x611   : > { %v1100_v22 = vpop.permute.xlu1 %1099 }
 0x612   : > { %1106 = vst.msk [vmem:[#allocation2] sm:$0xff] %vm1105_vm10, %v1100_v22  ;;  %v2043_v22 = vld [vmem:[%s2539_s8 + $0x30] sm:$0xff]  }
 0x613   : > { %v1102_v23 = vpop.permute.xlu0 %1101  ;;  %1882 = vmatpush3.bf16.msra.mxu1 %v2043_v22 }
 0x614   : > { %1108 = vst.msk [vmem:[#allocation2 + $0x8] sm:$0x7] %vm1107_vm11, %v1102_v23  ;;  %v2044_v23 = vld [vmem:[%s2539_s8 + $0x78] sm:$0xff]  }
 0x615   : > { %1883 = vmatprep.subr.bf16.mxu1 %v2044_v23 }
 0x640   : > { %v1242_v24 = vpop.permute.xlu0 %1241 }
 0x641   : > { %1248 = vst.msk [vmem:[#allocation2 + $0x8] sm:$0x7] %vm1247_vm12, %v1242_v24  ;;  %v2045_v24 = vld [vmem:[%s2539_s8 + $0x38] sm:$0xff]  }
 0x642   : > { %1884 = vmatpush3.bf16.msra.mxu1 %v2045_v24 }
 0x644   : > { %v1240_v25 = vpop.permute.xlu0 %1239 }
 0x645   : > { %1246 = vst.msk [vmem:[#allocation2] sm:$0xff] %vm1245_vm13, %v1240_v25  ;;  %v1314_v25 = vlaneseq }
 0x648   : > { %v1250_v26 = vld [vmem:[#allocation2 + $0x8] sm:$0x7] }
 0x649   : > { %v2402_v27 = vadd.f32 %v1250_v26, %v2185_v0  ;;  %v2011_v0 = vld [vmem:[%s2537_s6 + $0x14] ss:$8 sps:$4 sm:$0xff]   ;;  %v1315_v26 = vshrl.u32 %v1314_v25, 7 }
 0x64a   : > { %1406 = vmatprep.subr.bf16.mxu0 %v2011_v0 }
 0x64b   : > { %v1257_v28 = vsel %vm407_vm0, %v2402_v27, 0.0  ;;  %v1320_v31 = vsub.s32 1, %v1315_v26 }
 0x64c   : > { %1258 = vadd.xlane.f32.xlu1 %v1257_v28  ;;  %v1249_v29 = vld [vmem:[#allocation2] sm:$0xff]  ;;  %v1316_v28 = vsub.s32 0, %v1315_v26 }
 0x64d   : > { %v2407_v30 = vadd.f32 %v1249_v29, %v2189_v2  ;;  %v2009_v2 = vld [vmem:[%s2537_s6 + $0x10] ss:$8 sps:$4 sm:$0xff]   ;;  %v1312_v29 = vld [vmem:[%s2538_s7] sm:$0x3] }
 0x64e   : > { %1407 = vmatpush1.bf16.msra.mxu0 %v2009_v2  ;;  %v1317_v32 = vrot.slane %v1312_v29, %v1316_v28  ;;  %v1321_v0 = vrot.slane %v1312_v29, %v1320_v31 }
 0x64f   : > { %1255 = vadd.xlane.f32.xlu0 %v2407_v30  ;;  %1408 = vmatprep.subr.bf16.mxu0 %v2014_v42 }
 0x652   : > { %1409 = vmatpush1.bf16.msra.mxu0 %v2012_v43 }
 0x653   : > { %1410 = vmatprep.subr.bf16.mxu0 %v2017_v44 }
 0x656   : > { %1411 = vmatpush1.bf16.msra.mxu0 %v2015_v45 }
 0x657   : > { %1412 = vmatprep.subr.bf16.mxu0 %v2020_v46 }
 0x65a   : > { %1413 = vmatpush1.bf16.msra.mxu0 %v2018_v47 }
 0x65b   : > { %1414 = vmatprep.subr.bf16.mxu0 %v2023_v3 }
 0x65e   : > { %1415 = vmatpush1.bf16.msra.mxu0 %v2021_v48 }
 0x65f   : > { %1416 = vmatprep.subr.bf16.mxu0 %v2026_v49 }
 0x662   : > { %1417 = vmatpush1.bf16.msra.mxu0 %v2024_v50 }
 0x663   : > { %1418 = vmatprep.subr.bf16.mxu0 %v2029_v51 }
 0x666   : > { %1419 = vmatpush1.bf16.msra.mxu0 %v2027_v52 }
 0x6d9   : > { %v1259_v33 = vpop.xlane.xlu1 %1258 }
 0x6da   : > { %v1261_v34 = vmul.f32 0.0078125, %v1259_v33 }
 0x6dc   : > { %v1256_v35 = vpop.xlane.xlu0 %1255  ;;  %v1263_v37 = vsub.f32 %v2402_v27, %v1261_v34 }
 0x6dd   : > { %v1260_v36 = vmul.f32 0.0078125, %v1256_v35 }
 0x6de   : > { %v1265_v40 = vmul.f32 %v1263_v37, %v1263_v37 }
 0x6df   : > { %v1262_v38 = vsub.f32 %v2407_v30, %v1260_v36 }
 0x6e0   : > { %v1268_v41 = vsel %vm407_vm0, %v1265_v40, 0.0 }
 0x6e1   : > { %v1264_v39 = vmul.f32 %v1262_v38, %v1262_v38 }
 0x6e3   : > { %1266 = vadd.xlane.f32.xlu0 %v1264_v39 }
 0x6e7   : > { %1269 = vadd.xlane.f32.xlu0 %v1268_v41 }
 0x770   : > { %v1267_v53 = vpop.xlane.xlu0 %1266 }
 0x771   : > { %v1271_v54 = vmul.f32 0.0078125, %v1267_v53 }
 0x773   : > { %v1273_v55 = vadd.f32 1e-05, %v1271_v54 }
 0x774   : > { %v1270_v56 = vpop.xlane.xlu0 %1269 }
 0x775   : > { %2082 = vrsqrt.f32 %v1273_v55  ;;  %v1272_v57 = vmul.f32 0.0078125, %v1270_v56 }
 0x777   : > { %v1274_v58 = vadd.f32 1e-05, %v1272_v57 }
 0x779   : > { %2084 = vrsqrt.f32 %v1274_v58 }
 0x77f   : > { %v2083_v59 = vpop.eup %2082 }
 0x780   : > { %v1277_v60 = vmul.f32 %v2083_v59, %v1262_v38 }
 0x782   : > { %v1285_v4 = vmul.f32 %v1804_v61, %v1277_v60 }
 0x783   : > { %v2085_v62 = vpop.eup %2084 }
 0x784   : > { %v1278_v1 = vmul.f32 %v2085_v62, %v1263_v37  ;;  %v1293_v8 = vadd.f32 %v1805_v6, %v1285_v4 }
 0x786   : > { %v1286_v7 = vmul.f32 %v1804_v61, %v1278_v1 }
 0x788   : > { %v1294_v5 = vadd.f32 %v1805_v6, %v1286_v7 }
 0x78a   : > { %v1295_v9 = vpack.c.bf16 %v1294_v5, %v1293_v8 }
 0x78c   : > { %1437 = vmatmul.mubr.bf16.vlgmr.msra.gmra.mrb[20].mxu0 %v1295_v9 }
 0x85f   : > { %v1438_v2 = vpop.f32.mrb[20].mxu0 }
 0x860   : > { %v1439_v33 = vadd.f32 %v1438_v2, %v1317_v32  ;;  %v1440_v34 = vpop.f32.mrb[21].mxu0 }
 0x861   : > { %v1441_v35 = vadd.f32 %v1440_v34, %v1321_v0  ;;  %v1442_v36 = vpop.f32.mrb[22].mxu0 }
 0x862   : > { %v1447_v37 = vmul.f32 %v1439_v33, %v1439_v33  ;;  %v1443_v38 = vadd.f32 %v1442_v36, %v1317_v32  ;;  %v1444_v39 = vpop.f32.mrb[23].mxu0 }
 0x863   : > { %v1448_v40 = vmul.f32 %v1441_v35, %v1441_v35  ;;  %v1445_v41 = vadd.f32 %v1444_v39, %v1321_v0 }
 0x864   : > { %v1451_v42 = vmul.f32 %v1447_v37, %v1439_v33  ;;  %v1449_v43 = vmul.f32 %v1443_v38, %v1443_v38 }
 0x865   : > { %v1452_v44 = vmul.f32 %v1448_v40, %v1441_v35  ;;  %v1450_v45 = vmul.f32 %v1445_v41, %v1445_v41 }
 0x866   : > { %v1455_v46 = vmul.f32 0.044715, %v1451_v42  ;;  %v1453_v47 = vmul.f32 %v1449_v43, %v1443_v38 }
 0x867   : > { %v1456_v3 = vmul.f32 0.044715, %v1452_v44  ;;  %v1454_v48 = vmul.f32 %v1450_v45, %v1445_v41 }
 0x868   : > { %v1459_v49 = vadd.f32 %v1455_v46, %v1439_v33  ;;  %v1457_v50 = vmul.f32 0.044715, %v1453_v47 }
 0x869   : > { %v1460_v51 = vadd.f32 %v1456_v3, %v1441_v35  ;;  %v1458_v52 = vmul.f32 0.044715, %v1454_v48 }
 0x86a   : > { %v1463_v53 = vmul.f32 0.7978846, %v1459_v49  ;;  %v1461_v54 = vadd.f32 %v1457_v50, %v1443_v38 }
 0x86b   : > { %v1464_v55 = vmul.f32 0.7978846, %v1460_v51  ;;  %v1462_v56 = vadd.f32 %v1458_v52, %v1445_v41 }
 0x86c   : > { %2086 = vtanh.f32 %v1463_v53  ;;  %v1465_v57 = vmul.f32 0.7978846, %v1461_v54 }
 0x86d   : > { %2088 = vtanh.f32 %v1464_v55  ;;  %v1466_v58 = vmul.f32 0.7978846, %v1462_v56 }
 0x86e   : > { %2090 = vtanh.f32 %v1465_v57 }
 0x86f   : > { %2092 = vtanh.f32 %v1466_v58 }
 0x876   : > { %v2087_v59 = vpop.eup %2086 }
 0x877   : > { %v2089_v60 = vpop.eup %2088  ;;  %v1471_v61 = vadd.f32 1.0, %v2087_v59 }
 0x878   : > { %v2091_v62 = vpop.eup %2090  ;;  %v1472_v1 = vadd.f32 1.0, %v2089_v60 }
 0x879   : > { %v2093_v4 = vpop.eup %2092  ;;  %v1475_v6 = vmul.f32 0.5, %v1471_v61  ;;  %v1473_v7 = vadd.f32 1.0, %v2091_v62 }
 0x87a   : > { %v1474_v8 = vadd.f32 1.0, %v2093_v4  ;;  %v1476_v5 = vmul.f32 0.5, %v1472_v1 }
 0x87b   : > { %v1477_v9 = vmul.f32 0.5, %v1473_v7  ;;  %v1479_v10 = vmul.f32 %v1475_v6, %v1439_v33 }
 0x87c   : > { %v1478_v63 = vmul.f32 0.5, %v1474_v8  ;;  %v1480_v12 = vmul.f32 %v1476_v5, %v1441_v35 }
 0x87d   : > { %v1481_v11 = vmul.f32 %v1477_v9, %v1443_v38 }
 0x87e   : > { %v1482_v13 = vmul.f32 %v1478_v63, %v1445_v41 }
 0x87f   : > { %v1483_v14 = vpack.c.bf16 %v1481_v11, %v1479_v10 }
 0x880   : > { %v1484_v15 = vpack.c.bf16 %v1482_v13, %v1480_v12 }
 0x882   : > { %1652 = vmatprep.mubr.bf16.mxu1 %v1484_v15 }
 0x883   : > { %1653 = vmatmul.mubr.bf16.vlgmr.msra.gmra.mrb[20].mxu1 %v1483_v14 }
 0x956   : > { %v1885_v16 = vpop.f32.mrb[20].mxu1 }
 0x957   : > { %v1886_v18 = vpop.f32.mrb[21].mxu1 }
 0x958   : > { %v1887_v19 = vadd.f32 %v1886_v18, %v1885_v16  ;;  %v1888_v20 = vpop.f32.mrb[22].mxu1 }
 0x959   : > { %v1889_v21 = vpop.f32.mrb[23].mxu1 }
 0x95a   : > { %v1655_v22 = vadd.f32 %v1887_v19, %v1822_v17  ;;  %v1890_v23 = vadd.f32 %v1889_v21, %v1888_v20 }
 0x95c   : > { %v1661_v24 = vadd.f32 %v1655_v22, %v2407_v30  ;;  %v1658_v25 = vadd.f32 %v1890_v23, %v1822_v17 }
 0x95e   : > { %1663 = vst [vmem:[%s394_s28] sm:$0xff] %v1661_v24  ;;  %v1662_v26 = vadd.f32 %v1658_v25, %v2402_v27 }
 0x960   : > { %1664 = vst [vmem:[%s394_s28 + $0x8] sm:$0x7] %v1662_v26 }
 0x961 PF: > { %s22_s17 = sadd.s32 1, %s2100_s17  }
 0x962   : > { %p19_p4 = scmp.ge.s32.totalorder %s22_s17, 4  }
 0x964   :  { %21 = sbr.rel (!%p19_p4) target bundleno = 1 (0x1), region = 105 }

// kernel: vit_encoder_forward.4
= control target key start
LH: loop header
LB: loop body
LE: loop exit
PB: predicated region body
PF: predicated region fallthrough
CT: control target
= control target key end

     0   :  { %17 = vsyncpa [#allocation4], 0  ;;  %s3161_s0 = inlined_call_operand.vmem [shape: f32[2,11,128], index: 0, kind: input, shape index: {}]   ;;  %s3162_s1 = inlined_call_operand.hbm [shape: f32[1,128], index: 1, kind: input, shape index: {}]   ;;  %s3163_s2 = inlined_call_operand.hbm [shape: f32[1,128], index: 2, kind: input, shape index: {}]   ;;  %s3164_s3 = inlined_call_operand.hbm [shape: bf16[128,384], index: 3, kind: input, shape index: {}]   ;;  %s3165_s4 = inlined_call_operand.hbm [shape: f32[1,128], index: 4, kind: input, shape index: {}]   ;;  %s3166_s5 = inlined_call_operand.hbm [shape: f32[1,128], index: 5, kind: input, shape index: {}]   ;;  %s3167_s6 = inlined_call_operand.vmem [shape: bf16[128,256], index: 6, kind: input, shape index: {}]   ;;  %s3168_s7 = inlined_call_operand.hbm [shape: f32[1,256], index: 7, kind: input, shape index: {}]   ;;  %s3169_s8 = inlined_call_operand.hbm [shape: bf16[256,128], index: 8, kind: input, shape index: {}]   ;;  %s3170_s9 = inlined_call_operand.hbm [shape: f32[1,128], index: 9, kind: input, shape index: {}]   ;;  %s3171_s10 = inlined_call_operand.vmem [shape: f32[2,11,128], index: 10, kind: output, shape index: {0}]   ;;  %s3172_s11 = inlined_call_operand.vmem [shape: f32[2,4,11,11], index: 11, kind: output, shape index: {1}]  }
   0x1   :  { %18 = vsyncpa [#allocation6], 0 }
   0x2   :  { %19 = vsyncpa [#allocation9], 0 }
   0x3   :  { %20 = vsyncpa [#allocation12], 0 }
   0x4   :  { %21 = vsyncpa [#allocation15], 0  ;;  %s2710_s17 = smov 0  }
   0x5 LB: > { %s2631_s18 = smov [#allocation5]   ;;  %s2716_s20 = sadd.s32 4294967295, %s2629_s17   ;;  %s2629_s17 = sphi %s2710_s17, %s27_s17  }
   0x6   : > { %s323_s19 = sshll.u32 %s2631_s18, 4  ;;  %p1939_p0 = scmp.ge.s32.totalorder %s2629_s17, 1  ;;  %s2721_s19 = int_to_ptr.vmem [resolvable:$true] %s323_s19 }
   0x7   : > { %p299_p1 = scmp.lt.s32.totalorder %s2629_s17, 3  ;;  %p3173_p2 = scmp.eq.s32.totalorder %s2716_s20, 0 }
   0x8   : > { %s2632_s22 = smov [#allocation8]   ;;  %s2633_s24 = smov [#allocation11]  }
   0x9   : > { %p2723_p3 = pnand %p1939_p0, %p299_p1  ;;  %s347_s23 = sshll.u32 %s2632_s22, 4  ;;  %s2729_s23 = int_to_ptr.vmem [resolvable:$true] %s347_s23 }
   0xa   : > { %s372_s25 = sshll.u32 %s2633_s24, 4  ;;  %s2634_s27 = smov [#allocation3]   ;;  %s2737_s25 = int_to_ptr.vmem [resolvable:$true] %s372_s25 }
   0xb   : > { %s3175_s21 = scalar_select %p2723_p3, 1, 0 }
   0xc   : > { %p2191_p4 = pneg %p2723_p3  ;;  %s312_s28 = sshll.u32 %s2634_s27, 4  ;;  %s2739_s28 = int_to_ptr.vmem [resolvable:$true] %s312_s28 }
   0xd   : > { %s2379_s12 = scalar_lea.hbm %s3163_s2, 16 }
   0xe   : > { %p2733_p5 = pnand %p3173_p2, %p2191_p4  ;;  %p2380_p6 = scmp.ne.s32.totalorder %s3163_s2, %s2379_s12 }
   0xf   : > { %p2386_p10 = scmp.lt.u32.totalorder %s2379_s12, %s3163_s2 }
  0x10   : > { %p2749_p7 = pneg %p2733_p5 }
  0x12   : > { %p2382_p8 = pnand %p2749_p7, %p2380_p6 }
  0x14   : > { %p2383_p9 = pneg %p2382_p8 }
  0x16   : > { %p2388_p11 = pnand %p2386_p10, %p2383_p9 }
  0x18   : > { %2391 = shalt.err (!%p2388_p11)
}
  0x19   : > { %s2392_s22 = scalar_lea.vmem %s2721_s19, 16  ;;  %s2399_s24 = scalar_lea.vmem %s2721_s19, 32 }
  0x1a   : > { %p2393_p12 = scmp.ne.s32.totalorder %s2721_s19, %s2392_s22  ;;  %p2400_p1 = scmp.lt.s32.totalorder %s2721_s19, %s2721_s19 }
  0x1b   : > { %p2401_p4 = scmp.lt.s32.totalorder %s2399_s24, %s2392_s22 }
  0x1c   : > { %p2395_p13 = pnand %p2393_p12, %p2749_p7 }
  0x1d   : > { %p2402_p6 = por %p2401_p4, %p2400_p1 }
  0x1e   : > { %p2396_p0 = pneg %p2395_p13 }
  0x20   : > { %p2403_p8 = pnand %p2402_p6, %p2396_p0 }
  0x22   : > { %2406 = shalt.err (!%p2403_p8)
}
  0x23   : > { %2197 = dma.hbm_to_vmem [thread:$0]  (!%p2733_p5), %s3163_s2, 16, %s2721_s19, [#allocation6]  }
  0x24   : > { %s2407_s13 = scalar_lea.hbm %s3165_s4, 16 }
  0x25   : > { %p2408_p9 = scmp.ne.s32.totalorder %s3165_s4, %s2407_s13  ;;  %p2414_p12 = scmp.lt.u32.totalorder %s2407_s13, %s3165_s4 }
  0x27   : > { %p2410_p10 = pnand %p2408_p9, %p2749_p7 }
  0x29   : > { %p2411_p11 = pneg %p2410_p10 }
  0x2b   : > { %p2416_p13 = pnand %p2414_p12, %p2411_p11 }
  0x2d   : > { %2419 = shalt.err (!%p2416_p13)
}
  0x2e   : > { %s2420_s19 = scalar_lea.vmem %s2729_s23, 16  ;;  %s2427_s24 = scalar_lea.vmem %s2729_s23, 32 }
  0x2f   : > { %p2421_p0 = scmp.ne.s32.totalorder %s2729_s23, %s2420_s19  ;;  %p2428_p6 = scmp.lt.s32.totalorder %s2729_s23, %s2729_s23 }
  0x30   : > { %p2429_p8 = scmp.lt.s32.totalorder %s2427_s24, %s2420_s19 }
  0x31   : > { %p2423_p1 = pnand %p2421_p0, %p2749_p7 }
  0x32   : > { %p2430_p9 = por %p2429_p8, %p2428_p6 }
  0x33   : > { %p2424_p4 = pneg %p2423_p1 }
  0x35   : > { %p2431_p10 = pnand %p2430_p9, %p2424_p4 }
  0x37   : > { %2434 = shalt.err (!%p2431_p10)
}
  0x38   : > { %2203 = dma.hbm_to_vmem [thread:$0]  (!%p2733_p5), %s3165_s4, 16, %s2729_s23, [#allocation9]  }
  0x39   : > { %s2435_s13 = scalar_lea.hbm %s3168_s7, 32 }
  0x3a   : > { %p2436_p11 = scmp.ne.s32.totalorder %s3168_s7, %s2435_s13  ;;  %p2442_p0 = scmp.lt.u32.totalorder %s2435_s13, %s3168_s7 }
  0x3c   : > { %p2438_p12 = pnand %p2436_p11, %p2749_p7 }
  0x3e   : > { %p2439_p13 = pneg %p2438_p12 }
  0x40   : > { %p2444_p1 = pnand %p2442_p0, %p2439_p13 }
  0x42   : > { %2447 = shalt.err (!%p2444_p1)
}
  0x43   : > { %s2448_s23 = scalar_lea.vmem %s2737_s25, 32  ;;  %p2456_p9 = scmp.lt.s32.totalorder %s2737_s25, %s2737_s25 }
  0x44   : > { %p2449_p4 = scmp.ne.s32.totalorder %s2737_s25, %s2448_s23  ;;  %p2457_p10 = scmp.lt.s32.totalorder %s2448_s23, %s2448_s23 }
  0x46   : > { %p2451_p6 = pnand %p2449_p4, %p2749_p7  ;;  %p2458_p11 = por %p2457_p10, %p2456_p9 }
  0x48   : > { %p2452_p8 = pneg %p2451_p6 }
  0x4a   : > { %p2459_p12 = pnand %p2458_p11, %p2452_p8 }
  0x4c   : > { %2462 = shalt.err (!%p2459_p12)
}
  0x4d   : > { %2209 = dma.hbm_to_vmem [thread:$0]  (!%p2733_p5), %s3168_s7, 32, %s2737_s25, [#allocation12]  }
  0x4e   : > { %s2463_s30 = scalar_lea.hbm %s3162_s1, 16 }
  0x4f   : > { %p2464_p13 = scmp.ne.s32.totalorder %s3162_s1, %s2463_s30  ;;  %p2470_p4 = scmp.lt.u32.totalorder %s2463_s30, %s3162_s1 }
  0x51   : > { %p2466_p0 = pnand %p2464_p13, %p2749_p7 }
  0x53   : > { %p2467_p1 = pneg %p2466_p0 }
  0x55   : > { %p2472_p6 = pnand %p2470_p4, %p2467_p1 }
  0x57   : > { %2475 = shalt.err (!%p2472_p6)
}
  0x58   : > { %s2476_s25 = scalar_lea.vmem %s2739_s28, 16  ;;  %s2483_s18 = scalar_lea.vmem %s2739_s28, 32 }
  0x59   : > { %p2477_p8 = scmp.ne.s32.totalorder %s2739_s28, %s2476_s25  ;;  %p2484_p11 = scmp.lt.s32.totalorder %s2739_s28, %s2739_s28 }
  0x5a   : > { %p2485_p12 = scmp.lt.s32.totalorder %s2483_s18, %s2476_s25 }
  0x5b   : > { %p2479_p9 = pnand %p2477_p8, %p2749_p7 }
  0x5c   : > { %p2486_p13 = por %p2485_p12, %p2484_p11 }
  0x5d   : > { %p2480_p10 = pneg %p2479_p9 }
  0x5f   : > { %p2487_p0 = pnand %p2486_p13, %p2480_p10 }
  0x61   : > { %2490 = shalt.err (!%p2487_p0)
}
  0x62   : > { %2194 = dma.hbm_to_vmem [thread:$0]  (!%p2733_p5), %s3162_s1, 16, %s2739_s28, [#allocation4]  }
  0x63   : > { %s2635_s19 = smov [#allocation7]   ;;  %s2491_s30 = scalar_lea.hbm %s3164_s3, 3072 }
  0x64   : > { %s333_s24 = sshll.u32 %s2635_s19, 4  ;;  %p2492_p1 = scmp.ne.s32.totalorder %s3164_s3, %s2491_s30  ;;  %s334_s24 = int_to_ptr.vmem [resolvable:$true] %s333_s24 }
  0x65   : > { %p2498_p8 = scmp.lt.u32.totalorder %s2491_s30, %s3164_s3 }
  0x66   : > { %p2494_p4 = pnand %p2492_p1, %p2749_p7 }
  0x68   : > { %p2495_p6 = pneg %p2494_p4 }
  0x6a   : > { %p2500_p9 = pnand %p2498_p8, %p2495_p6 }
  0x6c   : > { %2503 = shalt.err (!%p2500_p9)
}
  0x6d   : > { %s2504_s28 = scalar_lea.vmem %s334_s24, 3072  ;;  %p2512_p13 = scmp.lt.s32.totalorder %s334_s24, %s334_s24 }
  0x6e   : > { %p2505_p10 = scmp.ne.s32.totalorder %s334_s24, %s2504_s28  ;;  %p2513_p0 = scmp.lt.s32.totalorder %s2504_s28, %s2504_s28 }
  0x70   : > { %p2507_p11 = pnand %p2505_p10, %p2749_p7  ;;  %p2514_p2 = por %p2513_p0, %p2512_p13 }
  0x72   : > { %p2508_p12 = pneg %p2507_p11 }
  0x74   : > { %p2515_p3 = pnand %p2514_p2, %p2508_p12 }
  0x76   : > { %2518 = shalt.err (!%p2515_p3)
}
  0x77   : > { %s2636_s25 = smov 192   ;;  %s2637_s18 = smov 12  }
  0x78   : > { %2200 = dma.hbm_to_vmem [thread:$0]  (!%p2733_p5), %s3164_s3, 3072, %s334_s24, [#allocation6], %s2636_s25, %s2636_s25, %s2637_s18  }
  0x79   : > { %s2638_s19 = smov [#allocation10]   ;;  %s2639_s29 = smov [#allocation13]  }
  0x7a   : > { %s358_s27 = sshll.u32 %s2638_s19, 4  ;;  %s382_s30 = sshll.u32 %s2639_s29, 4  ;;  %s359_s27 = int_to_ptr.vmem [resolvable:$true] %s358_s27  ;;  %s2860_s30 = int_to_ptr.vmem [resolvable:$true] %s382_s30 }
  0x7b   : > { %s2519_s14 = scalar_lea.hbm %s3166_s5, 16 }
  0x7c   : > { %p2520_p2 = scmp.ne.s32.totalorder %s3166_s5, %s2519_s14  ;;  %p2526_p4 = scmp.lt.u32.totalorder %s2519_s14, %s3166_s5 }
  0x7e   : > { %p2522_p3 = pnand %p2520_p2, %p2749_p7 }
  0x80   : > { %p2523_p1 = pneg %p2522_p3 }
  0x82   : > { %p2528_p6 = pnand %p2526_p4, %p2523_p1 }
  0x84   : > { %2531 = shalt.err (!%p2528_p6)
}
  0x85   : > { %s2532_s25 = scalar_lea.vmem %s359_s27, 16  ;;  %s2539_s18 = scalar_lea.vmem %s359_s27, 32 }
  0x86   : > { %p2533_p8 = scmp.ne.s32.totalorder %s359_s27, %s2532_s25  ;;  %p2540_p11 = scmp.lt.s32.totalorder %s359_s27, %s359_s27 }
  0x87   : > { %p2541_p12 = scmp.lt.s32.totalorder %s2539_s18, %s2532_s25 }
  0x88   : > { %p2535_p9 = pnand %p2533_p8, %p2749_p7 }
  0x89   : > { %p2542_p13 = por %p2541_p12, %p2540_p11 }
  0x8a   : > { %p2536_p10 = pneg %p2535_p9 }
  0x8c   : > { %p2543_p0 = pnand %p2542_p13, %p2536_p10 }
  0x8e   : > { %2546 = shalt.err (!%p2543_p0)
}
  0x8f   : > { %2206 = dma.hbm_to_vmem [thread:$0]  (!%p2733_p5), %s3166_s5, 16, %s359_s27, [#allocation9]  }
  0x90   : > { %s2547_s13 = scalar_lea.hbm %s3169_s8, 2048 }
  0x91   : > { %p2548_p2 = scmp.ne.s32.totalorder %s3169_s8, %s2547_s13  ;;  %p2554_p4 = scmp.lt.u32.totalorder %s2547_s13, %s3169_s8 }
  0x93   : > { %p2550_p3 = pnand %p2548_p2, %p2749_p7 }
  0x95   : > { %p2551_p1 = pneg %p2550_p3 }
  0x97   : > { %p2556_p6 = pnand %p2554_p4, %p2551_p1 }
  0x99   : > { %2559 = shalt.err (!%p2556_p6)
}
  0x9a   : > { %s2560_s27 = scalar_lea.vmem %s2860_s30, 2048  ;;  %p2568_p11 = scmp.lt.s32.totalorder %s2860_s30, %s2860_s30 }
  0x9b   : > { %p2561_p8 = scmp.ne.s32.totalorder %s2860_s30, %s2560_s27  ;;  %p2569_p12 = scmp.lt.s32.totalorder %s2560_s27, %s2560_s27 }
  0x9d   : > { %p2563_p9 = pnand %p2561_p8, %p2749_p7  ;;  %p2570_p13 = por %p2569_p12, %p2568_p11 }
  0x9f   : > { %p2564_p10 = pneg %p2563_p9 }
  0xa1   : > { %p2571_p0 = pnand %p2570_p13, %p2564_p10 }
  0xa3   : > { %2574 = shalt.err (!%p2571_p0)
}
  0xa4   : > { %s2640_s24 = smov 64   ;;  %s2641_s25 = smov 4  }
  0xa5   : > { %2212 = dma.hbm_to_vmem [thread:$0]  (!%p2733_p5), %s3169_s8, 2048, %s2860_s30, [#allocation12], %s2640_s24, %s2640_s24, %s2641_s25  }
  0xa6   : > { %s2642_s19 = smov [#allocation14]   ;;  %s2575_s14 = scalar_lea.hbm %s3170_s9, 16 }
  0xa7   : > { %s396_s29 = sshll.u32 %s2642_s19, 4  ;;  %p2576_p2 = scmp.ne.s32.totalorder %s3170_s9, %s2575_s14  ;;  %s397_s29 = int_to_ptr.vmem [resolvable:$true] %s396_s29 }
  0xa8   : > { %p2582_p4 = scmp.lt.u32.totalorder %s2575_s14, %s3170_s9 }
  0xa9   : > { %p2578_p3 = pnand %p2576_p2, %p2749_p7 }
  0xab   : > { %p2579_p1 = pneg %p2578_p3 }
  0xad   : > { %p2584_p6 = pnand %p2582_p4, %p2579_p1 }
  0xaf   : > { %2587 = shalt.err (!%p2584_p6)
}
  0xb0   : > { %s2588_s30 = scalar_lea.vmem %s397_s29, 16  ;;  %s2595_s24 = scalar_lea.vmem %s397_s29, 32 }
  0xb1   : > { %p2589_p8 = scmp.ne.s32.totalorder %s397_s29, %s2588_s30  ;;  %p2596_p11 = scmp.lt.s32.totalorder %s397_s29, %s397_s29 }
  0xb2   : > { %p2597_p12 = scmp.lt.s32.totalorder %s2595_s24, %s2588_s30 }
  0xb3   : > { %p2591_p9 = pnand %p2589_p8, %p2749_p7 }
  0xb4   : > { %p2598_p13 = por %p2597_p12, %p2596_p11 }
  0xb5   : > { %p2592_p10 = pneg %p2591_p9 }
  0xb7   : > { %p2599_p0 = pnand %p2598_p13, %p2592_p10 }
  0xb9   : > { %2602 = shalt.err (!%p2599_p0)
}
  0xba   : > { %2215 = dma.hbm_to_vmem [thread:$0]  (!%p2733_p5), %s3170_s9, 16, %s397_s29, [#allocation15]  }
  0xbb   : > { %p3178_p2 = scmp.ne.s32.totalorder %s3175_s21, 0 }
  0xbc   : > { %p3179_p3 = scmp.eq.s32.totalorder (!%p3178_p2), %s2716_s20, 0 }
  0xbd   : > { %417 = sbr.rel (%p3178_p2) target bundleno = 2599 (0xa27), region = 60 }
  0xc4   : > { %2608 = dma.done.wait (%p3179_p3), [#allocation4], 16   ;;  %p3180_p7 = pmov %p3179_p3 }
  0xc5   : > { %p3181_p1 = pmov %p3179_p3 }
  0xc6   : > { %2610 = vsyncadd (%p3180_p7), [#allocation4], 4294967280 }
  0xc7   : > { %2612 = dma.done.wait (%p3181_p1), [#allocation6], 3088   ;;  %p3182_p4 = pmov %p3181_p1 }
  0xc8   : > { %p3183_p6 = pmov %p3181_p1 }
  0xc9   : > { %2614 = vsyncadd (%p3182_p4), [#allocation6], 4294964208 }
  0xca   : > { %2616 = dma.done.wait (%p3183_p6), [#allocation9], 32   ;;  %p3184_p5 = pmov %p3181_p1 }
  0xcb   : > { %p3185_p8 = pmov %p3181_p1 }
  0xcc   : > { %2618 = vsyncadd (%p3184_p5), [#allocation9], 4294967264 }
  0xcd   : > { %2620 = dma.done.wait (%p3185_p8), [#allocation12], 2080   ;;  %p3186_p9 = pmov %p3181_p1 }
  0xce   : > { %p3187_p10 = pmov %p3181_p1 }
  0xcf   : > { %2622 = vsyncadd (%p3186_p9), [#allocation12], 4294965216 }
  0xd0   : > { %2624 = dma.done.wait (%p3187_p10), [#allocation15], 16   ;;  %p3188_p11 = pmov %p3181_p1 }
  0xd1   : > { %p490_p12 = scmp.lt.s32.totalorder %s2716_s20, 1  ;;  %vm512_vm0 = vcmask 1042432   ;;  %v2259_v3 = vld [vmem:[#allocation7 + $0x4] ss:$12 sps:$4 sm:$0xff]   ;;  %v2261_v4 = vld [vmem:[#allocation7] ss:$12 sps:$4 sm:$0xff]  }
  0xd2   : > { %2626 = vsyncadd (%p3188_p11), [#allocation15], 4294967280  ;;  %v2643_v5 = vmov 0.0   ;;  %v2262_v6 = vld [vmem:[#allocation7 + $0x8] ss:$12 sps:$4 sm:$0xff]   ;;  %713 = vmatprep.subr.bf16.mxu0 %v2259_v3  ;;  %v2644_v32 = vmov 0  }
  0xd3   : > { %s3190_s20 = smov (!%p490_p12, %s2716_s20), 1  ;;  %2091 = vmatprep.subr.bf16.mxu1 %v2643_v5  ;;  %v2263_v7 = vld [vmem:[#allocation7 + $0x1c] ss:$12 sps:$4 sm:$0xff]   ;;  %714 = vmatpush1.bf16.msra.mxu0 %v2261_v4  ;;  %v2265_v17 = vld [vmem:[#allocation7 + $0x18] ss:$12 sps:$4 sm:$0xff]   ;;  %vm2645_vm1 = vmmov 0  }
  0xd4   : > { %s2041_s21 = sshll.u32 %s3190_s20, 4  ;;  %2092 = vmatpush3.bf16.msra.mxu1 %v2262_v6  ;;  %715 = vmatprep.subr.bf16.mxu0 %v2263_v7  ;;  %v2266_v18 = vld [vmem:[#allocation7 + $0x20] ss:$12 sps:$4 sm:$0xff]   ;;  %v2269_v20 = vld [vmem:[#allocation7 + $0x30] ss:$12 sps:$4 sm:$0xff]   ;;  %vm880_vm2 = vcmask 1044480  }
  0xd5   : > { %s494_s23 = scalar_lea.vmem %s3161_s0, %s2041_s21  ;;  %2093 = vmatprep.subr.bf16.mxu1 %v2643_v5  ;;  %v2267_v19 = vld [vmem:[#allocation7 + $0x34] ss:$12 sps:$4 sm:$0xff]   ;;  %v2270_v21 = vld [vmem:[#allocation7 + $0x38] ss:$12 sps:$4 sm:$0xff]   ;;  %v2274_v24 = vld [vmem:[#allocation7 + $0x50] ss:$12 sps:$4 sm:$0xff]   ;;  %745 = vmatprep.mubr.bf16.mxu0 %v2644_v32  ;;  %s499_s30 = scalar_lea.vmem %s3171_s10, %s2041_s21 }
  0xd6   : > { %v2953_v0 = vld [vmem:[%s494_s23 + $0x8] sm:$0x7]  ;;  %v2957_v2 = vld [vmem:[%s494_s23] sm:$0xff]  ;;  %v2275_v25 = vld [vmem:[#allocation7 + $0x64] ss:$12 sps:$4 sm:$0xff]   ;;  %2107 = vmatprep.mubr.msk.bf16.mxu1 %vm2645_vm1, %v2643_v5  ;;  %vm881_vm3 = vcmask 1045504  }
  0xd7   : > { %v513_v1 = vsel %vm512_vm0, %v2953_v0, 0.0  ;;  %716 = vmatpush1.bf16.msra.mxu0 %v2265_v17  ;;  %v2271_v22 = vld [vmem:[#allocation7 + $0x4c] ss:$12 sps:$4 sm:$0xff]   ;;  %v2273_v23 = vld [vmem:[#allocation7 + $0x48] ss:$12 sps:$4 sm:$0xff]   ;;  %v2646_v55 = vmov 65535  }
  0xd8   : > { %514 = vadd.xlane.f32.xlu0 %v513_v1  ;;  %2094 = vmatpush3.bf16.msra.mxu1 %v2266_v18  ;;  %v2277_v26 = vld [vmem:[#allocation7 + $0x60] ss:$12 sps:$4 sm:$0xff]   ;;  %v2278_v27 = vld [vmem:[#allocation7 + $0x68] ss:$12 sps:$4 sm:$0xff]   ;;  %v2281_v29 = vld [vmem:[#allocation7 + $0x78] ss:$12 sps:$4 sm:$0xff]  }
  0xd9   : > { %2095 = vmatprep.subr.bf16.mxu1 %v2643_v5  ;;  %717 = vmatprep.subr.bf16.mxu0 %v2267_v19  ;;  %v2279_v28 = vld [vmem:[#allocation7 + $0x7c] ss:$12 sps:$4 sm:$0xff]   ;;  %v2282_v30 = vld [vmem:[#allocation7 + $0x80] ss:$12 sps:$4 sm:$0xff]   ;;  %v2286_v34 = vld [vmem:[#allocation7 + $0x98] ss:$12 sps:$4 sm:$0xff]  }
  0xda   : > { %v2283_v31 = vld [vmem:[#allocation7 + $0x94] ss:$12 sps:$4 sm:$0xff]   ;;  %v2285_v33 = vld [vmem:[#allocation7 + $0x90] ss:$12 sps:$4 sm:$0xff]   ;;  %v2287_v35 = vld [vmem:[#allocation7 + $0xac] ss:$12 sps:$4 sm:$0xff]  }
  0xdb   : > { %718 = vmatpush1.bf16.msra.mxu0 %v2269_v20  ;;  %v2289_v36 = vld [vmem:[#allocation7 + $0xa8] ss:$12 sps:$4 sm:$0xff]   ;;  %v2290_v37 = vld [vmem:[#allocation7 + $0xb0] ss:$12 sps:$4 sm:$0xff]   ;;  %v882_v56 = vsel %vm880_vm2, 4294967295, %v2646_v55  ;;  %vm800_vm4 = vcmask 261120  }
  0xdc   : > { %510 = vadd.xlane.f32.xlu0 %v2957_v2  ;;  %2096 = vmatpush3.bf16.msra.mxu1 %v2270_v21  ;;  %v1964_v46 = vld [vmem:[#allocation3] ss:$0 sm:$0xff]  ;;  %v1965_v50 = vld [vmem:[#allocation5] ss:$0 sm:$0xff]  ;;  %v2990_v63 = vsel %vm881_vm3, %v882_v56, 0  ;;  %s2647_s19 = smov 96  }
  0xdd   : > { %2097 = vmatprep.subr.bf16.mxu1 %v2643_v5  ;;  %719 = vmatprep.subr.bf16.mxu0 %v2271_v22  ;;  %s2648_s29 = smov 64   ;;  %s2649_s12 = smov 32   ;;  %vm850_vm5 = vcmask 89088   ;;  %vm854_vm6 = vcmask 83968   ;;  %vm929_vm7 = vcmask 256000   ;;  %vm1070_vm8 = vcmask 523520  }
  0xde   : > { %s2043_s13 = sshll.u32 %s3190_s20, 6  ;;  %vm1072_vm9 = vcmask 518400   ;;  %vm1210_vm10 = vcmask 785920   ;;  %vm1212_vm11 = vcmask 780800   ;;  %vm1352_vm12 = vcmask 1043200  }
  0xdf   : > { %720 = vmatpush1.bf16.msra.mxu0 %v2273_v23  ;;  %s3045_s28 = scalar_lea.vmem %s3172_s11, %s2043_s13  ;;  %vm1350_vm13 = vcmask 1048320  }
  0xe0   : > { %2098 = vmatpush3.bf16.msra.mxu1 %v2274_v24  ;;  %721 = vmatprep.subr.bf16.mxu0 %v2275_v25 }
  0xe1   : > { %2099 = vmatprep.subr.bf16.mxu1 %v2643_v5 }
  0xe3   : > { %722 = vmatpush1.bf16.msra.mxu0 %v2277_v26 }
  0xe4   : > { %2100 = vmatpush3.bf16.msra.mxu1 %v2278_v27  ;;  %723 = vmatprep.subr.bf16.mxu0 %v2279_v28 }
  0xe5   : > { %2101 = vmatprep.subr.bf16.mxu1 %v2643_v5 }
  0xe7   : > { %724 = vmatpush1.bf16.msra.mxu0 %v2281_v29 }
  0xe8   : > { %2102 = vmatpush3.bf16.msra.mxu1 %v2282_v30  ;;  %725 = vmatprep.subr.bf16.mxu0 %v2283_v31 }
  0xe9   : > { %2103 = vmatprep.subr.bf16.mxu1 %v2643_v5 }
  0xeb   : > { %726 = vmatpush1.bf16.msra.mxu0 %v2285_v33 }
  0xec   : > { %2104 = vmatpush3.bf16.msra.mxu1 %v2286_v34  ;;  %727 = vmatprep.subr.bf16.mxu0 %v2287_v35 }
  0xed   : > { %2105 = vmatprep.subr.bf16.mxu1 %v2643_v5 }
  0xef   : > { %728 = vmatpush1.bf16.msra.mxu0 %v2289_v36 }
  0xf0   : > { %2106 = vmatpush3.bf16.msra.mxu1 %v2290_v37  ;;  %2111 = vmatprep.subr.bf16.mxu0 %v2643_v5 }
  0xf1   : > { %2117 = vmatprep.subr.bf16.mxu1 %v2643_v5 }
 0x165   : > { %v515_v8 = vpop.xlane.xlu0 %514 }
 0x166   : > { %v518_v9 = vmul.f32 0.0078125, %v515_v8 }
 0x168   : > { %v2963_v12 = vsub.f32 %v2953_v0, %v518_v9 }
 0x169   : > { %v511_v10 = vpop.xlane.xlu0 %510 }
 0x16a   : > { %v517_v11 = vmul.f32 0.0078125, %v511_v10  ;;  %v522_v15 = vmul.f32 %v2963_v12, %v2963_v12 }
 0x16c   : > { %v2966_v13 = vsub.f32 %v2957_v2, %v517_v11  ;;  %v525_v16 = vsel %vm512_vm0, %v522_v15, 0.0 }
 0x16e   : > { %v521_v14 = vmul.f32 %v2966_v13, %v2966_v13 }
 0x170   : > { %523 = vadd.xlane.f32.xlu1 %v521_v14 }
 0x174   : > { %526 = vadd.xlane.f32.xlu1 %v525_v16 }
 0x1fd   : > { %v524_v38 = vpop.xlane.xlu1 %523 }
 0x1fe   : > { %v528_v39 = vmul.f32 0.0078125, %v524_v38 }
 0x200   : > { %v530_v40 = vadd.f32 1e-05, %v528_v39 }
 0x201   : > { %v527_v41 = vpop.xlane.xlu1 %526 }
 0x202   : > { %2331 = vrsqrt.f32 %v530_v40  ;;  %v529_v42 = vmul.f32 0.0078125, %v527_v41 }
 0x204   : > { %v531_v43 = vadd.f32 1e-05, %v529_v42 }
 0x206   : > { %2333 = vrsqrt.f32 %v531_v43 }
 0x20c   : > { %v2332_v44 = vpop.eup %2331 }
 0x20d   : > { %v534_v45 = vmul.f32 %v2332_v44, %v2966_v13 }
 0x20f   : > { %v542_v49 = vmul.f32 %v1964_v46, %v534_v45 }
 0x210   : > { %v2334_v47 = vpop.eup %2333 }
 0x211   : > { %v535_v48 = vmul.f32 %v2334_v47, %v2963_v12  ;;  %v550_v52 = vadd.f32 %v1965_v50, %v542_v49 }
 0x213   : > { %v543_v51 = vmul.f32 %v1964_v46, %v535_v48 }
 0x215   : > { %v551_v53 = vadd.f32 %v1965_v50, %v543_v51 }
 0x217   : > { %v552_v54 = vpack.c.bf16 %v551_v53, %v550_v52 }
 0x219   : > { %746 = vmatmul.mubr.bf16.vlgmr.msra.gmra.mrb[0].mxu0 %v552_v54  ;;  %2108 = vmatmul.mubr.bf16.vlgmr.msra.gmra.mrb[0].mxu1 %v552_v54 }
 0x21a   : > { %2113 = vmatprep.mubr.msk.bf16.mxu0 %vm2645_vm1, %v2643_v5  ;;  %2119 = vmatprep.mubr.msk.bf16.mxu1 %vm2645_vm1, %v2643_v5 }
 0x2ec   : > { %v747_v57 = vpop.f32.mrb[0].mxu0  ;;  %v790_v58 = vpop.f32.mrb[0].mxu1 }
 0x2ed   : > { %v749_v59 = vpop.f32.mrb[1].mxu0  ;;  %v2109_v60 = vpop.f32.mrb[1].mxu1 }
 0x2ee   : > { %v751_v61 = vpop.f32.mrb[2].mxu0  ;;  %v793_v62 = vpop.f32.mrb[2].mxu1 }
 0x2ef   : > { %v797_v1 = vpack.c.bf16 %v751_v61, %v747_v57  ;;  %v2992_v3 = vpack.c.bf16 %v793_v62, %v790_v58  ;;  %v753_v4 = vpop.f32.mrb[3].mxu0  ;;  %v2110_v6 = vpop.f32.mrb[3].mxu1 }
 0x2f0   : > { %v798_v7 = vpack.c.bf16 %v753_v4, %v749_v59 }
 0x2f1   : > { %932 = vrot.lane.b32.xlu1 %v797_v1, %s2647_s19  ;;  %v885_v8 = vand.u32 %v2990_v63, %v2992_v3 }
 0x2f2   : > { %935 = vrot.lane.b32.xlu0 %v798_v7, %s2647_s19  ;;  %v805_v9 = vsel %vm800_vm4, %v798_v7, 0 }
 0x2f3   : > { %2112 = vmatpush3.bf16.xpose.msra.mxu0 %v805_v9  ;;  %2118 = vmatpush3.bf16.msra.mxu1 %v885_v8 }
 0x2f4   : > { %2123 = vmatprep.subr.bf16.mxu0 %v2643_v5  ;;  %2129 = vmatprep.subr.bf16.mxu1 %v2643_v5 }
 0x2f5   : > { %1076 = vrot.lane.b32.xlu1 %v798_v7, %s2648_s29 }
 0x2f6   : > { %1216 = vrot.lane.b32.xlu0 %v798_v7, %s2649_s12 }
 0x2f9   : > { %1074 = vrot.lane.b32.xlu1 %v797_v1, %s2648_s29 }
 0x2fa   : > { %2114 = vmatmul.mubr.msk.bf16.vlgmr.msra.gmra.mrb[4].mxu0 %vm800_vm4, %v797_v1 }
 0x2fb   : > { %2125 = vmatprep.mubr.msk.bf16.mxu0 %vm2645_vm1, %v2643_v5 }
 0x2fd   : > { %1214 = vrot.lane.b32.xlu1 %v797_v1, %s2649_s12 }
 0x363   : > { %v933_v10 = vpop.permute.xlu1 %932 }
 0x364   : > { %v936_v11 = vpop.permute.xlu0 %935 }
 0x365   : > { %v941_v12 = vsel %vm800_vm4, %v936_v11, 0 }
 0x366   : > { %2124 = vmatpush3.bf16.xpose.msra.mxu0 %v941_v12 }
 0x367   : > { %2135 = vmatprep.subr.bf16.mxu0 %v2643_v5  ;;  %v1077_v13 = vpop.permute.xlu1 %1076 }
 0x368   : > { %v1082_v14 = vsel %vm800_vm4, %v1077_v13, 0  ;;  %v1217_v15 = vpop.permute.xlu0 %1216 }
 0x369   : > { %v1222_v17 = vsel %vm800_vm4, %v1217_v15, 0 }
 0x36b   : > { %v1075_v16 = vpop.permute.xlu1 %1074 }
 0x36d   : > { %2126 = vmatmul.mubr.msk.bf16.vlgmr.msra.gmra.mrb[8].mxu0 %vm800_vm4, %v933_v10 }
 0x36e   : > { %2136 = vmatpush3.bf16.xpose.msra.mxu0 %v1082_v14  ;;  %2137 = vmatprep.mubr.msk.bf16.mxu0 %vm2645_vm1, %v2643_v5 }
 0x36f   : > { %2147 = vmatprep.subr.bf16.mxu0 %v2643_v5  ;;  %v1215_v18 = vpop.permute.xlu1 %1214 }
 0x375   : > { %2138 = vmatmul.mubr.msk.bf16.vlgmr.msra.gmra.mrb[12].mxu0 %vm800_vm4, %v1075_v16 }
 0x376   : > { %2148 = vmatpush3.bf16.xpose.msra.mxu0 %v1222_v17  ;;  %2149 = vmatprep.mubr.msk.bf16.mxu0 %vm2645_vm1, %v2643_v5 }
 0x37d   : > { %2150 = vmatmul.mubr.msk.bf16.vlgmr.msra.gmra.mrb[16].mxu0 %vm800_vm4, %v1215_v18 }
 0x37e   : > { %1541 = vmatprep.mubr.bf16.mxu0 %v2644_v32 }
 0x3cd   : > { %v841_v19 = vpop.f32.mrb[4].mxu0 }
 0x3ce   : > { %v848_v20 = vmul.f32 0.17677669, %v841_v19  ;;  %v2115_v21 = vpop.f32.mrb[5].mxu0 }
 0x3cf   : > { %v844_v22 = vpop.f32.mrb[6].mxu0 }
 0x3d0   : > { %v849_v23 = vmul.f32 0.17677669, %v844_v22  ;;  %v2116_v24 = vpop.f32.mrb[7].mxu0  ;;  %v851_v25 = vsel %vm850_vm5, %v848_v20, -inf }
 0x3d1   : > { %852 = vmax.xlane.f32.xlu0 %v851_v25 }
 0x3d2   : > { %v855_v26 = vsel %vm854_vm6, %v849_v23, -inf }
 0x3d3   : > { %856 = vmax.xlane.f32.xlu1 %v855_v26 }
 0x440   : > { %v977_v27 = vpop.f32.mrb[8].mxu0 }
 0x441   : > { %v984_v28 = vmul.f32 0.17677669, %v977_v27  ;;  %v2127_v29 = vpop.f32.mrb[9].mxu0 }
 0x442   : > { %v980_v30 = vpop.f32.mrb[10].mxu0 }
 0x443   : > { %v985_v31 = vmul.f32 0.17677669, %v980_v30  ;;  %v2128_v32 = vpop.f32.mrb[11].mxu0  ;;  %v986_v33 = vsel %vm850_vm5, %v984_v28, -inf }
 0x444   : > { %987 = vmax.xlane.f32.xlu0 %v986_v33 }
 0x445   : > { %v989_v34 = vsel %vm854_vm6, %v985_v31, -inf }
 0x448   : > { %990 = vmax.xlane.f32.xlu0 %v989_v34  ;;  %v1118_v35 = vpop.f32.mrb[12].mxu0 }
 0x449   : > { %v1125_v36 = vmul.f32 0.17677669, %v1118_v35  ;;  %v2139_v37 = vpop.f32.mrb[13].mxu0 }
 0x44a   : > { %v1121_v38 = vpop.f32.mrb[14].mxu0 }
 0x44b   : > { %v1126_v39 = vmul.f32 0.17677669, %v1121_v38  ;;  %v2140_v40 = vpop.f32.mrb[15].mxu0  ;;  %v1127_v41 = vsel %vm850_vm5, %v1125_v36, -inf }
 0x44c   : > { %1128 = vmax.xlane.f32.xlu0 %v1127_v41 }
 0x44d   : > { %v1130_v42 = vsel %vm854_vm6, %v1126_v39, -inf }
 0x44e   : > { %1131 = vmax.xlane.f32.xlu1 %v1130_v42 }
 0x450   : > { %v1258_v43 = vpop.f32.mrb[16].mxu0 }
 0x451   : > { %v1265_v44 = vmul.f32 0.17677669, %v1258_v43  ;;  %v2151_v45 = vpop.f32.mrb[17].mxu0 }
 0x452   : > { %v1261_v46 = vpop.f32.mrb[18].mxu0 }
 0x453   : > { %v3027_v47 = vmul.f32 0.17677669, %v1261_v46  ;;  %v2152_v48 = vpop.f32.mrb[19].mxu0  ;;  %v1267_v49 = vsel %vm850_vm5, %v1265_v44, -inf }
 0x454   : > { %1268 = vmax.xlane.f32.xlu0 %v1267_v49 }
 0x455   : > { %v1270_v50 = vsel %vm854_vm6, %v3027_v47, -inf }
 0x456   : > { %1271 = vmax.xlane.f32.xlu1 %v1270_v50 }
 0x45e   : > { %v853_v51 = vpop.xlane.xlu0 %852 }
 0x45f   : > { %v858_v52 = vsub.f32 %v848_v20, %v853_v51 }
 0x460   : > { %v857_v53 = vpop.xlane.xlu1 %856 }
 0x461   : > { %v860_v54 = vmul.f32 1.442695, %v858_v52  ;;  %v859_v55 = vsub.f32 %v849_v23, %v857_v53 }
 0x463   : > { %2335 = vpow2.f32 %v860_v54  ;;  %v862_v56 = vmul.f32 1.442695, %v859_v55 }
 0x465   : > { %2337 = vpow2.f32 %v862_v56 }
 0x46d   : > { %v2336_v57 = vpop.eup %2335 }
 0x46e   : > { %v864_v58 = vsel %vm850_vm5, %v2336_v57, 0.0 }
 0x46f   : > { %v2338_v59 = vpop.eup %2337  ;;  %865 = vadd.xlane.f32.xlu0 %v864_v58 }
 0x470   : > { %v867_v60 = vsel %vm854_vm6, %v2338_v59, 0.0 }
 0x471   : > { %868 = vadd.xlane.f32.xlu1 %v867_v60 }
 0x4d1   : > { %v988_v61 = vpop.xlane.xlu0 %987 }
 0x4d2   : > { %v992_v62 = vsub.f32 %v984_v28, %v988_v61 }
 0x4d4   : > { %v994_v1 = vmul.f32 1.442695, %v992_v62 }
 0x4d5   : > { %v991_v4 = vpop.xlane.xlu0 %990 }
 0x4d6   : > { %2339 = vpow2.f32 %v994_v1  ;;  %v993_v6 = vsub.f32 %v985_v31, %v991_v4 }
 0x4d8   : > { %v996_v7 = vmul.f32 1.442695, %v993_v6 }
 0x4d9   : > { %v1129_v8 = vpop.xlane.xlu0 %1128 }
 0x4da   : > { %2341 = vpow2.f32 %v996_v7  ;;  %v1133_v9 = vsub.f32 %v1125_v36, %v1129_v8 }
 0x4db   : > { %v1132_v10 = vpop.xlane.xlu1 %1131 }
 0x4dc   : > { %v1135_v11 = vmul.f32 1.442695, %v1133_v9  ;;  %v1134_v12 = vsub.f32 %v1126_v39, %v1132_v10 }
 0x4de   : > { %2343 = vpow2.f32 %v1135_v11  ;;  %v1137_v13 = vmul.f32 1.442695, %v1134_v12 }
 0x4e0   : > { %v2340_v14 = vpop.eup %2339  ;;  %2345 = vpow2.f32 %v1137_v13 }
 0x4e1   : > { %v1269_v15 = vpop.xlane.xlu0 %1268  ;;  %v998_v16 = vsel %vm850_vm5, %v2340_v14, 0.0 }
 0x4e2   : > { %v1273_v17 = vsub.f32 %v1265_v44, %v1269_v15  ;;  %999 = vadd.xlane.f32.xlu0 %v998_v16 }
 0x4e3   : > { %v1272_v27 = vpop.xlane.xlu1 %1271 }
 0x4e4   : > { %v2342_v18 = vpop.eup %2341  ;;  %v1275_v19 = vmul.f32 1.442695, %v1273_v17  ;;  %v1274_v34 = vsub.f32 %v3027_v47, %v1272_v27 }
 0x4e5   : > { %v1001_v20 = vsel %vm854_vm6, %v2342_v18, 0.0 }
 0x4e6   : > { %2347 = vpow2.f32 %v1275_v19  ;;  %1002 = vadd.xlane.f32.xlu1 %v1001_v20  ;;  %v1277_v36 = vmul.f32 1.442695, %v1274_v34 }
 0x4e8   : > { %v2344_v21 = vpop.eup %2343 }
 0x4e9   : > { %v1139_v22 = vsel %vm850_vm5, %v2344_v21, 0.0 }
 0x4ea   : > { %v2346_v23 = vpop.eup %2345  ;;  %1140 = vadd.xlane.f32.xlu0 %v1139_v22 }
 0x4eb   : > { %v1142_v24 = vsel %vm854_vm6, %v2346_v23, 0.0 }
 0x4ec   : > { %1143 = vadd.xlane.f32.xlu1 %v1142_v24 }
 0x4f0   : > { %v2348_v25 = vpop.eup %2347 }
 0x4f1   : > { %v1279_v26 = vsel %vm850_vm5, %v2348_v25, 0.0 }
 0x4f2   : > { %1280 = vadd.xlane.f32.xlu0 %v1279_v26 }
 0x4fc   : > { %v866_v28 = vpop.xlane.xlu0 %865 }
 0x4fd   : > { %2349 = vrcp.f32 %v866_v28  ;;  %1153 = vrot.lane.b32.xlu1 %v2992_v3, %s2648_s29 }
 0x4fe   : > { %v869_v29 = vpop.xlane.xlu1 %868 }
 0x4ff   : > { %2351 = vrcp.f32 %v869_v29 }
 0x500   : > { %2353 = vpow2.f32 %v1277_v36 }
 0x507   : > { %v2350_v30 = vpop.eup %2349 }
 0x508   : > { %v872_v31 = vmul.f32 %v2350_v30, %v2336_v57  ;;  %1013 = vrot.lane.b32.xlu0 %v2992_v3, %s2647_s19 }
 0x509   : > { %v2352_v32 = vpop.eup %2351 }
 0x50a   : > { %874 = vst.msk [vmem:[%s3045_s28] sm:$0xff] %vm850_vm5, %v872_v31  ;;  %v873_v33 = vmul.f32 %v2352_v32, %v2338_v59  ;;  %v2354_v37 = vpop.eup %2353  ;;  %v2293_v32 = vld [vmem:[%s3167_s6 + $0x4] ss:$8 sps:$4 sm:$0xff]  }
 0x50b   : > { %v1282_v38 = vsel %vm854_vm6, %v2354_v37, 0.0  ;;  %1509 = vmatprep.subr.bf16.mxu0 %v2293_v32 }
 0x50c   : > { %875 = vst.msk [vmem:[%s3045_s28 + $0x8] sm:$0x7] %vm854_vm6, %v873_v33  ;;  %v876_v35 = vpack.c.bf16 %v873_v33, %v872_v31  ;;  %v2291_v31 = vld [vmem:[%s3167_s6] ss:$8 sps:$4 sm:$0xff]  }
 0x50d   : > { %1510 = vmatpush1.bf16.msra.mxu0 %v2291_v31 }
 0x50e   : > { %2120 = vmatmul.mubr.msk.bf16.vlgmr.msra.gmra.mrb[4].mxu1 %vm850_vm5, %v876_v35 }
 0x50f   : > { %2131 = vmatprep.mubr.msk.bf16.mxu1 %vm2645_vm1, %v2643_v5 }
 0x521   : > { %1283 = vadd.xlane.f32.xlu1 %v1282_v38 }
 0x532   : > { %1293 = vrot.lane.b32.xlu1 %v2992_v3, %s2649_s12 }
 0x56f   : > { %v1000_v39 = vpop.xlane.xlu0 %999 }
 0x570   : > { %2355 = vrcp.f32 %v1000_v39 }
 0x573   : > { %v1003_v40 = vpop.xlane.xlu1 %1002 }
 0x574   : > { %2357 = vrcp.f32 %v1003_v40 }
 0x577   : > { %v1141_v41 = vpop.xlane.xlu0 %1140 }
 0x578   : > { %2359 = vrcp.f32 %v1141_v41 }
 0x579   : > { %v1144_v42 = vpop.xlane.xlu1 %1143 }
 0x57a   : > { %v2356_v43 = vpop.eup %2355  ;;  %2361 = vrcp.f32 %v1144_v42  ;;  %v2299_v42 = vld [vmem:[%s3167_s6 + $0x24] ss:$8 sps:$4 sm:$0xff]  }
 0x57b   : > { %v1006_v44 = vmul.f32 %v2356_v43, %v2340_v14  ;;  %v2297_v43 = vld [vmem:[%s3167_s6 + $0x20] ss:$8 sps:$4 sm:$0xff]  }
 0x57d   : > { %1993 = vst.msk [vmem:[%s3045_s28 + $0x10] sm:$0xff] %vm850_vm5, %v1006_v44  ;;  %v1154_v53 = vpop.permute.xlu1 %1153 }
 0x57e   : > { %v2358_v45 = vpop.eup %2357  ;;  %v1159_v55 = vand.u32 %v1154_v53, %v2990_v63 }
 0x57f   : > { %v1007_v46 = vmul.f32 %v2358_v45, %v2342_v18  ;;  %v1281_v47 = vpop.xlane.xlu0 %1280  ;;  %v2300_v45 = vld [vmem:[%s3167_s6 + $0x30] ss:$8 sps:$4 sm:$0xff]  }
 0x580   : > { %2363 = vrcp.f32 %v1281_v47  ;;  %v2303_v47 = vld [vmem:[%s3167_s6 + $0x40] ss:$8 sps:$4 sm:$0xff]  }
 0x581   : > { %1994 = vst.msk [vmem:[%s3045_s28 + $0x18] sm:$0x7] %vm854_vm6, %v1007_v46  ;;  %v1011_v54 = vpack.c.bf16 %v1007_v46, %v1006_v44  ;;  %v2302_v44 = vld [vmem:[%s3167_s6 + $0x34] ss:$8 sps:$4 sm:$0xff]   ;;  %v2305_v46 = vld [vmem:[%s3167_s6 + $0x44] ss:$8 sps:$4 sm:$0xff]  }
 0x582   : > { %v2360_v3 = vpop.eup %2359 }
 0x583   : > { %v1147_v48 = vmul.f32 %v2360_v3, %v2344_v21  ;;  %v1014_v49 = vpop.permute.xlu0 %1013  ;;  %v2308_v3 = vld [vmem:[%s3167_s6 + $0x54] ss:$8 sps:$4 sm:$0xff]  }
 0x584   : > { %v2362_v50 = vpop.eup %2361  ;;  %v1019_v51 = vand.u32 %v1014_v49, %v2990_v63  ;;  %v2311_v49 = vld [vmem:[%s3167_s6 + $0x64] ss:$8 sps:$4 sm:$0xff]  }
 0x585   : > { %1997 = vst.msk [vmem:[%s3045_s28 + $0x20] sm:$0xff] %vm850_vm5, %v1147_v48  ;;  %v1148_v52 = vmul.f32 %v2362_v50, %v2346_v23  ;;  %v2309_v50 = vld [vmem:[%s3167_s6 + $0x60] ss:$8 sps:$4 sm:$0xff]  }
 0x586   : > { %2130 = vmatpush3.bf16.msra.mxu1 %v1019_v51  ;;  %v2314_v51 = vld [vmem:[%s3167_s6 + $0x74] ss:$8 sps:$4 sm:$0xff]  }
 0x587   : > { %1998 = vst.msk [vmem:[%s3045_s28 + $0x28] sm:$0x7] %vm854_vm6, %v1148_v52  ;;  %2141 = vmatprep.subr.bf16.mxu1 %v2643_v5  ;;  %v1152_v58 = vpack.c.bf16 %v1148_v52, %v1147_v48  ;;  %v2306_v48 = vld [vmem:[%s3167_s6 + $0x50] ss:$8 sps:$4 sm:$0xff]  }
 0x588   : > { %v2312_v52 = vld [vmem:[%s3167_s6 + $0x70] ss:$8 sps:$4 sm:$0xff]  }
 0x589   : > { %2132 = vmatmul.mubr.msk.bf16.vlgmr.msra.gmra.mrb[8].mxu1 %vm850_vm5, %v1011_v54 }
 0x58a   : > { %v2364_v56 = vpop.eup %2363  ;;  %2142 = vmatpush3.bf16.msra.mxu1 %v1159_v55  ;;  %2143 = vmatprep.mubr.msk.bf16.mxu1 %vm2645_vm1, %v2643_v5 }
 0x58b   : > { %v1287_v57 = vmul.f32 %v2364_v56, %v2348_v25  ;;  %2153 = vmatprep.subr.bf16.mxu1 %v2643_v5 }
 0x58d   : > { %2001 = vst.msk [vmem:[%s3045_s28 + $0x30] sm:$0xff] %vm850_vm5, %v1287_v57 }
 0x591   : > { %2144 = vmatmul.mubr.msk.bf16.vlgmr.msra.gmra.mrb[12].mxu1 %vm850_vm5, %v1152_v58 }
 0x592   : > { %2155 = vmatprep.mubr.msk.bf16.mxu1 %vm2645_vm1, %v2643_v5 }
 0x5ae   : > { %v1284_v59 = vpop.xlane.xlu1 %1283 }
 0x5af   : > { %2365 = vrcp.f32 %v1284_v59 }
 0x5b2   : > { %v1294_v60 = vpop.permute.xlu1 %1293 }
 0x5b3   : > { %v1299_v61 = vand.u32 %v1294_v60, %v2990_v63 }
 0x5b5   : > { %2154 = vmatpush3.bf16.msra.mxu1 %v1299_v61  ;;  %v2004_v61 = vld [vmem:[#allocation8] ss:$0 sm:$0xff] }
 0x5b9   : > { %v2366_v62 = vpop.eup %2365 }
 0x5ba   : > { %v1288_v1 = vmul.f32 %v2366_v62, %v2354_v37 }
 0x5bc   : > { %2002 = vst.msk [vmem:[%s3045_s28 + $0x38] sm:$0x7] %vm854_vm6, %v1288_v1  ;;  %v1292_v4 = vpack.c.bf16 %v1288_v1, %v1287_v57 }
 0x5be   : > { %2156 = vmatmul.mubr.msk.bf16.vlgmr.msra.gmra.mrb[16].mxu1 %vm850_vm5, %v1292_v4 }
 0x5e1   : > { %v921_v6 = vpop.f32.mrb[4].mxu1 }
 0x5e2   : > { %928 = vst.msk [vmem:[#allocation2] sm:$0xff] %vm800_vm4, %v921_v6  ;;  %v2121_v7 = vpop.f32.mrb[5].mxu1  ;;  %v2005_v6 = vld [vmem:[#allocation10] ss:$0 sm:$0xff] }
 0x5e3   : > { %v924_v8 = vpop.f32.mrb[6].mxu1 }
 0x5e4   : > { %930 = vst.msk [vmem:[#allocation2 + $0x8] sm:$0x7] %vm929_vm7, %v924_v8  ;;  %v2122_v5 = vpop.f32.mrb[7].mxu1 }
 0x65c   : > { %v1055_v9 = vpop.f32.mrb[8].mxu1 }
 0x65d   : > { %1064 = vrot.lane.b32.xlu1 %v1055_v9, %s2649_s12  ;;  %v2133_v63 = vpop.f32.mrb[9].mxu1 }
 0x65e   : > { %v1058_v10 = vpop.f32.mrb[10].mxu1  ;;  %v2315_v63 = vld [vmem:[#allocation13 + $0x40] sm:$0xff]  }
 0x65f   : > { %v2134_v11 = vpop.f32.mrb[11].mxu1  ;;  %2069 = vmatprep.subr.bf16.mxu1 %v2315_v63 }
 0x660   : > { %v2317_v11 = vld [vmem:[#allocation13 + $0x48] sm:$0xff]  }
 0x661   : > { %1066 = vrot.lane.b32.xlu1 %v1058_v10, %s2649_s12  ;;  %v2316_v10 = vld [vmem:[#allocation13] sm:$0xff]  }
 0x662   : > { %2070 = vmatpush3.bf16.msra.mxu1 %v2316_v10 }
 0x663   : > { %2071 = vmatprep.subr.bf16.mxu1 %v2317_v11 }
 0x664   : > { %v1195_v12 = vpop.f32.mrb[12].mxu1 }
 0x665   : > { %1204 = vrot.lane.b32.xlu1 %v1195_v12, %s2648_s29  ;;  %v2145_v13 = vpop.f32.mrb[13].mxu1  ;;  %v2318_v12 = vld [vmem:[#allocation13 + $0x8] sm:$0xff]  }
 0x666   : > { %v1198_v14 = vpop.f32.mrb[14].mxu1  ;;  %2072 = vmatpush3.bf16.msra.mxu1 %v2318_v12  ;;  %v2319_v13 = vld [vmem:[#allocation13 + $0x50] sm:$0xff]  }
 0x667   : > { %1206 = vrot.lane.b32.xlu0 %v1198_v14, %s2648_s29  ;;  %v2146_v15 = vpop.f32.mrb[15].mxu1  ;;  %v2320_v14 = vld [vmem:[#allocation13 + $0x10] sm:$0xff]   ;;  %2073 = vmatprep.subr.bf16.mxu1 %v2319_v13 }
 0x668   : > { %v2321_v15 = vld [vmem:[#allocation13 + $0x58] sm:$0xff]  }
 0x66a   : > { %2074 = vmatpush3.bf16.msra.mxu1 %v2320_v14 }
 0x66b   : > { %2075 = vmatprep.subr.bf16.mxu1 %v2321_v15 }
 0x691   : > { %v1335_v16 = vpop.f32.mrb[16].mxu1 }
 0x692   : > { %v2157_v17 = vpop.f32.mrb[17].mxu1 }
 0x693   : > { %v1338_v18 = vpop.f32.mrb[18].mxu1  ;;  %v2323_v17 = vld [vmem:[#allocation13 + $0x60] sm:$0xff]  }
 0x694   : > { %1346 = vrot.lane.b32.xlu0 %v1338_v18, %s2647_s19  ;;  %v2158_v19 = vpop.f32.mrb[19].mxu1  ;;  %v2324_v18 = vld [vmem:[#allocation13 + $0x20] sm:$0xff]  }
 0x695   : > { %v2325_v19 = vld [vmem:[#allocation13 + $0x68] sm:$0xff]  }
 0x698   : > { %1344 = vrot.lane.b32.xlu0 %v1335_v16, %s2647_s19  ;;  %v2322_v16 = vld [vmem:[#allocation13 + $0x18] sm:$0xff]  }
 0x699   : > { %2076 = vmatpush3.bf16.msra.mxu1 %v2322_v16 }
 0x69a   : > { %2077 = vmatprep.subr.bf16.mxu1 %v2323_v17  ;;  %v2022_v17 = vld [vmem:[#allocation14] ss:$0 sm:$0xff] }
 0x69d   : > { %2078 = vmatpush3.bf16.msra.mxu1 %v2324_v18 }
 0x69e   : > { %2079 = vmatprep.subr.bf16.mxu1 %v2325_v19 }
 0x6cf   : > { %v1065_v20 = vpop.permute.xlu1 %1064 }
 0x6d0   : > { %1071 = vst.msk [vmem:[#allocation2] sm:$0xff] %vm1070_vm8, %v1065_v20  ;;  %v2326_v20 = vld [vmem:[#allocation13 + $0x28] sm:$0xff]  }
 0x6d1   : > { %2080 = vmatpush3.bf16.msra.mxu1 %v2326_v20 }
 0x6d3   : > { %v1067_v21 = vpop.permute.xlu1 %1066 }
 0x6d4   : > { %1073 = vst.msk [vmem:[#allocation2 + $0x8] sm:$0x7] %vm1072_vm9, %v1067_v21  ;;  %v2327_v21 = vld [vmem:[#allocation13 + $0x70] sm:$0xff]  }
 0x6d5   : > { %2081 = vmatprep.subr.bf16.mxu1 %v2327_v21 }
 0x6d7   : > { %v1205_v22 = vpop.permute.xlu1 %1204 }
 0x6d8   : > { %1211 = vst.msk [vmem:[#allocation2] sm:$0xff] %vm1210_vm10, %v1205_v22  ;;  %v2328_v22 = vld [vmem:[#allocation13 + $0x30] sm:$0xff]  }
 0x6d9   : > { %v1207_v23 = vpop.permute.xlu0 %1206  ;;  %2082 = vmatpush3.bf16.msra.mxu1 %v2328_v22 }
 0x6da   : > { %1213 = vst.msk [vmem:[#allocation2 + $0x8] sm:$0x7] %vm1212_vm11, %v1207_v23  ;;  %v2329_v23 = vld [vmem:[#allocation13 + $0x78] sm:$0xff]  }
 0x6db   : > { %2083 = vmatprep.subr.bf16.mxu1 %v2329_v23 }
 0x706   : > { %v1347_v24 = vpop.permute.xlu0 %1346 }
 0x707   : > { %1353 = vst.msk [vmem:[#allocation2 + $0x8] sm:$0x7] %vm1352_vm12, %v1347_v24  ;;  %v2330_v24 = vld [vmem:[#allocation13 + $0x38] sm:$0xff]  }
 0x708   : > { %2084 = vmatpush3.bf16.msra.mxu1 %v2330_v24 }
 0x70a   : > { %v1345_v25 = vpop.permute.xlu0 %1344 }
 0x70b   : > { %1351 = vst.msk [vmem:[#allocation2] sm:$0xff] %vm1350_vm13, %v1345_v25  ;;  %v1419_v25 = vlaneseq }
 0x70e   : > { %v1355_v26 = vld [vmem:[#allocation2 + $0x8] sm:$0x7] }
 0x70f   : > { %v3092_v27 = vadd.f32 %v1355_v26, %v2953_v0  ;;  %v2296_v0 = vld [vmem:[%s3167_s6 + $0x14] ss:$8 sps:$4 sm:$0xff]   ;;  %v1420_v26 = vshrl.u32 %v1419_v25, 7 }
 0x710   : > { %1511 = vmatprep.subr.bf16.mxu0 %v2296_v0 }
 0x711   : > { %v1362_v28 = vsel %vm512_vm0, %v3092_v27, 0.0  ;;  %v1425_v31 = vsub.s32 1, %v1420_v26 }
 0x712   : > { %1363 = vadd.xlane.f32.xlu1 %v1362_v28  ;;  %v1354_v29 = vld [vmem:[#allocation2] sm:$0xff]  ;;  %v1421_v28 = vsub.s32 0, %v1420_v26 }
 0x713   : > { %v3097_v30 = vadd.f32 %v1354_v29, %v2957_v2  ;;  %v2294_v2 = vld [vmem:[%s3167_s6 + $0x10] ss:$8 sps:$4 sm:$0xff]  }
 0x714   : > { %1512 = vmatpush1.bf16.msra.mxu0 %v2294_v2  ;;  %v1417_v29 = vld [vmem:[#allocation11] sm:$0x3] }
 0x715   : > { %1360 = vadd.xlane.f32.xlu0 %v3097_v30  ;;  %1513 = vmatprep.subr.bf16.mxu0 %v2299_v42  ;;  %v1422_v32 = vrot.slane %v1417_v29, %v1421_v28  ;;  %v1426_v0 = vrot.slane %v1417_v29, %v1425_v31 }
 0x718   : > { %1514 = vmatpush1.bf16.msra.mxu0 %v2297_v43 }
 0x719   : > { %1515 = vmatprep.subr.bf16.mxu0 %v2302_v44 }
 0x71c   : > { %1516 = vmatpush1.bf16.msra.mxu0 %v2300_v45 }
 0x71d   : > { %1517 = vmatprep.subr.bf16.mxu0 %v2305_v46 }
 0x720   : > { %1518 = vmatpush1.bf16.msra.mxu0 %v2303_v47 }
 0x721   : > { %1519 = vmatprep.subr.bf16.mxu0 %v2308_v3 }
 0x724   : > { %1520 = vmatpush1.bf16.msra.mxu0 %v2306_v48 }
 0x725   : > { %1521 = vmatprep.subr.bf16.mxu0 %v2311_v49 }
 0x728   : > { %1522 = vmatpush1.bf16.msra.mxu0 %v2309_v50 }
 0x729   : > { %1523 = vmatprep.subr.bf16.mxu0 %v2314_v51 }
 0x72c   : > { %1524 = vmatpush1.bf16.msra.mxu0 %v2312_v52 }
 0x79f   : > { %v1364_v33 = vpop.xlane.xlu1 %1363 }
 0x7a0   : > { %v1366_v34 = vmul.f32 0.0078125, %v1364_v33 }
 0x7a2   : > { %v1361_v35 = vpop.xlane.xlu0 %1360  ;;  %v1368_v37 = vsub.f32 %v3092_v27, %v1366_v34 }
 0x7a3   : > { %v1365_v36 = vmul.f32 0.0078125, %v1361_v35 }
 0x7a4   : > { %v1370_v40 = vmul.f32 %v1368_v37, %v1368_v37 }
 0x7a5   : > { %v1367_v38 = vsub.f32 %v3097_v30, %v1365_v36 }
 0x7a6   : > { %v1373_v41 = vsel %vm512_vm0, %v1370_v40, 0.0 }
 0x7a7   : > { %v1369_v39 = vmul.f32 %v1367_v38, %v1367_v38 }
 0x7a9   : > { %1371 = vadd.xlane.f32.xlu0 %v1369_v39 }
 0x7ad   : > { %1374 = vadd.xlane.f32.xlu0 %v1373_v41 }
 0x836   : > { %v1372_v53 = vpop.xlane.xlu0 %1371 }
 0x837   : > { %v1376_v54 = vmul.f32 0.0078125, %v1372_v53 }
 0x839   : > { %v1378_v55 = vadd.f32 1e-05, %v1376_v54 }
 0x83a   : > { %v1375_v56 = vpop.xlane.xlu0 %1374 }
 0x83b   : > { %2367 = vrsqrt.f32 %v1378_v55  ;;  %v1377_v57 = vmul.f32 0.0078125, %v1375_v56 }
 0x83d   : > { %v1379_v58 = vadd.f32 1e-05, %v1377_v57 }
 0x83f   : > { %2369 = vrsqrt.f32 %v1379_v58 }
 0x845   : > { %v2368_v59 = vpop.eup %2367 }
 0x846   : > { %v1382_v60 = vmul.f32 %v2368_v59, %v1367_v38 }
 0x848   : > { %v1390_v4 = vmul.f32 %v2004_v61, %v1382_v60 }
 0x849   : > { %v2370_v62 = vpop.eup %2369 }
 0x84a   : > { %v1383_v1 = vmul.f32 %v2370_v62, %v1368_v37  ;;  %v1398_v8 = vadd.f32 %v2005_v6, %v1390_v4 }
 0x84c   : > { %v1391_v7 = vmul.f32 %v2004_v61, %v1383_v1 }
 0x84e   : > { %v1399_v5 = vadd.f32 %v2005_v6, %v1391_v7 }
 0x850   : > { %v1400_v9 = vpack.c.bf16 %v1399_v5, %v1398_v8 }
 0x852   : > { %1542 = vmatmul.mubr.bf16.vlgmr.msra.gmra.mrb[20].mxu0 %v1400_v9 }
 0x925   : > { %v1543_v2 = vpop.f32.mrb[20].mxu0 }
 0x926   : > { %v1544_v33 = vadd.f32 %v1543_v2, %v1422_v32  ;;  %v1545_v34 = vpop.f32.mrb[21].mxu0 }
 0x927   : > { %v1546_v35 = vadd.f32 %v1545_v34, %v1426_v0  ;;  %v1547_v36 = vpop.f32.mrb[22].mxu0 }
 0x928   : > { %v1552_v37 = vmul.f32 %v1544_v33, %v1544_v33  ;;  %v1548_v38 = vadd.f32 %v1547_v36, %v1422_v32  ;;  %v1549_v39 = vpop.f32.mrb[23].mxu0 }
 0x929   : > { %v1553_v40 = vmul.f32 %v1546_v35, %v1546_v35  ;;  %v1550_v41 = vadd.f32 %v1549_v39, %v1426_v0 }
 0x92a   : > { %v1556_v42 = vmul.f32 %v1552_v37, %v1544_v33  ;;  %v1554_v43 = vmul.f32 %v1548_v38, %v1548_v38 }
 0x92b   : > { %v1557_v44 = vmul.f32 %v1553_v40, %v1546_v35  ;;  %v1555_v45 = vmul.f32 %v1550_v41, %v1550_v41 }
 0x92c   : > { %v1560_v46 = vmul.f32 0.044715, %v1556_v42  ;;  %v1558_v47 = vmul.f32 %v1554_v43, %v1548_v38 }
 0x92d   : > { %v1561_v3 = vmul.f32 0.044715, %v1557_v44  ;;  %v1559_v48 = vmul.f32 %v1555_v45, %v1550_v41 }
 0x92e   : > { %v1564_v49 = vadd.f32 %v1560_v46, %v1544_v33  ;;  %v1562_v50 = vmul.f32 0.044715, %v1558_v47 }
 0x92f   : > { %v1565_v51 = vadd.f32 %v1561_v3, %v1546_v35  ;;  %v1563_v52 = vmul.f32 0.044715, %v1559_v48 }
 0x930   : > { %v1568_v53 = vmul.f32 0.7978846, %v1564_v49  ;;  %v1566_v54 = vadd.f32 %v1562_v50, %v1548_v38 }
 0x931   : > { %v1569_v55 = vmul.f32 0.7978846, %v1565_v51  ;;  %v1567_v56 = vadd.f32 %v1563_v52, %v1550_v41 }
 0x932   : > { %2371 = vtanh.f32 %v1568_v53  ;;  %v1570_v57 = vmul.f32 0.7978846, %v1566_v54 }
 0x933   : > { %2373 = vtanh.f32 %v1569_v55  ;;  %v1571_v58 = vmul.f32 0.7978846, %v1567_v56 }
 0x934   : > { %2375 = vtanh.f32 %v1570_v57 }
 0x935   : > { %2377 = vtanh.f32 %v1571_v58 }
 0x93c   : > { %v2372_v59 = vpop.eup %2371 }
 0x93d   : > { %v2374_v60 = vpop.eup %2373  ;;  %v1576_v61 = vadd.f32 1.0, %v2372_v59 }
 0x93e   : > { %v2376_v62 = vpop.eup %2375  ;;  %v1577_v1 = vadd.f32 1.0, %v2374_v60 }
 0x93f   : > { %v2378_v4 = vpop.eup %2377  ;;  %v1580_v6 = vmul.f32 0.5, %v1576_v61  ;;  %v1578_v7 = vadd.f32 1.0, %v2376_v62 }
 0x940   : > { %v1579_v8 = vadd.f32 1.0, %v2378_v4  ;;  %v1581_v5 = vmul.f32 0.5, %v1577_v1 }
 0x941   : > { %v1582_v9 = vmul.f32 0.5, %v1578_v7  ;;  %v1584_v10 = vmul.f32 %v1580_v6, %v1544_v33 }
 0x942   : > { %v1583_v63 = vmul.f32 0.5, %v1579_v8  ;;  %v1585_v12 = vmul.f32 %v1581_v5, %v1546_v35 }
 0x943   : > { %v1586_v11 = vmul.f32 %v1582_v9, %v1548_v38 }
 0x944   : > { %v1587_v13 = vmul.f32 %v1583_v63, %v1550_v41 }
 0x945   : > { %v1588_v14 = vpack.c.bf16 %v1586_v11, %v1584_v10 }
 0x946   : > { %v1589_v15 = vpack.c.bf16 %v1587_v13, %v1585_v12 }
 0x948   : > { %1757 = vmatprep.mubr.bf16.mxu1 %v1589_v15 }
 0x949   : > { %1758 = vmatmul.mubr.bf16.vlgmr.msra.gmra.mrb[20].mxu1 %v1588_v14 }
 0xa1c   : > { %v2085_v16 = vpop.f32.mrb[20].mxu1 }
 0xa1d   : > { %v2086_v18 = vpop.f32.mrb[21].mxu1 }
 0xa1e   : > { %v2087_v19 = vadd.f32 %v2086_v18, %v2085_v16  ;;  %v2088_v20 = vpop.f32.mrb[22].mxu1 }
 0xa1f   : > { %v2089_v21 = vpop.f32.mrb[23].mxu1 }
 0xa20   : > { %v1760_v22 = vadd.f32 %v2087_v19, %v2022_v17  ;;  %v2090_v23 = vadd.f32 %v2089_v21, %v2088_v20 }
 0xa22   : > { %v1766_v24 = vadd.f32 %v1760_v22, %v3097_v30  ;;  %v1763_v25 = vadd.f32 %v2090_v23, %v2022_v17 }
 0xa24   : > { %1768 = vst [vmem:[%s499_s30] sm:$0xff] %v1766_v24  ;;  %v1767_v26 = vadd.f32 %v1763_v25, %v3092_v27 }
 0xa26   : > { %1769 = vst [vmem:[%s499_s30 + $0x8] sm:$0x7] %v1767_v26 }
 0xa27 PF: > { %s27_s17 = sadd.s32 1, %s2629_s17  }
 0xa28   : > { %p24_p13 = scmp.ge.s32.totalorder %s27_s17, 4  }
 0xa2a   :  { %26 = sbr.rel (!%p24_p13) target bundleno = 5 (0x5), region = 138 }
 0xa31   :  { %1807 = vsyncpa [#allocation4], 1 }
 0xa32   :  { %1809 = vsyncpa [#allocation4 + $0x1], 1 }
 0xa33   :  { %1810 = vsyncpa [#allocation6], 1 }
 0xa34   :  { %1811 = vsyncpa [#allocation9], 1 }
 0xa35   :  { %1812 = vsyncpa [#allocation12], 1 }
 0xa36   :  { %1813 = vsyncpa [#allocation15], 1 }

</bundles_post_ra>
